<compile_context>
chip_gen: v5e
topology: v5e:2x2
jax: 0.10.0
libtpu: 0.0.40
codegen_flags: <defaults>
</compile_context>

<pallas_src>
import math
import numpy as np

import jax
import jax.numpy as jnp
from jax.experimental import pallas as pl
from jax.experimental.pallas import tpu as pltpu


def _unit_gcn_kernel(xf_ref, pool_ref, expT_ref, expV_ref, expVT_ref, shift_ref,
                     M1_ref, MA_ref, Wt_ref, W12_ref, b12_ref, Wa_ref, abias_ref,
                     Wb_ref, chw_ref, bnw_ref, out_ref):
    """unit_gcn forward for ONE batch sample (grid axis = batch, "parallel")."""
    f32 = jnp.float32
    C, TV = xf_ref.shape[1], xf_ref.shape[2]
    T = expT_ref.shape[0]
    S = MA_ref.shape[0]
    SCo = Wt_ref.shape[0]
    Co = SCo // S
    SR = W12_ref.shape[1]
    R = SR // S
    SM = abias_ref.shape[0]

    xf = xf_ref[0]                                                       # (C, T*V) lane-dense

    # ---- pooled statistics (single lane-dense matmul, shared by all subsets) ----
    pooled = jnp.dot(xf, pool_ref[...], preferred_element_type=f32)      # (C, T+V)
    xa = pooled[:, :T]                                                   # (C, T)  mean over V
    xm = pooled[:, T:]                                                   # (C, V)  mean over T
    g = jnp.mean(xa, axis=1, keepdims=True)                              # (C, 1)  global mean

    # ---- RouteFuncMLP, all S subsets stacked (conv_g composed into conv_a on host) ----
    xag = jnp.concatenate([xa, jnp.broadcast_to(g, xa.shape)], axis=0)   # (2C, T)
    ta = jnp.dot(Wa_ref[...], xag, preferred_element_type=f32)           # (3*S*M, T)
    sh0, sh1, sh2 = shift_ref[0], shift_ref[1], shift_ref[2]
    a_pre = (jnp.dot(ta[0:SM], sh0, preferred_element_type=f32)
             + jnp.dot(ta[SM:2 * SM], sh1, preferred_element_type=f32)
             + jnp.dot(ta[2 * SM:3 * SM], sh2, preferred_element_type=f32)
             + abias_ref[...])                                           # bias/BN folded on host
    a_out = jnp.maximum(a_pre, 0.0)                                      # (S*M, T)
    tb = jnp.dot(Wb_ref[...], a_out, preferred_element_type=f32)         # (3*S*Co, T)  block-diag
    alpha_rf = (jnp.dot(tb[0:SCo], sh0, preferred_element_type=f32)
                + jnp.dot(tb[SCo:2 * SCo], sh1, preferred_element_type=f32)
                + jnp.dot(tb[2 * SCo:3 * SCo], sh2, preferred_element_type=f32)
                + 1.0)                                                   # (S*Co, T)

    # ---- TAdaAggregation for all subsets (lane-dense, one big matmul) -----------
    alpha_exp = jnp.dot(alpha_rf, expT_ref[...], preferred_element_type=f32)  # (S*Co, T*V)
    ptf = jnp.dot(Wt_ref[...], xf, preferred_element_type=f32)                # (S*Co, T*V)
    x3 = alpha_exp * ptf                                                      # (S*Co, T*V)

    # ---- channel-relation (tanh) matrices for all subsets ------------------------
    x1_all = jnp.dot(W12_ref[0], xm, preferred_element_type=f32) + b12_ref[0]   # (S*R, V)
    x2_all = jnp.dot(W12_ref[1], xm, preferred_element_type=f32) + b12_ref[1]   # (S*R, V)
    diffT = jnp.tanh(x1_all[:, None, :] - x2_all[:, :, None])                   # (S*R, V, V), [i,v,u]

    M1 = M1_ref[...]                                                     # (T*V, T*V) frame mask
    expV = expV_ref[...]                                                 # (T*V, V)
    expVT = expVT_ref[...]                                               # (V, T*V)
    chw = chw_ref[...]                                                   # (S*Co, 1+R)

    # ---- graph contraction, fully lane-dense; accumulate in registers ------------
    acc = None
    for s in range(S):                                                   # static, S = 3
        x3s = x3[s * Co:(s + 1) * Co]                                    # (Co, T*V)
        chs = chw[s * Co:(s + 1) * Co]                                   # (Co, 1+R)
        # static adjacency A[s] (kron(I_T, A^T) precomputed) + per-channel conv4 bias
        zs = jnp.dot(x3s, MA_ref[s], preferred_element_type=f32)
        zs = zs + chs[:, 0:1] * jnp.dot(x3s, M1, preferred_element_type=f32)
        # data-dependent adjacency terms (conv4 over the tanh relation), per rel channel r
        for r in range(R):                                               # static, R = 2
            dT = diffT[s * R + r]                                        # (V, V), dT[v,u]
            tile = jnp.dot(jnp.dot(expV, dT, preferred_element_type=f32), expVT,
                           preferred_element_type=f32)                   # (T*V, T*V) frame-tiled
            MD = tile * M1                                               # kron(I_T, dT)
            zs = zs + chs[:, 1 + r:2 + r] * jnp.dot(x3s, MD, preferred_element_type=f32)
        acc = zs if acc is None else acc + zs

    # ---- folded BatchNorm + identity residual + ReLU; single lane-dense store ----
    bnw = bnw_ref[...]                                                   # (Co, 2)
    y = acc * bnw[:, 0:1] + bnw[:, 1:2] + xf                             # in_channels == out_channels
    out_ref[0] = jnp.maximum(y, 0.0)


def _const_spec(a):
    return pl.BlockSpec(a.shape, lambda n, nd=a.ndim: (0,) * nd)


def unit_gcn_forward(x, packed):
    N, C, T, V = x.shape
    TV = T * V
    Co = packed["bn_w"].shape[0]
    assert C == Co, "identity residual path requires in_channels == out_channels"

    xf = x.reshape(N, C, TV)                                             # lane-dense activations

    const_names = ["pool_cat", "expT", "expV", "expVT", "shift3", "M1", "MA_all",
                   "Wt_all", "W12", "b12", "Wa_cat", "a_bias", "Wb_bd", "chan_w", "bn_w"]
    consts = [packed[k] for k in const_names]

    grid_spec = pltpu.PrefetchScalarGridSpec(
        num_scalar_prefetch=0,
        grid=(N,),
        in_specs=[pl.BlockSpec((1, C, TV), lambda n: (n, 0, 0))]
                 + [_const_spec(a) for a in consts],
        out_specs=pl.BlockSpec((1, Co, TV), lambda n: (n, 0, 0)),        # lane-dense output
    )

    out_f = pl.pallas_call(
        _unit_gcn_kernel,
        out_shape=jax.ShapeDtypeStruct((N, Co, TV), jnp.float32),
        grid_spec=grid_spec,
        compiler_params=pltpu.CompilerParams(
            dimension_semantics=("parallel",),
            vmem_limit_bytes=32 * 1024 * 1024),
    )(xf, *consts)
    return out_f.reshape(N, Co, T, V)


def pack_params(p, T, V):
    """One-time host-side packing: fold BN/alpha into weights, stack the S subsets, and build
    the pooling / lane-expansion / frame-block-diagonal constant matrices."""
    TV = T * V
    A = np.asarray(p["A"], np.float32)
    W1 = np.asarray(p["W1"], np.float32)
    W2 = np.asarray(p["W2"], np.float32)
    b1 = np.asarray(p["b1"], np.float32)
    b2 = np.asarray(p["b2"], np.float32)
    W4 = np.asarray(p["W4"], np.float32)
    b4 = np.asarray(p["b4"], np.float32)
    Wt = np.asarray(p["Wt"], np.float32)
    Wg = np.asarray(p["Wg"], np.float32)
    bg = np.asarray(p["bg"], np.float32)
    Wa = np.asarray(p["Wa"], np.float32)
    ba = np.asarray(p["ba"], np.float32)
    Wb = np.asarray(p["Wb"], np.float32)
    rfs = np.asarray(p["rf_scale"], np.float32)[:, :, 0]
    rfb = np.asarray(p["rf_shift"], np.float32)[:, :, 0]
    alpha = float(p["alpha"])
    bn_scale = np.asarray(p["bn_scale"], np.float32)
    bn_shift = np.asarray(p["bn_shift"], np.float32)

    S, R, C = W1.shape
    Co = Wt.shape[1]
    M = Wa.shape[2]

    # zero-padded temporal (k=3) conv taps as (T,T) shift matrices, and their column sums
    shift3 = np.zeros((3, T, T), np.float32)
    for k in range(3):
        for t in range(T):
            tp = t + k - 1
            if 0 <= tp < T:
                shift3[k, tp, t] = 1.0
    colsum = shift3.sum(axis=1)                                          # (3, T)

    # lane-layout constants
    expT = np.zeros((T, TV), np.float32)                                 # frame -> lanes expansion
    for t in range(T):
        expT[t, t * V:(t + 1) * V] = 1.0
    expV = np.tile(np.eye(V, dtype=np.float32), (T, 1))                  # (T*V, V)
    expVT = np.ascontiguousarray(expV.T)                                 # (V, T*V)
    pool_cat = np.concatenate([expT.T / V, expV / T], axis=1)            # (T*V, T+V): [mean_V | mean_T]
    eyeT = np.eye(T, dtype=np.float32)
    M1 = np.kron(eyeT, np.ones((V, V), np.float32))                      # frame-block-diag mask
    MA_all = np.stack([np.kron(eyeT, A[s].T) for s in range(S)])         # (S, T*V, T*V)

    # TAda aggregation weights, subsets stacked on rows
    Wt_all = Wt.reshape(S * Co, C)

    # CTRGC conv1 / conv2, subsets stacked
    W12 = np.stack([W1.reshape(S * R, C), W2.reshape(S * R, C)])         # (2, S*R, C)
    b12 = np.stack([b1.reshape(S * R, 1), b2.reshape(S * R, 1)])         # (2, S*R, 1)

    # RouteFuncMLP conv_a: compose conv_g into it, fold routing BN scale, stack tap-major
    WaWg = np.einsum('skmc,scd->skmd', Wa, Wg)                           # Wa_k @ Wg
    Wabg = np.einsum('skmc,sc->skm', Wa, bg[:, :, 0])                    # Wa_k @ bg
    Wa_sc = Wa * rfs[:, None, :, None]
    WaWg_sc = WaWg * rfs[:, None, :, None]
    Wa_cat = np.concatenate(
        [Wa_sc.transpose(1, 0, 2, 3).reshape(3 * S * M, C),
         WaWg_sc.transpose(1, 0, 2, 3).reshape(3 * S * M, C)], axis=1)   # (3*S*M, 2C)
    # bias applied after the temporal shift: rfs*(sum_k (Wa_k@bg)*colsum_k + ba) + rfb
    a_bias = (rfs[:, :, None]
              * (np.einsum('skm,kt->smt', Wabg, colsum) + ba) + rfb[:, :, None])
    a_bias = a_bias.reshape(S * M, T)

    # RouteFuncMLP conv_b: block-diagonal over subsets, tap-major rows (no bias, +1 in kernel)
    Wb_bd = np.zeros((3 * S * Co, S * M), np.float32)
    for k in range(3):
        for s in range(S):
            Wb_bd[k * S * Co + s * Co:k * S * Co + (s + 1) * Co, s * M:(s + 1) * M] = Wb[s, k]

    # conv4 weight/bias with the learned scalar alpha folded in (exact)
    chan_w = np.zeros((S * Co, 1 + R), np.float32)
    for s in range(S):
        chan_w[s * Co:(s + 1) * Co, 0] = alpha * b4[s, :, 0]
        chan_w[s * Co:(s + 1) * Co, 1:] = alpha * W4[s]

    bn_w = np.concatenate([bn_scale, bn_shift], axis=1)                  # (Co, 2)

    as_j = lambda a: jnp.asarray(np.asarray(a, np.float32))
    return {"pool_cat": as_j(pool_cat), "expT": as_j(expT), "expV": as_j(expV),
            "expVT": as_j(expVT), "shift3": as_j(shift3), "M1": as_j(M1),
            "MA_all": as_j(MA_all), "Wt_all": as_j(Wt_all), "W12": as_j(W12),
            "b12": as_j(b12), "Wa_cat": as_j(Wa_cat), "a_bias": as_j(a_bias),
            "Wb_bd": as_j(Wb_bd), "chan_w": as_j(chan_w), "bn_w": as_j(bn_w)}


def unit_gcn_reference(x, p):
    """Pure-JAX mirror of unit_gcn.forward (BatchNorm in inference mode)."""
    N, C, T, V = x.shape
    S, Co = p["A"].shape[0], p["Wt"].shape[1]
    y = None
    for s in range(S):
        W1, b1 = p["W1"][s], p["b1"][s][:, 0]
        W2, b2 = p["W2"][s], p["b2"][s][:, 0]
        W4, b4 = p["W4"][s], p["b4"][s][:, 0]
        Wt = p["Wt"][s]
        Wg, bg = p["Wg"][s], p["bg"][s][:, 0]
        Wa, ba = p["Wa"][s], p["ba"][s][:, 0]
        Wb = p["Wb"][s]
        rfs, rfb = p["rf_scale"][s][:, 0], p["rf_shift"][s][:, 0]
        A_i = p["A"][s]

        xm = x.mean(axis=2)                                              # (N, C, V)
        x1 = jnp.einsum('rc,ncv->nrv', W1, xm) + b1[None, :, None]
        x2 = jnp.einsum('rc,ncv->nrv', W2, xm) + b2[None, :, None]

        # RouteFuncMLP
        g = x.mean(axis=(2, 3))                                          # (N, C)
        xa = x.mean(axis=3)                                              # (N, C, T)
        gg = jnp.einsum('dc,nc->nd', Wg, g) + bg[None, :]
        sc = xa + gg[:, :, None]
        scp = jnp.pad(sc, ((0, 0), (0, 0), (1, 1)))
        a_out = sum(jnp.einsum('mc,nct->nmt', Wa[k], scp[:, :, k:k + T])
                    for k in range(3)) + ba[None, :, None]
        a_out = jnp.maximum(a_out * rfs[None, :, None] + rfb[None, :, None], 0.0)
        ap = jnp.pad(a_out, ((0, 0), (0, 0), (1, 1)))
        b_out = sum(jnp.einsum('um,nmt->nut', Wb[k], ap[:, :, k:k + T])
                    for k in range(3))
        alpha_rf = b_out + 1.0                                           # (N, Co, T)

        # TAdaAggregation
        x3 = alpha_rf[:, :, :, None] * jnp.einsum('uc,nctv->nutv', Wt, x)

        # dynamic adjacency + graph contraction
        d = jnp.tanh(x1[:, :, :, None] - x2[:, :, None, :])              # (N, R, V, V)
        adj = (jnp.einsum('or,nruv->nouv', W4, d)
               + b4[None, :, None, None]) * p["alpha"] + A_i[None, None]
        z = jnp.einsum('ncuv,nctv->nctu', adj, x3)
        y = z if y is None else y + z

    y = y * p["bn_scale"].reshape(1, Co, 1, 1) + p["bn_shift"].reshape(1, Co, 1, 1)
    y = y + x
    return jnp.maximum(y, 0.0)


def make_params(key, C_in, C_out, T, V, S):
    """Deterministic parameters with the shapes implied by unit_gcn.__init__."""
    R = 8 if C_in in (3, 9) else C_in // 8      # CTRGC rel_channels
    M = C_in // 2                               # RouteFuncMLP hidden (ratio=2)
    eps = 1e-5
    ks = jax.random.split(key, 14)

    def kaiming_out(k, shape, fan_out):         # kaiming_normal_(mode='fan_out')
        return (jax.random.normal(k, shape) * math.sqrt(2.0 / fan_out)).astype(jnp.float32)

    p = {}
    p["W1"] = kaiming_out(ks[0], (S, R, C_in), R)
    p["W2"] = kaiming_out(ks[1], (S, R, C_in), R)
    p["W4"] = kaiming_out(ks[2], (S, C_out, R), C_out)
    # TAdaAggregation weight (Co, C, 1, 1): kaiming_uniform(a=sqrt(5)) ~ U(-1/sqrt(C), 1/sqrt(C))
    p["Wt"] = (jax.random.uniform(ks[3], (S, C_out, C_in), minval=-1.0, maxval=1.0)
               / math.sqrt(C_in)).astype(jnp.float32)
    p["Wg"] = kaiming_out(ks[4], (S, C_in, C_in), C_in)
    p["Wa"] = kaiming_out(ks[5], (S, 3, M, C_in), M * 3)
    p["Wb"] = kaiming_out(ks[6], (S, 3, C_out, M), C_out * 3)
    # conv biases: torch init zeroes them; use small nonzero values so the bias-folding
    # algebra in pack_params is numerically exercised (forward semantics unchanged)
    p["b1"] = 0.1 * jax.random.normal(ks[7], (S, R, 1), jnp.float32)
    p["b2"] = 0.1 * jax.random.normal(ks[8], (S, R, 1), jnp.float32)
    p["b4"] = 0.1 * jax.random.normal(ks[9], (S, C_out, 1), jnp.float32)
    p["bg"] = 0.1 * jax.random.normal(ks[10], (S, C_in, 1), jnp.float32)
    p["ba"] = 0.1 * jax.random.normal(ks[11], (S, M, 1), jnp.float32)
    # routing BatchNorm (inference: gamma=1, beta=0, running mean=0, var=1), folded
    p["rf_scale"] = jnp.full((S, M, 1), 1.0 / math.sqrt(1.0 + eps), jnp.float32)
    p["rf_shift"] = jnp.zeros((S, M, 1), jnp.float32)
    # adjacency parameter PA (num_subset, V, V)
    p["A"] = (jax.random.uniform(ks[12], (S, V, V)) / V).astype(jnp.float32)
    # unit_gcn alpha parameter (torch init is zeros(1); nonzero so conv4 branch is exercised)
    p["alpha"] = jnp.float32(0.1)
    # main BatchNorm2d (inference; gamma=1 instead of torch's 1e-6 so the graph branch is visible)
    p["bn_scale"] = jnp.full((C_out, 1), 1.0 / math.sqrt(1.0 + eps), jnp.float32)
    p["bn_shift"] = jnp.zeros((C_out, 1), jnp.float32)
    return p


if __name__ == "__main__":
    N, C_in, C_out, T, V, S = 4, 16, 16, 8, 16, 3
    key = jax.random.PRNGKey(0)
    kx, kp = jax.random.split(key)
    x = jax.random.normal(kx, (N, C_in, T, V), jnp.float32)
    params = make_params(kp, C_in, C_out, T, V, S)
    packed = pack_params(params, T, V)           # host-side, once (outside the per-call path)

    out = unit_gcn_forward(x, packed)
    out = jax.block_until_ready(out)

    with jax.default_matmul_precision("highest"):    # f32 ground truth
        ref = unit_gcn_reference(x, params)
    ref = jax.block_until_ready(ref)

    err = float(jnp.max(jnp.abs(out - ref)))
    assert out.shape == (N, C_out, T, V)
    # kernel matmuls run at default MXU precision (bf16 passes, f32 accumulate)
    assert err < 3e-2, f"max abs error vs pure-JAX reference too large: {err}"
    print("KERNEL_OK")
</pallas_src>

<mosaic_0001>
module attributes {stable_mosaic.version = 11 : i64} {
  func.func @_unit_gcn_kernel(%arg0: i32, %arg1: memref<1x16x128xf32, #tpu.memory_space<vmem>>, %arg2: memref<128x24xf32, #tpu.memory_space<vmem>>, %arg3: memref<8x128xf32, #tpu.memory_space<vmem>>, %arg4: memref<128x16xf32, #tpu.memory_space<vmem>>, %arg5: memref<16x128xf32, #tpu.memory_space<vmem>>, %arg6: memref<3x8x8xf32, #tpu.memory_space<vmem>>, %arg7: memref<128x128xf32, #tpu.memory_space<vmem>>, %arg8: memref<3x128x128xf32, #tpu.memory_space<vmem>>, %arg9: memref<48x16xf32, #tpu.memory_space<vmem>>, %arg10: memref<2x6x16xf32, #tpu.memory_space<vmem>>, %arg11: memref<2x6x1xf32, #tpu.memory_space<vmem>>, %arg12: memref<72x32xf32, #tpu.memory_space<vmem>>, %arg13: memref<24x8xf32, #tpu.memory_space<vmem>>, %arg14: memref<144x24xf32, #tpu.memory_space<vmem>>, %arg15: memref<48x3xf32, #tpu.memory_space<vmem>>, %arg16: memref<16x2xf32, #tpu.memory_space<vmem>>, %arg17: memref<1x16x128xf32, #tpu.memory_space<vmem>>) attributes {dimension_semantics = [#tpu.dimension_semantics<parallel>], iteration_bounds = array<i64: 4>, scalar_prefetch = 0 : i64, scratch_operands = 0 : i64, tpu.core_type = #tpu.core_type<tc>, window_params = [{transform_indices = @transform_0, window_bounds = array<i64: 1, 16, 128>}, {pipeline_mode = #tpu.pipeline_mode<synchronous>, transform_indices = @transform_1, window_bounds = array<i64: 128, 24>}, {pipeline_mode = #tpu.pipeline_mode<synchronous>, transform_indices = @transform_2, window_bounds = array<i64: 8, 128>}, {pipeline_mode = #tpu.pipeline_mode<synchronous>, transform_indices = @transform_3, window_bounds = array<i64: 128, 16>}, {pipeline_mode = #tpu.pipeline_mode<synchronous>, transform_indices = @transform_4, window_bounds = array<i64: 16, 128>}, {pipeline_mode = #tpu.pipeline_mode<synchronous>, transform_indices = @transform_5, window_bounds = array<i64: 3, 8, 8>}, {pipeline_mode = #tpu.pipeline_mode<synchronous>, transform_indices = @transform_6, window_bounds = array<i64: 128, 128>}, {pipeline_mode = #tpu.pipeline_mode<synchronous>, transform_indices = @transform_7, window_bounds = array<i64: 3, 128, 128>}, {pipeline_mode = #tpu.pipeline_mode<synchronous>, transform_indices = @transform_8, window_bounds = array<i64: 48, 16>}, {pipeline_mode = #tpu.pipeline_mode<synchronous>, transform_indices = @transform_9, window_bounds = array<i64: 2, 6, 16>}, {pipeline_mode = #tpu.pipeline_mode<synchronous>, transform_indices = @transform_10, window_bounds = array<i64: 2, 6, 1>}, {pipeline_mode = #tpu.pipeline_mode<synchronous>, transform_indices = @transform_11, window_bounds = array<i64: 72, 32>}, {pipeline_mode = #tpu.pipeline_mode<synchronous>, transform_indices = @transform_12, window_bounds = array<i64: 24, 8>}, {pipeline_mode = #tpu.pipeline_mode<synchronous>, transform_indices = @transform_13, window_bounds = array<i64: 144, 24>}, {pipeline_mode = #tpu.pipeline_mode<synchronous>, transform_indices = @transform_14, window_bounds = array<i64: 48, 3>}, {pipeline_mode = #tpu.pipeline_mode<synchronous>, transform_indices = @transform_15, window_bounds = array<i64: 16, 2>}, {transform_indices = @transform_16, window_bounds = array<i64: 1, 16, 128>}]} {
    %c0 = arith.constant 0 : index
    %c0_0 = arith.constant 0 : index
    %c0_1 = arith.constant 0 : index
    %0 = vector.load %arg1[%c0, %c0_0, %c0_1] : memref<1x16x128xf32, #tpu.memory_space<vmem>>, vector<1x16x128xf32>
    %1 = vector.shape_cast %0 : vector<1x16x128xf32> to vector<16x128xf32>
    %c0_2 = arith.constant 0 : index
    %c0_3 = arith.constant 0 : index
    %2 = vector.load %arg2[%c0_2, %c0_3] : memref<128x24xf32, #tpu.memory_space<vmem>>, vector<128x24xf32>
    %cst = arith.constant dense<0.000000e+00> : vector<16x24xf32>
    %3 = tpu.matmul %1, %2, %cst {dimension_numbers = #tpu.dot_dimension_numbers<[1], [0], [0], [1], [0, 0, 1, 1], [], []>} : vector<16x128xf32>, vector<128x24xf32>, vector<16x24xf32> -> vector<16x24xf32>
    %4 = vector.extract_strided_slice %3 {offsets = [0, 0], sizes = [16, 8], strides = [1, 1]} : vector<16x24xf32> to vector<16x8xf32>
    %5 = vector.extract_strided_slice %3 {offsets = [0, 8], sizes = [16, 16], strides = [1, 1]} : vector<16x24xf32> to vector<16x16xf32>
    %cst_4 = arith.constant dense<0.000000e+00> : vector<16xf32>
    %6 = vector.multi_reduction <add>, %4, %cst_4 [1] : vector<16x8xf32> to vector<16xf32>
    %7 = vector.shape_cast %6 : vector<16xf32> to vector<16x1xf32>
    %cst_5 = arith.constant 8.000000e+00 : f32
    %8 = vector.broadcast %cst_5 : f32 to vector<16x1xf32>
    %9 = arith.divf %7, %8 : vector<16x1xf32>
    %10 = vector.shape_cast %9 : vector<16x1xf32> to vector<16x1xf32>
    %11 = vector.broadcast %10 : vector<16x1xf32> to vector<16x8xf32>
    %12 = tpu.concatenate %4, %11 in 0 : vector<16x8xf32>, vector<16x8xf32> -> vector<32x8xf32>
    %c0_6 = arith.constant 0 : index
    %c0_7 = arith.constant 0 : index
    %13 = vector.load %arg12[%c0_6, %c0_7] : memref<72x32xf32, #tpu.memory_space<vmem>>, vector<72x32xf32>
    %cst_8 = arith.constant dense<0.000000e+00> : vector<72x8xf32>
    %14 = tpu.matmul %13, %12, %cst_8 {dimension_numbers = #tpu.dot_dimension_numbers<[1], [0], [0], [1], [0, 0, 1, 1], [], []>} : vector<72x32xf32>, vector<32x8xf32>, vector<72x8xf32> -> vector<72x8xf32>
    %c0_9 = arith.constant 0 : index
    %c0_10 = arith.constant 0 : index
    %c0_11 = arith.constant 0 : index
    %15 = vector.load %arg6[%c0_9, %c0_10, %c0_11] : memref<3x8x8xf32, #tpu.memory_space<vmem>>, vector<1x8x8xf32>
    %16 = vector.shape_cast %15 : vector<1x8x8xf32> to vector<8x8xf32>
    %c1 = arith.constant 1 : index
    %c0_12 = arith.constant 0 : index
    %c0_13 = arith.constant 0 : index
    %17 = vector.load %arg6[%c1, %c0_12, %c0_13] : memref<3x8x8xf32, #tpu.memory_space<vmem>>, vector<1x8x8xf32>
    %18 = vector.shape_cast %17 : vector<1x8x8xf32> to vector<8x8xf32>
    %c2 = arith.constant 2 : index
    %c0_14 = arith.constant 0 : index
    %c0_15 = arith.constant 0 : index
    %19 = vector.load %arg6[%c2, %c0_14, %c0_15] : memref<3x8x8xf32, #tpu.memory_space<vmem>>, vector<1x8x8xf32>
    %20 = vector.shape_cast %19 : vector<1x8x8xf32> to vector<8x8xf32>
    %21 = vector.extract_strided_slice %14 {offsets = [0, 0], sizes = [24, 8], strides = [1, 1]} : vector<72x8xf32> to vector<24x8xf32>
    %cst_16 = arith.constant dense<0.000000e+00> : vector<24x8xf32>
    %22 = tpu.matmul %21, %16, %cst_16 {dimension_numbers = #tpu.dot_dimension_numbers<[1], [0], [0], [1], [0, 0, 1, 1], [], []>} : vector<24x8xf32>, vector<8x8xf32>, vector<24x8xf32> -> vector<24x8xf32>
    %23 = vector.extract_strided_slice %14 {offsets = [24, 0], sizes = [24, 8], strides = [1, 1]} : vector<72x8xf32> to vector<24x8xf32>
    %cst_17 = arith.constant dense<0.000000e+00> : vector<24x8xf32>
    %24 = tpu.matmul %23, %18, %cst_17 {dimension_numbers = #tpu.dot_dimension_numbers<[1], [0], [0], [1], [0, 0, 1, 1], [], []>} : vector<24x8xf32>, vector<8x8xf32>, vector<24x8xf32> -> vector<24x8xf32>
    %25 = arith.addf %22, %24 : vector<24x8xf32>
    %26 = vector.extract_strided_slice %14 {offsets = [48, 0], sizes = [24, 8], strides = [1, 1]} : vector<72x8xf32> to vector<24x8xf32>
    %cst_18 = arith.constant dense<0.000000e+00> : vector<24x8xf32>
    %27 = tpu.matmul %26, %20, %cst_18 {dimension_numbers = #tpu.dot_dimension_numbers<[1], [0], [0], [1], [0, 0, 1, 1], [], []>} : vector<24x8xf32>, vector<8x8xf32>, vector<24x8xf32> -> vector<24x8xf32>
    %28 = arith.addf %25, %27 : vector<24x8xf32>
    %c0_19 = arith.constant 0 : index
    %c0_20 = arith.constant 0 : index
    %29 = vector.load %arg13[%c0_19, %c0_20] : memref<24x8xf32, #tpu.memory_space<vmem>>, vector<24x8xf32>
    %30 = arith.addf %28, %29 : vector<24x8xf32>
    %cst_21 = arith.constant 0.000000e+00 : f32
    %31 = vector.broadcast %cst_21 : f32 to vector<24x8xf32>
    %32 = arith.maximumf %30, %31 : vector<24x8xf32>
    %c0_22 = arith.constant 0 : index
    %c0_23 = arith.constant 0 : index
    %33 = vector.load %arg14[%c0_22, %c0_23] : memref<144x24xf32, #tpu.memory_space<vmem>>, vector<144x24xf32>
    %cst_24 = arith.constant dense<0.000000e+00> : vector<144x8xf32>
    %34 = tpu.matmul %33, %32, %cst_24 {dimension_numbers = #tpu.dot_dimension_numbers<[1], [0], [0], [1], [0, 0, 1, 1], [], []>} : vector<144x24xf32>, vector<24x8xf32>, vector<144x8xf32> -> vector<144x8xf32>
    %35 = vector.extract_strided_slice %34 {offsets = [0, 0], sizes = [48, 8], strides = [1, 1]} : vector<144x8xf32> to vector<48x8xf32>
    %cst_25 = arith.constant dense<0.000000e+00> : vector<48x8xf32>
    %36 = tpu.matmul %35, %16, %cst_25 {dimension_numbers = #tpu.dot_dimension_numbers<[1], [0], [0], [1], [0, 0, 1, 1], [], []>} : vector<48x8xf32>, vector<8x8xf32>, vector<48x8xf32> -> vector<48x8xf32>
    %37 = vector.extract_strided_slice %34 {offsets = [48, 0], sizes = [48, 8], strides = [1, 1]} : vector<144x8xf32> to vector<48x8xf32>
    %cst_26 = arith.constant dense<0.000000e+00> : vector<48x8xf32>
    %38 = tpu.matmul %37, %18, %cst_26 {dimension_numbers = #tpu.dot_dimension_numbers<[1], [0], [0], [1], [0, 0, 1, 1], [], []>} : vector<48x8xf32>, vector<8x8xf32>, vector<48x8xf32> -> vector<48x8xf32>
    %39 = arith.addf %36, %38 : vector<48x8xf32>
    %40 = vector.extract_strided_slice %34 {offsets = [96, 0], sizes = [48, 8], strides = [1, 1]} : vector<144x8xf32> to vector<48x8xf32>
    %cst_27 = arith.constant dense<0.000000e+00> : vector<48x8xf32>
    %41 = tpu.matmul %40, %20, %cst_27 {dimension_numbers = #tpu.dot_dimension_numbers<[1], [0], [0], [1], [0, 0, 1, 1], [], []>} : vector<48x8xf32>, vector<8x8xf32>, vector<48x8xf32> -> vector<48x8xf32>
    %42 = arith.addf %39, %41 : vector<48x8xf32>
    %cst_28 = arith.constant 1.000000e+00 : f32
    %43 = vector.broadcast %cst_28 : f32 to vector<48x8xf32>
    %44 = arith.addf %42, %43 : vector<48x8xf32>
    %c0_29 = arith.constant 0 : index
    %c0_30 = arith.constant 0 : index
    %45 = vector.load %arg3[%c0_29, %c0_30] : memref<8x128xf32, #tpu.memory_space<vmem>>, vector<8x128xf32>
    %cst_31 = arith.constant dense<0.000000e+00> : vector<48x128xf32>
    %46 = tpu.matmul %44, %45, %cst_31 {dimension_numbers = #tpu.dot_dimension_numbers<[1], [0], [0], [1], [0, 0, 1, 1], [], []>} : vector<48x8xf32>, vector<8x128xf32>, vector<48x128xf32> -> vector<48x128xf32>
    %c0_32 = arith.constant 0 : index
    %c0_33 = arith.constant 0 : index
    %47 = vector.load %arg9[%c0_32, %c0_33] : memref<48x16xf32, #tpu.memory_space<vmem>>, vector<48x16xf32>
    %cst_34 = arith.constant dense<0.000000e+00> : vector<48x128xf32>
    %48 = tpu.matmul %47, %1, %cst_34 {dimension_numbers = #tpu.dot_dimension_numbers<[1], [0], [0], [1], [0, 0, 1, 1], [], []>} : vector<48x16xf32>, vector<16x128xf32>, vector<48x128xf32> -> vector<48x128xf32>
    %49 = arith.mulf %46, %48 : vector<48x128xf32>
    %c0_35 = arith.constant 0 : index
    %c0_36 = arith.constant 0 : index
    %c0_37 = arith.constant 0 : index
    %50 = vector.load %arg10[%c0_35, %c0_36, %c0_37] : memref<2x6x16xf32, #tpu.memory_space<vmem>>, vector<1x6x16xf32>
    %51 = vector.shape_cast %50 : vector<1x6x16xf32> to vector<6x16xf32>
    %cst_38 = arith.constant dense<0.000000e+00> : vector<6x16xf32>
    %52 = tpu.matmul %51, %5, %cst_38 {dimension_numbers = #tpu.dot_dimension_numbers<[1], [0], [0], [1], [0, 0, 1, 1], [], []>} : vector<6x16xf32>, vector<16x16xf32>, vector<6x16xf32> -> vector<6x16xf32>
    %c0_39 = arith.constant 0 : index
    %c0_40 = arith.constant 0 : index
    %c0_41 = arith.constant 0 : index
    %53 = vector.load %arg11[%c0_39, %c0_40, %c0_41] : memref<2x6x1xf32, #tpu.memory_space<vmem>>, vector<1x6x1xf32>
    %54 = vector.shape_cast %53 : vector<1x6x1xf32> to vector<6x1xf32>
    %55 = vector.broadcast %54 : vector<6x1xf32> to vector<6x16xf32>
    %56 = arith.addf %52, %55 : vector<6x16xf32>
    %c1_42 = arith.constant 1 : index
    %c0_43 = arith.constant 0 : index
    %c0_44 = arith.constant 0 : index
    %57 = vector.load %arg10[%c1_42, %c0_43, %c0_44] : memref<2x6x16xf32, #tpu.memory_space<vmem>>, vector<1x6x16xf32>
    %58 = vector.shape_cast %57 : vector<1x6x16xf32> to vector<6x16xf32>
    %cst_45 = arith.constant dense<0.000000e+00> : vector<6x16xf32>
    %59 = tpu.matmul %58, %5, %cst_45 {dimension_numbers = #tpu.dot_dimension_numbers<[1], [0], [0], [1], [0, 0, 1, 1], [], []>} : vector<6x16xf32>, vector<16x16xf32>, vector<6x16xf32> -> vector<6x16xf32>
    %c1_46 = arith.constant 1 : index
    %c0_47 = arith.constant 0 : index
    %c0_48 = arith.constant 0 : index
    %60 = vector.load %arg11[%c1_46, %c0_47, %c0_48] : memref<2x6x1xf32, #tpu.memory_space<vmem>>, vector<1x6x1xf32>
    %61 = vector.shape_cast %60 : vector<1x6x1xf32> to vector<6x1xf32>
    %62 = vector.broadcast %61 : vector<6x1xf32> to vector<6x16xf32>
    %63 = arith.addf %59, %62 : vector<6x16xf32>
    %64 = vector.shape_cast %56 : vector<6x16xf32> to vector<6x1x16xf32>
    %65 = vector.shape_cast %63 : vector<6x16xf32> to vector<6x16x1xf32>
    %66 = vector.broadcast %64 : vector<6x1x16xf32> to vector<6x16x16xf32>
    %67 = vector.broadcast %65 : vector<6x16x1xf32> to vector<6x16x16xf32>
    %68 = arith.subf %66, %67 : vector<6x16x16xf32>
    %69 = math.tanh %68 : vector<6x16x16xf32>
    %c0_49 = arith.constant 0 : index
    %c0_50 = arith.constant 0 : index
    %70 = vector.load %arg7[%c0_49, %c0_50] : memref<128x128xf32, #tpu.memory_space<vmem>>, vector<128x128xf32>
    %c0_51 = arith.constant 0 : index
    %c0_52 = arith.constant 0 : index
    %71 = vector.load %arg4[%c0_51, %c0_52] : memref<128x16xf32, #tpu.memory_space<vmem>>, vector<128x16xf32>
    %c0_53 = arith.constant 0 : index
    %c0_54 = arith.constant 0 : index
    %72 = vector.load %arg5[%c0_53, %c0_54] : memref<16x128xf32, #tpu.memory_space<vmem>>, vector<16x128xf32>
    %c0_55 = arith.constant 0 : index
    %c0_56 = arith.constant 0 : index
    %73 = vector.load %arg15[%c0_55, %c0_56] : memref<48x3xf32, #tpu.memory_space<vmem>>, vector<48x3xf32>
    %74 = vector.extract_strided_slice %49 {offsets = [0, 0], sizes = [16, 128], strides = [1, 1]} : vector<48x128xf32> to vector<16x128xf32>
    %75 = vector.extract_strided_slice %73 {offsets = [0, 0], sizes = [16, 3], strides = [1, 1]} : vector<48x3xf32> to vector<16x3xf32>
    %c0_57 = arith.constant 0 : index
    %c0_58 = arith.constant 0 : index
    %c0_59 = arith.constant 0 : index
    %76 = vector.load %arg8[%c0_57, %c0_58, %c0_59] : memref<3x128x128xf32, #tpu.memory_space<vmem>>, vector<1x128x128xf32>
    %77 = vector.shape_cast %76 : vector<1x128x128xf32> to vector<128x128xf32>
    %cst_60 = arith.constant dense<0.000000e+00> : vector<16x128xf32>
    %78 = tpu.matmul %74, %77, %cst_60 {dimension_numbers = #tpu.dot_dimension_numbers<[1], [0], [0], [1], [0, 0, 1, 1], [], []>} : vector<16x128xf32>, vector<128x128xf32>, vector<16x128xf32> -> vector<16x128xf32>
    %79 = vector.extract_strided_slice %75 {offsets = [0, 0], sizes = [16, 1], strides = [1, 1]} : vector<16x3xf32> to vector<16x1xf32>
    %cst_61 = arith.constant dense<0.000000e+00> : vector<16x128xf32>
    %80 = tpu.matmul %74, %70, %cst_61 {dimension_numbers = #tpu.dot_dimension_numbers<[1], [0], [0], [1], [0, 0, 1, 1], [], []>} : vector<16x128xf32>, vector<128x128xf32>, vector<16x128xf32> -> vector<16x128xf32>
    %81 = vector.broadcast %79 : vector<16x1xf32> to vector<16x128xf32>
    %82 = arith.mulf %81, %80 : vector<16x128xf32>
    %83 = arith.addf %78, %82 : vector<16x128xf32>
    %84 = vector.extract_strided_slice %69 {offsets = [0, 0, 0], sizes = [1, 16, 16], strides = [1, 1, 1]} : vector<6x16x16xf32> to vector<1x16x16xf32>
    %85 = vector.shape_cast %84 : vector<1x16x16xf32> to vector<16x16xf32>
    %cst_62 = arith.constant dense<0.000000e+00> : vector<128x16xf32>
    %86 = tpu.matmul %71, %85, %cst_62 {dimension_numbers = #tpu.dot_dimension_numbers<[1], [0], [0], [1], [0, 0, 1, 1], [], []>} : vector<128x16xf32>, vector<16x16xf32>, vector<128x16xf32> -> vector<128x16xf32>
    %cst_63 = arith.constant dense<0.000000e+00> : vector<128x128xf32>
    %87 = tpu.matmul %86, %72, %cst_63 {dimension_numbers = #tpu.dot_dimension_numbers<[1], [0], [0], [1], [0, 0, 1, 1], [], []>} : vector<128x16xf32>, vector<16x128xf32>, vector<128x128xf32> -> vector<128x128xf32>
    %88 = arith.mulf %87, %70 : vector<128x128xf32>
    %89 = vector.extract_strided_slice %75 {offsets = [0, 1], sizes = [16, 1], strides = [1, 1]} : vector<16x3xf32> to vector<16x1xf32>
    %cst_64 = arith.constant dense<0.000000e+00> : vector<16x128xf32>
    %90 = tpu.matmul %74, %88, %cst_64 {dimension_numbers = #tpu.dot_dimension_numbers<[1], [0], [0], [1], [0, 0, 1, 1], [], []>} : vector<16x128xf32>, vector<128x128xf32>, vector<16x128xf32> -> vector<16x128xf32>
    %91 = vector.broadcast %89 : vector<16x1xf32> to vector<16x128xf32>
    %92 = arith.mulf %91, %90 : vector<16x128xf32>
    %93 = arith.addf %83, %92 : vector<16x128xf32>
    %94 = vector.extract_strided_slice %69 {offsets = [1, 0, 0], sizes = [1, 16, 16], strides = [1, 1, 1]} : vector<6x16x16xf32> to vector<1x16x16xf32>
    %95 = vector.shape_cast %94 : vector<1x16x16xf32> to vector<16x16xf32>
    %cst_65 = arith.constant dense<0.000000e+00> : vector<128x16xf32>
    %96 = tpu.matmul %71, %95, %cst_65 {dimension_numbers = #tpu.dot_dimension_numbers<[1], [0], [0], [1], [0, 0, 1, 1], [], []>} : vector<128x16xf32>, vector<16x16xf32>, vector<128x16xf32> -> vector<128x16xf32>
    %cst_66 = arith.constant dense<0.000000e+00> : vector<128x128xf32>
    %97 = tpu.matmul %96, %72, %cst_66 {dimension_numbers = #tpu.dot_dimension_numbers<[1], [0], [0], [1], [0, 0, 1, 1], [], []>} : vector<128x16xf32>, vector<16x128xf32>, vector<128x128xf32> -> vector<128x128xf32>
    %98 = arith.mulf %97, %70 : vector<128x128xf32>
    %99 = vector.extract_strided_slice %75 {offsets = [0, 2], sizes = [16, 1], strides = [1, 1]} : vector<16x3xf32> to vector<16x1xf32>
    %cst_67 = arith.constant dense<0.000000e+00> : vector<16x128xf32>
    %100 = tpu.matmul %74, %98, %cst_67 {dimension_numbers = #tpu.dot_dimension_numbers<[1], [0], [0], [1], [0, 0, 1, 1], [], []>} : vector<16x128xf32>, vector<128x128xf32>, vector<16x128xf32> -> vector<16x128xf32>
    %101 = vector.broadcast %99 : vector<16x1xf32> to vector<16x128xf32>
    %102 = arith.mulf %101, %100 : vector<16x128xf32>
    %103 = arith.addf %93, %102 : vector<16x128xf32>
    %104 = vector.extract_strided_slice %49 {offsets = [16, 0], sizes = [16, 128], strides = [1, 1]} : vector<48x128xf32> to vector<16x128xf32>
    %105 = vector.extract_strided_slice %73 {offsets = [16, 0], sizes = [16, 3], strides = [1, 1]} : vector<48x3xf32> to vector<16x3xf32>
    %c1_68 = arith.constant 1 : index
    %c0_69 = arith.constant 0 : index
    %c0_70 = arith.constant 0 : index
    %106 = vector.load %arg8[%c1_68, %c0_69, %c0_70] : memref<3x128x128xf32, #tpu.memory_space<vmem>>, vector<1x128x128xf32>
    %107 = vector.shape_cast %106 : vector<1x128x128xf32> to vector<128x128xf32>
    %cst_71 = arith.constant dense<0.000000e+00> : vector<16x128xf32>
    %108 = tpu.matmul %104, %107, %cst_71 {dimension_numbers = #tpu.dot_dimension_numbers<[1], [0], [0], [1], [0, 0, 1, 1], [], []>} : vector<16x128xf32>, vector<128x128xf32>, vector<16x128xf32> -> vector<16x128xf32>
    %109 = vector.extract_strided_slice %105 {offsets = [0, 0], sizes = [16, 1], strides = [1, 1]} : vector<16x3xf32> to vector<16x1xf32>
    %cst_72 = arith.constant dense<0.000000e+00> : vector<16x128xf32>
    %110 = tpu.matmul %104, %70, %cst_72 {dimension_numbers = #tpu.dot_dimension_numbers<[1], [0], [0], [1], [0, 0, 1, 1], [], []>} : vector<16x128xf32>, vector<128x128xf32>, vector<16x128xf32> -> vector<16x128xf32>
    %111 = vector.broadcast %109 : vector<16x1xf32> to vector<16x128xf32>
    %112 = arith.mulf %111, %110 : vector<16x128xf32>
    %113 = arith.addf %108, %112 : vector<16x128xf32>
    %114 = vector.extract_strided_slice %69 {offsets = [2, 0, 0], sizes = [1, 16, 16], strides = [1, 1, 1]} : vector<6x16x16xf32> to vector<1x16x16xf32>
    %115 = vector.shape_cast %114 : vector<1x16x16xf32> to vector<16x16xf32>
    %cst_73 = arith.constant dense<0.000000e+00> : vector<128x16xf32>
    %116 = tpu.matmul %71, %115, %cst_73 {dimension_numbers = #tpu.dot_dimension_numbers<[1], [0], [0], [1], [0, 0, 1, 1], [], []>} : vector<128x16xf32>, vector<16x16xf32>, vector<128x16xf32> -> vector<128x16xf32>
    %cst_74 = arith.constant dense<0.000000e+00> : vector<128x128xf32>
    %117 = tpu.matmul %116, %72, %cst_74 {dimension_numbers = #tpu.dot_dimension_numbers<[1], [0], [0], [1], [0, 0, 1, 1], [], []>} : vector<128x16xf32>, vector<16x128xf32>, vector<128x128xf32> -> vector<128x128xf32>
    %118 = arith.mulf %117, %70 : vector<128x128xf32>
    %119 = vector.extract_strided_slice %105 {offsets = [0, 1], sizes = [16, 1], strides = [1, 1]} : vector<16x3xf32> to vector<16x1xf32>
    %cst_75 = arith.constant dense<0.000000e+00> : vector<16x128xf32>
    %120 = tpu.matmul %104, %118, %cst_75 {dimension_numbers = #tpu.dot_dimension_numbers<[1], [0], [0], [1], [0, 0, 1, 1], [], []>} : vector<16x128xf32>, vector<128x128xf32>, vector<16x128xf32> -> vector<16x128xf32>
    %121 = vector.broadcast %119 : vector<16x1xf32> to vector<16x128xf32>
    %122 = arith.mulf %121, %120 : vector<16x128xf32>
    %123 = arith.addf %113, %122 : vector<16x128xf32>
    %124 = vector.extract_strided_slice %69 {offsets = [3, 0, 0], sizes = [1, 16, 16], strides = [1, 1, 1]} : vector<6x16x16xf32> to vector<1x16x16xf32>
    %125 = vector.shape_cast %124 : vector<1x16x16xf32> to vector<16x16xf32>
    %cst_76 = arith.constant dense<0.000000e+00> : vector<128x16xf32>
    %126 = tpu.matmul %71, %125, %cst_76 {dimension_numbers = #tpu.dot_dimension_numbers<[1], [0], [0], [1], [0, 0, 1, 1], [], []>} : vector<128x16xf32>, vector<16x16xf32>, vector<128x16xf32> -> vector<128x16xf32>
    %cst_77 = arith.constant dense<0.000000e+00> : vector<128x128xf32>
    %127 = tpu.matmul %126, %72, %cst_77 {dimension_numbers = #tpu.dot_dimension_numbers<[1], [0], [0], [1], [0, 0, 1, 1], [], []>} : vector<128x16xf32>, vector<16x128xf32>, vector<128x128xf32> -> vector<128x128xf32>
    %128 = arith.mulf %127, %70 : vector<128x128xf32>
    %129 = vector.extract_strided_slice %105 {offsets = [0, 2], sizes = [16, 1], strides = [1, 1]} : vector<16x3xf32> to vector<16x1xf32>
    %cst_78 = arith.constant dense<0.000000e+00> : vector<16x128xf32>
    %130 = tpu.matmul %104, %128, %cst_78 {dimension_numbers = #tpu.dot_dimension_numbers<[1], [0], [0], [1], [0, 0, 1, 1], [], []>} : vector<16x128xf32>, vector<128x128xf32>, vector<16x128xf32> -> vector<16x128xf32>
    %131 = vector.broadcast %129 : vector<16x1xf32> to vector<16x128xf32>
    %132 = arith.mulf %131, %130 : vector<16x128xf32>
    %133 = arith.addf %123, %132 : vector<16x128xf32>
    %134 = arith.addf %103, %133 : vector<16x128xf32>
    %135 = vector.extract_strided_slice %49 {offsets = [32, 0], sizes = [16, 128], strides = [1, 1]} : vector<48x128xf32> to vector<16x128xf32>
    %136 = vector.extract_strided_slice %73 {offsets = [32, 0], sizes = [16, 3], strides = [1, 1]} : vector<48x3xf32> to vector<16x3xf32>
    %c2_79 = arith.constant 2 : index
    %c0_80 = arith.constant 0 : index
    %c0_81 = arith.constant 0 : index
    %137 = vector.load %arg8[%c2_79, %c0_80, %c0_81] : memref<3x128x128xf32, #tpu.memory_space<vmem>>, vector<1x128x128xf32>
    %138 = vector.shape_cast %137 : vector<1x128x128xf32> to vector<128x128xf32>
    %cst_82 = arith.constant dense<0.000000e+00> : vector<16x128xf32>
    %139 = tpu.matmul %135, %138, %cst_82 {dimension_numbers = #tpu.dot_dimension_numbers<[1], [0], [0], [1], [0, 0, 1, 1], [], []>} : vector<16x128xf32>, vector<128x128xf32>, vector<16x128xf32> -> vector<16x128xf32>
    %140 = vector.extract_strided_slice %136 {offsets = [0, 0], sizes = [16, 1], strides = [1, 1]} : vector<16x3xf32> to vector<16x1xf32>
    %cst_83 = arith.constant dense<0.000000e+00> : vector<16x128xf32>
    %141 = tpu.matmul %135, %70, %cst_83 {dimension_numbers = #tpu.dot_dimension_numbers<[1], [0], [0], [1], [0, 0, 1, 1], [], []>} : vector<16x128xf32>, vector<128x128xf32>, vector<16x128xf32> -> vector<16x128xf32>
    %142 = vector.broadcast %140 : vector<16x1xf32> to vector<16x128xf32>
    %143 = arith.mulf %142, %141 : vector<16x128xf32>
    %144 = arith.addf %139, %143 : vector<16x128xf32>
    %145 = vector.extract_strided_slice %69 {offsets = [4, 0, 0], sizes = [1, 16, 16], strides = [1, 1, 1]} : vector<6x16x16xf32> to vector<1x16x16xf32>
    %146 = vector.shape_cast %145 : vector<1x16x16xf32> to vector<16x16xf32>
    %cst_84 = arith.constant dense<0.000000e+00> : vector<128x16xf32>
    %147 = tpu.matmul %71, %146, %cst_84 {dimension_numbers = #tpu.dot_dimension_numbers<[1], [0], [0], [1], [0, 0, 1, 1], [], []>} : vector<128x16xf32>, vector<16x16xf32>, vector<128x16xf32> -> vector<128x16xf32>
    %cst_85 = arith.constant dense<0.000000e+00> : vector<128x128xf32>
    %148 = tpu.matmul %147, %72, %cst_85 {dimension_numbers = #tpu.dot_dimension_numbers<[1], [0], [0], [1], [0, 0, 1, 1], [], []>} : vector<128x16xf32>, vector<16x128xf32>, vector<128x128xf32> -> vector<128x128xf32>
    %149 = arith.mulf %148, %70 : vector<128x128xf32>
    %150 = vector.extract_strided_slice %136 {offsets = [0, 1], sizes = [16, 1], strides = [1, 1]} : vector<16x3xf32> to vector<16x1xf32>
    %cst_86 = arith.constant dense<0.000000e+00> : vector<16x128xf32>
    %151 = tpu.matmul %135, %149, %cst_86 {dimension_numbers = #tpu.dot_dimension_numbers<[1], [0], [0], [1], [0, 0, 1, 1], [], []>} : vector<16x128xf32>, vector<128x128xf32>, vector<16x128xf32> -> vector<16x128xf32>
    %152 = vector.broadcast %150 : vector<16x1xf32> to vector<16x128xf32>
    %153 = arith.mulf %152, %151 : vector<16x128xf32>
    %154 = arith.addf %144, %153 : vector<16x128xf32>
    %155 = vector.extract_strided_slice %69 {offsets = [5, 0, 0], sizes = [1, 16, 16], strides = [1, 1, 1]} : vector<6x16x16xf32> to vector<1x16x16xf32>
    %156 = vector.shape_cast %155 : vector<1x16x16xf32> to vector<16x16xf32>
    %cst_87 = arith.constant dense<0.000000e+00> : vector<128x16xf32>
    %157 = tpu.matmul %71, %156, %cst_87 {dimension_numbers = #tpu.dot_dimension_numbers<[1], [0], [0], [1], [0, 0, 1, 1], [], []>} : vector<128x16xf32>, vector<16x16xf32>, vector<128x16xf32> -> vector<128x16xf32>
    %cst_88 = arith.constant dense<0.000000e+00> : vector<128x128xf32>
    %158 = tpu.matmul %157, %72, %cst_88 {dimension_numbers = #tpu.dot_dimension_numbers<[1], [0], [0], [1], [0, 0, 1, 1], [], []>} : vector<128x16xf32>, vector<16x128xf32>, vector<128x128xf32> -> vector<128x128xf32>
    %159 = arith.mulf %158, %70 : vector<128x128xf32>
    %160 = vector.extract_strided_slice %136 {offsets = [0, 2], sizes = [16, 1], strides = [1, 1]} : vector<16x3xf32> to vector<16x1xf32>
    %cst_89 = arith.constant dense<0.000000e+00> : vector<16x128xf32>
    %161 = tpu.matmul %135, %159, %cst_89 {dimension_numbers = #tpu.dot_dimension_numbers<[1], [0], [0], [1], [0, 0, 1, 1], [], []>} : vector<16x128xf32>, vector<128x128xf32>, vector<16x128xf32> -> vector<16x128xf32>
    %162 = vector.broadcast %160 : vector<16x1xf32> to vector<16x128xf32>
    %163 = arith.mulf %162, %161 : vector<16x128xf32>
    %164 = arith.addf %154, %163 : vector<16x128xf32>
    %165 = arith.addf %134, %164 : vector<16x128xf32>
    %c0_90 = arith.constant 0 : index
    %c0_91 = arith.constant 0 : index
    %166 = vector.load %arg16[%c0_90, %c0_91] : memref<16x2xf32, #tpu.memory_space<vmem>>, vector<16x2xf32>
    %167 = vector.extract_strided_slice %166 {offsets = [0, 0], sizes = [16, 1], strides = [1, 1]} : vector<16x2xf32> to vector<16x1xf32>
    %168 = vector.broadcast %167 : vector<16x1xf32> to vector<16x128xf32>
    %169 = arith.mulf %165, %168 : vector<16x128xf32>
    %170 = vector.extract_strided_slice %166 {offsets = [0, 1], sizes = [16, 1], strides = [1, 1]} : vector<16x2xf32> to vector<16x1xf32>
    %171 = vector.broadcast %170 : vector<16x1xf32> to vector<16x128xf32>
    %172 = arith.addf %169, %171 : vector<16x128xf32>
    %173 = arith.addf %172, %1 : vector<16x128xf32>
    %cst_92 = arith.constant 0.000000e+00 : f32
    %174 = vector.broadcast %cst_92 : f32 to vector<16x128xf32>
    %175 = arith.maximumf %173, %174 : vector<16x128xf32>
    %c0_93 = arith.constant 0 : index
    %c0_94 = arith.constant 0 : index
    %c0_95 = arith.constant 0 : index
    %176 = vector.load %arg17[%c0_93, %c0_94, %c0_95] : memref<1x16x128xf32, #tpu.memory_space<vmem>>, vector<1x16x128xf32>
    %177 = vector.shape_cast %176 : vector<1x16x128xf32> to vector<16x128xf32>
    %178 = vector.shape_cast %175 : vector<16x128xf32> to vector<1x16x128xf32>
    tpu.vector_store %arg17[%c0_93, %c0_94, %c0_95], %178 {strides = array<i32>} : memref<1x16x128xf32, #tpu.memory_space<vmem>>, vector<1x16x128xf32>,
    return
  }
  func.func @transform_0(%arg0: i32) -> (i32, i32, i32) {
    %c0_i32 = arith.constant 0 : i32
    %c0_i32_0 = arith.constant 0 : i32
    %c0_i32_1 = arith.constant 0 : i32
    return %arg0, %c0_i32, %c0_i32_0 : i32, i32, i32
  }
  func.func @transform_1(%arg0: i32) -> (i32, i32) {
    %c0_i32 = arith.constant 0 : i32
    %c0_i32_0 = arith.constant 0 : i32
    %c0_i32_1 = arith.constant 0 : i32
    return %c0_i32, %c0_i32_0 : i32, i32
  }
  func.func @transform_2(%arg0: i32) -> (i32, i32) {
    %c0_i32 = arith.constant 0 : i32
    %c0_i32_0 = arith.constant 0 : i32
    %c0_i32_1 = arith.constant 0 : i32
    return %c0_i32, %c0_i32_0 : i32, i32
  }
  func.func @transform_3(%arg0: i32) -> (i32, i32) {
    %c0_i32 = arith.constant 0 : i32
    %c0_i32_0 = arith.constant 0 : i32
    %c0_i32_1 = arith.constant 0 : i32
    return %c0_i32, %c0_i32_0 : i32, i32
  }
  func.func @transform_4(%arg0: i32) -> (i32, i32) {
    %c0_i32 = arith.constant 0 : i32
    %c0_i32_0 = arith.constant 0 : i32
    %c0_i32_1 = arith.constant 0 : i32
    return %c0_i32, %c0_i32_0 : i32, i32
  }
  func.func @transform_5(%arg0: i32) -> (i32, i32, i32) {
    %c0_i32 = arith.constant 0 : i32
    %c0_i32_0 = arith.constant 0 : i32
    %c0_i32_1 = arith.constant 0 : i32
    %c0_i32_2 = arith.constant 0 : i32
    return %c0_i32, %c0_i32_0, %c0_i32_1 : i32, i32, i32
  }
  func.func @transform_6(%arg0: i32) -> (i32, i32) {
    %c0_i32 = arith.constant 0 : i32
    %c0_i32_0 = arith.constant 0 : i32
    %c0_i32_1 = arith.constant 0 : i32
    return %c0_i32, %c0_i32_0 : i32, i32
  }
  func.func @transform_7(%arg0: i32) -> (i32, i32, i32) {
    %c0_i32 = arith.constant 0 : i32
    %c0_i32_0 = arith.constant 0 : i32
    %c0_i32_1 = arith.constant 0 : i32
    %c0_i32_2 = arith.constant 0 : i32
    return %c0_i32, %c0_i32_0, %c0_i32_1 : i32, i32, i32
  }
  func.func @transform_8(%arg0: i32) -> (i32, i32) {
    %c0_i32 = arith.constant 0 : i32
    %c0_i32_0 = arith.constant 0 : i32
    %c0_i32_1 = arith.constant 0 : i32
    return %c0_i32, %c0_i32_0 : i32, i32
  }
  func.func @transform_9(%arg0: i32) -> (i32, i32, i32) {
    %c0_i32 = arith.constant 0 : i32
    %c0_i32_0 = arith.constant 0 : i32
    %c0_i32_1 = arith.constant 0 : i32
    %c0_i32_2 = arith.constant 0 : i32
    return %c0_i32, %c0_i32_0, %c0_i32_1 : i32, i32, i32
  }
  func.func @transform_10(%arg0: i32) -> (i32, i32, i32) {
    %c0_i32 = arith.constant 0 : i32
    %c0_i32_0 = arith.constant 0 : i32
    %c0_i32_1 = arith.constant 0 : i32
    %c0_i32_2 = arith.constant 0 : i32
    return %c0_i32, %c0_i32_0, %c0_i32_1 : i32, i32, i32
  }
  func.func @transform_11(%arg0: i32) -> (i32, i32) {
    %c0_i32 = arith.constant 0 : i32
    %c0_i32_0 = arith.constant 0 : i32
    %c0_i32_1 = arith.constant 0 : i32
    return %c0_i32, %c0_i32_0 : i32, i32
  }
  func.func @transform_12(%arg0: i32) -> (i32, i32) {
    %c0_i32 = arith.constant 0 : i32
    %c0_i32_0 = arith.constant 0 : i32
    %c0_i32_1 = arith.constant 0 : i32
    return %c0_i32, %c0_i32_0 : i32, i32
  }
  func.func @transform_13(%arg0: i32) -> (i32, i32) {
    %c0_i32 = arith.constant 0 : i32
    %c0_i32_0 = arith.constant 0 : i32
    %c0_i32_1 = arith.constant 0 : i32
    return %c0_i32, %c0_i32_0 : i32, i32
  }
  func.func @transform_14(%arg0: i32) -> (i32, i32) {
    %c0_i32 = arith.constant 0 : i32
    %c0_i32_0 = arith.constant 0 : i32
    %c0_i32_1 = arith.constant 0 : i32
    return %c0_i32, %c0_i32_0 : i32, i32
  }
  func.func @transform_15(%arg0: i32) -> (i32, i32) {
    %c0_i32 = arith.constant 0 : i32
    %c0_i32_0 = arith.constant 0 : i32
    %c0_i32_1 = arith.constant 0 : i32
    return %c0_i32, %c0_i32_0 : i32, i32
  }
  func.func @transform_16(%arg0: i32) -> (i32, i32, i32) {
    %c0_i32 = arith.constant 0 : i32
    %c0_i32_0 = arith.constant 0 : i32
    %c0_i32_1 = arith.constant 0 : i32
    return %arg0, %c0_i32, %c0_i32_0 : i32, i32, i32
  }
}

</mosaic_0001>

<bundles_post_ra>
// kernel: tpu_custom_call.1
= control target key start
LH: loop header
LB: loop body
LE: loop exit
PB: predicated region body
PF: predicated region fallthrough
CT: control target
= control target key end

     0   :  { %s5302_s0 = inlined_call_operand.vmem [shape: f32[4,16,128], index: 0, kind: input, shape index: {}]   ;;  %s5303_s1 = inlined_call_operand.vmem [shape: f32[128,24], index: 1, kind: input, shape index: {}]   ;;  %s5304_s2 = inlined_call_operand.vmem [shape: f32[8,128], index: 2, kind: input, shape index: {}]   ;;  %s5305_s3 = inlined_call_operand.vmem [shape: f32[128,16], index: 3, kind: input, shape index: {}]   ;;  %s5306_s4 = inlined_call_operand.vmem [shape: f32[16,128], index: 4, kind: input, shape index: {}]   ;;  %s5307_s5 = inlined_call_operand.vmem [shape: f32[3,8,8], index: 5, kind: input, shape index: {}]   ;;  %s5308_s6 = inlined_call_operand.vmem [shape: f32[128,128], index: 6, kind: input, shape index: {}]   ;;  %s5309_s7 = inlined_call_operand.hbm [shape: f32[3,128,128], index: 7, kind: input, shape index: {}]   ;;  %s5310_s8 = inlined_call_operand.vmem [shape: f32[48,16], index: 8, kind: input, shape index: {}]   ;;  %s5311_s9 = inlined_call_operand.vmem [shape: f32[2,6,16], index: 9, kind: input, shape index: {}]   ;;  %s5312_s10 = inlined_call_operand.vmem [shape: f32[2,6,1], index: 10, kind: input, shape index: {}]   ;;  %s5313_s11 = inlined_call_operand.vmem [shape: f32[72,32], index: 11, kind: input, shape index: {}]   ;;  %s5314_s12 = inlined_call_operand.vmem [shape: f32[24,8], index: 12, kind: input, shape index: {}]   ;;  %s5315_s13 = inlined_call_operand.vmem [shape: f32[144,24], index: 13, kind: input, shape index: {}]   ;;  %s5316_s14 = inlined_call_operand.vmem [shape: f32[48,3], index: 14, kind: input, shape index: {}]   ;;  %s5317_s15 = inlined_call_operand.vmem [shape: f32[16,2], index: 15, kind: input, shape index: {}]   ;;  %s5318_s16 = inlined_call_operand.hbm [shape: f32[4,16,128], index: 16, kind: output, shape index: {}]  }
   0x1   :  { %5359 = sst [smem:[#allocation46_spill]] %s5302_s0 }
   0x2   :  { %5360 = sst [smem:[#allocation47_spill]] %s5303_s1 }
   0x3   :  { %5361 = sst [smem:[#allocation48_spill]] %s5309_s7 }
   0x4   :  { %21 = vsyncpa [#allocation3], 0 }
   0x5   :  { %22 = vsyncpa [#allocation4], 0 }
   0x6   :  { %24 = vsyncpa [#allocation4 + $0x1], 0  ;;  %s3858_s21 = smov 0   ;;  %s3860_s22 = smov 0  }
   0x7   :  { %s3862_s23 = smov 0   ;;  %s3864_s24 = smov 0  }
   0x8 LB: > { %5362 = sst [smem:[#allocation8_spill]] %s3749_s21  ;;  %s3879_s25 = sadd.s32 4294967295, %s3761_s24   ;;  %s3761_s24 = sphi %s3864_s24, %s5450_s24   ;;  %s3757_s23 = sphi %s3862_s23, %s5452_s23   ;;  %s3753_s22 = sphi %s3860_s22, %s5454_s22   ;;  %s3749_s21 = sphi %s3858_s21, %s5453_s21  }
   0x9   : > { %5363 = sst [smem:[#allocation9_spill]] %s3757_s23  ;;  %s3232_s26 = sadd.s32 4294967294, %s3761_s24  }
   0xa   : > { %s3883_s27 = sadd.s32 1, %s3761_s24   ;;  %s378_s28 = sadd.s32 1, %s3757_s23 }
   0xb   : > { %5364 = sst [smem:[#allocation10_spill]] %s3883_s27  ;;  %s375_s29 = ssub.s32 %s3761_s24, %s3883_s27 }
   0xc   : > { %p388_p0 = scmp.ne.s32.totalorder %s3757_s23, %s3753_s22  ;;  %p376_p1 = scmp.eq.s32.totalorder %s375_s29, 0 }
   0xd   : > { %p389_p2 = scmp.eq.s32.totalorder %s3879_s25, 3  ;;  %p394_p3 = scmp.ne.s32.totalorder %s3753_s22, %s3749_s21 }
   0xe   : > { %p395_p4 = scmp.eq.s32.totalorder %s3232_s26, 3  ;;  %p3233_p7 = scmp.ge.s32.totalorder %s3761_s24, 1 }
   0xf   : > { %s3894_s30 = scalar_select %p376_p1, %s3757_s23, %s378_s28  }
  0x10   : > { %p3896_p5 = por %p389_p2, %p388_p0  ;;  %p3900_p6 = por %p395_p4, %p394_p3 }
  0x11   : > { %5365 = sst [smem:[#allocation11_spill]] %s3894_s30  ;;  %p402_p8 = scmp.lt.s32.totalorder %s3761_s24, 5 }
  0x12   : > { %s5367_s17 = scalar_select %p3900_p6, 1, 0 }
  0x13   : > { %p3528_p9 = scmp.eq.s32.totalorder %s3879_s25, 0  ;;  %p403_p10 = pnand %p3233_p7, %p402_p8 }
  0x14   : > { %5368 = sst [smem:[#allocation12_spill]] %s5367_s17  ;;  %s3763_s26 = smov [#allocation2]  }
  0x15   : > { %s5369_s7 = sld [smem:[#allocation48_spill]]  ;;  %p3520_p11 = pneg %p403_p10 }
  0x16   : > { %s433_s28 = sshll.u32 %s3763_s26, 4  ;;  %s3764_s29 = smov 128   ;;  %s434_s28 = int_to_ptr.vmem [resolvable:$true] %s433_s28 }
  0x17   : > { %p3521_p12 = pnand %p3528_p9, %p3520_p11  ;;  %s3765_s30 = smov 8  }
  0x18   : > { %481 = sbr.rel (%p403_p10) target bundleno = 3509 (0xdb5), region = 84 }
  0x1b   : > { %s431_s20 = sshll.u32 %s5369_s7, 4  ;;  %s432_s20 = int_to_ptr.hbm [resolvable:$true] %s431_s20 }
  0x1c   : > { %3523 = dma.hbm_to_vmem [thread:$0]  (!%p3521_p12), %s432_s20, 6144, %s434_s28, [#allocation3], %s3764_s29, %s3764_s29, %s3765_s30  }
  0x1d   : > { %3740 = dma.done.wait (%p3528_p9), [#allocation3], 6144  }
  0x1e   : > { %3742 = vsyncadd (%p3528_p9), [#allocation3], 4294961152  ;;  %s5370_s1 = sld [smem:[#allocation47_spill]]  ;;  %p532_p13 = scmp.lt.s32.totalorder %s3879_s25, 3  ;;  %vm578_vm0 = vcmask 64512   ;;  %v3767_v23 = vmov 8.0  }
  0x1f   : > { %s5371_s27 = sld [smem:[#allocation46_spill]]  ;;  %s3766_s21 = smov 120   ;;  %3603 = vrcp.f32 %v3767_v23  ;;  %v594_v34 = vld [vmem:[%s5313_s11] sm:$0xff]  ;;  %vm603_vm2 = vcmask 261120   ;;  %v595_v35 = vld [vmem:[%s5313_s11 + $0x8] sm:$0xff]  ;;  %v596_v36 = vld [vmem:[%s5313_s11 + $0x10] sm:$0xff] }
  0x20   : > { %s533_s18 = scalar_select %p532_p13, %s3879_s25, 3  ;;  %v597_v37 = vld [vmem:[%s5313_s11 + $0x18] sm:$0xff]  ;;  %v598_v38 = vld [vmem:[%s5313_s11 + $0x20] sm:$0xff]  ;;  %v599_v39 = vld [vmem:[%s5313_s11 + $0x28] sm:$0xff]  ;;  %vm815_vm3 = vcmask 195584   ;;  %vm1172_vm4 = vcmask 130048  }
  0x21   : > { %v600_v40 = vld [vmem:[%s5313_s11 + $0x30] sm:$0xff]  ;;  %v601_v41 = vld [vmem:[%s5313_s11 + $0x38] sm:$0xff]  ;;  %v602_v42 = vld [vmem:[%s5313_s11 + $0x40] sm:$0xff]  ;;  %s529_s30 = sand.u32 1, %s3753_s22   ;;  %s3511_s17 = sshll.u32 %s3879_s25, 4 }
  0x22   : > { %s3510_s20 = sshll.u32 %s533_s18, 4  ;;  %v675_v43 = vld [vmem:[%s5307_s5] sm:$0xff]  ;;  %v3251_v44 = vld [vmem:[%s5307_s5 + $0x10] sm:$0xff]  ;;  %v3250_v45 = vld [vmem:[%s5307_s5 + $0x8] sm:$0xff]  ;;  %s3154_s29 = scalar_lea.hbm %s5318_s16, %s3511_s17 }
  0x23   : > { %3513 = vmatpush.msra.mxu3 %v675_v43  ;;  %704 = vmatpush.msra.mxu2 %v3250_v45  ;;  %v802_v23 = vld [vmem:[%s5315_s13 + $0x28] sm:$0xff]  ;;  %s3157_s23 = sshll.u32 %s3154_s29, 4  ;;  %s3143_s25 = scalar_lea.sflag [#allocation4], %s529_s30  ;;  %s3158_s23 = int_to_ptr.hbm [resolvable:$true] %s3157_s23 }
  0x24   : > { %v554_v0 = vld [vmem:[%s5370_s1 + $0x78] sm:$0xff]  ;;  %v553_v1 = vld [vmem:[%s5370_s1 + $0x70] sm:$0xff]  ;;  %v552_v2 = vld [vmem:[%s5370_s1 + $0x68] sm:$0xff] }
  0x25   : > { %555 = vmatpush.msra.mxu0 %v554_v0  ;;  %v551_v3 = vld [vmem:[%s5370_s1 + $0x60] sm:$0xff]  ;;  %v550_v4 = vld [vmem:[%s5370_s1 + $0x58] sm:$0xff]  ;;  %v549_v5 = vld [vmem:[%s5370_s1 + $0x50] sm:$0xff]  ;;  %s3966_s19 = scalar_lea.vmem %s5371_s27, %s3510_s20  ;;  %v3604_v24 = vpop.eup %3603  ;;  %774 = vmatpush.msrb.mxu2 %v3251_v44  ;;  %s3709_s27 = sshra.s32 %s3158_s23, 4  ;;  %s3710_s27 = int_to_ptr.hbm [resolvable:$true] %s3709_s27 }
  0x26   : > { %v548_v6 = vld [vmem:[%s5370_s1 + $0x48] sm:$0xff]  ;;  %v547_v7 = vld [vmem:[%s5370_s1 + $0x40] sm:$0xff]  ;;  %v546_v8 = vld [vmem:[%s5370_s1 + $0x38] sm:$0xff]  ;;  %v586_v25 = vmul.f32 8.0, %v3604_v24  ;;  %vm590_vm1 = vweird.f32 %v3604_v24  ;;  %s3711_s26 = scalar_lea.hbm %s3710_s27, 16  ;;  %s3715_s20 = scalar_lea.hbm %s5318_s16, 64 }
  0x27   : > { %556 = vmatpush.msra.mxu0 %v553_v1  ;;  %v545_v9 = vld [vmem:[%s5370_s1 + $0x30] sm:$0xff]  ;;  %v544_v10 = vld [vmem:[%s5370_s1 + $0x28] sm:$0xff]  ;;  %v543_v11 = vld [vmem:[%s5370_s1 + $0x20] sm:$0xff]  ;;  %p3712_p0 = scmp.ne.s32.totalorder %s3710_s27, %s3711_s26  ;;  %p3716_p3 = scmp.lt.s32.totalorder %s3710_s27, %s5318_s16 }
  0x28   : > { %v542_v12 = vld [vmem:[%s5370_s1 + $0x18] sm:$0xff]  ;;  %v541_v13 = vld [vmem:[%s5370_s1 + $0x10] sm:$0xff]  ;;  %v540_v14 = vld [vmem:[%s5370_s1 + $0x8] sm:$0xff]  ;;  %v587_v26 = vsub.f32 1.0, %v586_v25  ;;  %p3717_p4 = scmp.lt.s32.totalorder %s3715_s20, %s3711_s26 }
  0x29   : > { %557 = vmatpush.msra.mxu0 %v552_v2  ;;  %v539_v15 = vld [vmem:[%s5370_s1] sm:$0xff]  ;;  %v3976_v17 = vld [vmem:[%s3966_s19 + $0x8] sm:$0xff]  ;;  %v804_v25 = vld [vmem:[%s5315_s13 + $0x38] sm:$0xff]  ;;  %p3713_p1 = pnand %p3712_p0, %p3896_p5 }
  0x2a   : > { %v3972_v16 = vld [vmem:[%s3966_s19] sm:$0xff]  ;;  %v588_v27 = vmul.f32 %v3604_v24, %v587_v26  ;;  %p3718_p7 = por %p3717_p4, %p3716_p3 }
  0x2b   : > { %558 = vmatpush.msra.mxu0 %v551_v3  ;;  %v805_v26 = vld [vmem:[%s5315_s13 + $0x40] sm:$0xff]  ;;  %p3714_p2 = pneg %p3713_p1 }
  0x2c   : > { %v589_v28 = vadd.f32 %v3604_v24, %v588_v27  ;;  %v806_v27 = vld [vmem:[%s5315_s13 + $0x48] sm:$0xff] }
  0x2d   : > { %559 = vmatpush.msra.mxu0 %v550_v4  ;;  %p3719_p8 = pnand %p3718_p7, %p3714_p2 }
  0x2e   : > { %v591_v29 = vsel %vm590_vm1, %v3604_v24, %v589_v28  ;;  %v803_v24 = vld [vmem:[%s5315_s13 + $0x30] sm:$0xff] }
  0x2f   : > { %560 = vmatpush.msra.mxu0 %v549_v5  ;;  %v807_v28 = vld [vmem:[%s5315_s13 + $0x50] sm:$0xff] }
  0x31   : > { %561 = vmatpush.msra.mxu0 %v548_v6 }
  0x33   : > { %562 = vmatpush.msra.mxu0 %v547_v7  ;;  %v790_v7 = vld [vmem:[%s5314_s12 + $0x10] sm:$0xff] }
  0x35   : > { %563 = vmatpush.msra.mxu0 %v546_v8  ;;  %v789_v8 = vld [vmem:[%s5314_s12 + $0x8] sm:$0xff] }
  0x37   : > { %564 = vmatpush.msra.mxu0 %v545_v9 }
  0x39   : > { %565 = vmatpush.msra.mxu0 %v544_v10 }
  0x3b   : > { %566 = vmatpush.msra.mxu0 %v543_v11  ;;  %v788_v11 = vld [vmem:[%s5314_s12] sm:$0xff] }
  0x3d   : > { %567 = vmatpush.msra.mxu0 %v542_v12 }
  0x3f   : > { %568 = vmatpush.msra.mxu0 %v541_v13 }
  0x41   : > { %569 = vmatpush.msra.mxu0 %v540_v14 }
  0x43   : > { %570 = vmatpush.msra.mxu0 %v539_v15 }
  0x44   : > { %571 = vmatmul.f32.vlgmr.msra.gmra.mxu0 %v3972_v16 }
  0x45   : > { %739 = vmatpush.msrb.mxu0 %v675_v43 }
  0x47   : > { %974 = vmatpush.msra.mxu0 %v3250_v45 }
  0x4c   : > { %574 = vmatmul.f32.gmra.mxu0 %v3976_v17 }
  0xc1   : > { %v572_v18 = vpop.f32.mrf.mxu0 }
  0xc2   : > { %v579_v22 = vsel %vm578_vm0, %v572_v18, 0.0 }
  0xc9   : > { %v575_v19 = vpop.f32.mrf.mxu0 }
  0xca   : > { %v582_v20 = vsel %vm578_vm0, %v575_v19, 0.0  ;;  %v3573_v21 = vpack.i.bf16 %v572_v18, %v575_v19 }
  0xcb   : > { %583 = vadd.xlane.f32.xlu0 %v582_v20  ;;  %v799_v20 = vld [vmem:[%s5315_s13 + $0x10] sm:$0xff] }
  0xcc   : > { %3574 = vrot.lane.b32.xlu1 %v3573_v21, %s3766_s21  ;;  %v800_v21 = vld [vmem:[%s5315_s13 + $0x18] sm:$0xff]  ;;  %s3238_s21 = sshll.u32 %s529_s30, 4 }
  0xcd   : > { %s531_s18 = scalar_lea.vmem [#allocation5], %s3238_s21 }
  0xce   : > { %s3155_s7 = sshll.u32 %s531_s18, 4  ;;  %s3156_s7 = int_to_ptr.vmem [resolvable:$true] %s3155_s7 }
  0xd3   : > { %580 = vadd.xlane.f32.xlu0 %v579_v22  ;;  %v801_v22 = vld [vmem:[%s5315_s13 + $0x20] sm:$0xff] }
 0x13e   : > { %v584_v30 = vpop.xlane.xlu0 %583  ;;  %v4027_v47 = vpop.permute.xlu1 %3574 }
 0x13f   : > { %v593_v31 = vmul.f32 %v591_v29, %v584_v30  ;;  %v3576_v48 = vunpack.i.l.bf16 %v4027_v47  ;;  %v3577_v50 = vunpack.i.h.bf16 %v4027_v47  ;;  %v809_v30 = vld [vmem:[%s5315_s13 + $0x60] sm:$0xff] }
 0x141   : > { %643 = vmatpush.msra.mxu1 %v593_v31  ;;  %v810_v31 = vld [vmem:[%s5315_s13 + $0x68] sm:$0xff] }
 0x146   : > { %v581_v32 = vpop.xlane.xlu0 %580 }
 0x147   : > { %v592_v33 = vmul.f32 %v591_v29, %v581_v32  ;;  %v808_v29 = vld [vmem:[%s5315_s13 + $0x58] sm:$0xff]  ;;  %v811_v32 = vld [vmem:[%s5315_s13 + $0x70] sm:$0xff] }
 0x149   : > { %644 = vmatpush.msra.mxu1 %v592_v33  ;;  %v812_v33 = vld [vmem:[%s5315_s13 + $0x78] sm:$0xff] }
 0x14b   : > { %645 = vmatpush.msra.mxu1 %v575_v19  ;;  %v798_v19 = vld [vmem:[%s5315_s13 + $0x8] sm:$0xff] }
 0x14d   : > { %646 = vmatpush.msra.mxu1 %v572_v18  ;;  %v797_v18 = vld [vmem:[%s5315_s13] sm:$0xff] }
 0x14e   : > { %3241 = vmatmul.msk.f32.vlgmr.msra.gmra.mxu1 %vm603_vm2, %v594_v34  ;;  %v813_v34 = vld [vmem:[%s5315_s13 + $0x80] sm:$0xff] }
 0x14f   : > { %3512 = vmatpush.msrb.mxu1 %v675_v43 }
 0x151   : > { %1080 = vmatpush.msra.mxu1 %v3251_v44 }
 0x156   : > { %3242 = vmatmul.msk.f32.gmra.mxu1 %vm603_vm2, %v595_v35 }
 0x15e   : > { %3243 = vmatmul.msk.f32.gmra.mxu1 %vm603_vm2, %v596_v36  ;;  %v814_v36 = vld [vmem:[%s5315_s13 + $0x88] sm:$0xff] }
 0x166   : > { %3244 = vmatmul.msk.f32.gmra.mxu1 %vm603_vm2, %v597_v37 }
 0x16e   : > { %3245 = vmatmul.msk.f32.gmra.mxu1 %vm603_vm2, %v598_v38 }
 0x176   : > { %3246 = vmatmul.msk.f32.gmra.mxu1 %vm603_vm2, %v599_v39 }
 0x17e   : > { %3247 = vmatmul.msk.f32.gmra.mxu1 %vm603_vm2, %v600_v40 }
 0x186   : > { %3248 = vmatmul.msk.f32.gmra.mxu1 %vm603_vm2, %v601_v41 }
 0x18e   : > { %3249 = vmatmul.msk.f32.gmra.mxu1 %vm603_vm2, %v602_v42 }
 0x1cb   : > { %v648_v46 = vpop.f32.mrf.mxu1 }
 0x1cc   : > { %3255 = vmatmul.msk.f32.vlgmr.msrb.gmra.mxu0 %vm578_vm0, %v648_v46 }
 0x1d3   : > { %v651_v49 = vpop.f32.mrf.mxu1 }
 0x1d4   : > { %3256 = vmatmul.msk.f32.vlgmr.msrb.gmra.mxu1 %vm578_vm0, %v651_v49 }
 0x1d5   : > { %1264 = vmatpush.msrb.mxu1 %v3576_v48 }
 0x1d7   : > { %1265 = vmatpush.msrb.mxu1 %v3577_v50 }
 0x1db   : > { %v654_v51 = vpop.f32.mrf.mxu1 }
 0x1dc   : > { %3257 = vmatmul.msk.f32.vlgmr.msra.gmra.mxu3 %vm578_vm0, %v654_v51 }
 0x1e3   : > { %v657_v52 = vpop.f32.mrf.mxu1 }
 0x1e4   : > { %3252 = vmatmul.msk.f32.vlgmr.msra.gmra.mxu2 %vm578_vm0, %v657_v52 }
 0x1e5   : > { %1027 = vmatpush.msra.mxu2 %v675_v43 }
 0x1eb   : > { %v660_v53 = vpop.f32.mrf.mxu1 }
 0x1ec   : > { %3253 = vmatmul.msk.f32.gmra.mxu2 %vm578_vm0, %v660_v53 }
 0x1f3   : > { %v663_v54 = vpop.f32.mrf.mxu1 }
 0x1f4   : > { %3254 = vmatmul.msk.f32.gmra.mxu2 %vm578_vm0, %v663_v54 }
 0x1fb   : > { %v666_v55 = vpop.f32.mrf.mxu1 }
 0x1fc   : > { %3258 = vmatmul.msk.f32.vlgmr.msrb.gmra.mxu2 %vm578_vm0, %v666_v55  ;;  %v3311_v55 = vld [vmem:[%s5312_s10 + $0x8] sm:$0x3f] }
 0x1fd   : > { %1205 = vmatpush.msrb.mxu2 %v3976_v17 }
 0x1ff   : > { %1206 = vmatpush.msrb.mxu2 %v3972_v16 }
 0x203   : > { %v669_v56 = vpop.f32.mrf.mxu1 }
 0x204   : > { %3259 = vmatmul.msk.f32.gmra.mxu2 %vm578_vm0, %v669_v56  ;;  %v5326_v56 = vmov 0  }
 0x205   : > { %3578 = vset.pattern.permute.xlu1 %v5326_v56  ;;  %3579 = vset.pattern.permute.xlu2 %v5326_v56 }
 0x206   : > { %1276 = vperm.xlu1 %3578, %v3311_v55   ;;  %v4218_v55 = vld [vmem:[%s5308_s6 + $0x68] sm:$0xff] }
 0x20b   : > { %v672_v57 = vpop.f32.mrf.mxu1 }
 0x20c   : > { %3260 = vmatmul.msk.f32.gmra.mxu2 %vm578_vm0, %v672_v57  ;;  %v1233_v57 = vld [vmem:[%s5312_s10] sm:$0x3f] }
 0x20d   : > { %1236 = vperm.xlu2 %3579, %v1233_v57   ;;  %v1474_v57 = vld [vmem:[#allocation2 + $0x60] sm:$0xff] }
 0x249   : > { %v741_v1 = vpop.f32.mrf.mxu0 }
 0x251   : > { %v744_v63 = vpop.f32.mrf.mxu1 }
 0x25f   : > { %v747_v2 = vpop.f32.mrf.mxu3 }
 0x267   : > { %v706_v58 = vpop.f32.mrf.mxu2 }
 0x268   : > { %v742_v3 = vadd.f32 %v741_v1, %v706_v58  ;;  %v3310_v58 = vld [vmem:[%s5311_s9 + $0x8] sm:$0x3f]  ;;  %v1169_v1 = vld [vmem:[%s5310_s8 + $0x18] sm:$0xff] }
 0x26f   : > { %v709_v59 = vpop.f32.mrf.mxu2 }
 0x270   : > { %v745_v0 = vadd.f32 %v744_v63, %v709_v59  ;;  %v1166_v59 = vld [vmem:[%s5310_s8] sm:$0xff] }
 0x277   : > { %v712_v60 = vpop.f32.mrf.mxu2 }
 0x278   : > { %v748_v4 = vadd.f32 %v747_v2, %v712_v60  ;;  %v1112_v60 = vld [vmem:[%s5304_s2] sm:$0xff] }
 0x279   : > { %1146 = vmatpush.msrb.mxu0 %v1112_v60  ;;  %v4237_v60 = vld [vmem:[%s5308_s6 + $0x50] sm:$0xff] }
 0x27f   : > { %v776_v61 = vpop.f32.mrf.mxu2 }
 0x280   : > { %v785_v9 = vadd.f32 %v776_v61, %v742_v3  ;;  %v1167_v61 = vld [vmem:[%s5310_s8 + $0x8] sm:$0xff]  ;;  %v1170_v3 = vld [vmem:[%s5310_s8 + $0x20] sm:$0xff] }
 0x282   : > { %v791_v15 = vadd.f32 %v788_v11, %v785_v9  ;;  %v1171_v9 = vld [vmem:[%s5310_s8 + $0x28] sm:$0xff] }
 0x284   : > { %v794_v17 = vmax.f32 %v791_v15, 0.0 }
 0x287   : > { %v779_v62 = vpop.f32.mrf.mxu2 }
 0x288   : > { %v786_v5 = vadd.f32 %v779_v62, %v745_v0  ;;  %v1168_v62 = vld [vmem:[%s5310_s8 + $0x10] sm:$0xff] }
 0x28a   : > { %v792_v13 = vadd.f32 %v789_v8, %v786_v5 }
 0x28c   : > { %v795_v16 = vmax.f32 %v792_v13, 0.0 }
 0x28f   : > { %v782_v6 = vpop.f32.mrf.mxu2 }
 0x290   : > { %v787_v10 = vadd.f32 %v782_v6, %v748_v4 }
 0x292   : > { %v793_v12 = vadd.f32 %v790_v7, %v787_v10 }
 0x294   : > { %v796_v14 = vmax.f32 %v793_v12, 0.0 }
 0x296   : > { %883 = vmatpush.msrb.mxu3 %v796_v14 }
 0x298   : > { %884 = vmatpush.msrb.mxu3 %v795_v16 }
 0x29a   : > { %885 = vmatpush.msrb.mxu3 %v794_v17 }
 0x29b   : > { %3261 = vmatmul.msk.f32.vlgmr.msrb.gmra.mxu3 %vm815_vm3, %v797_v18 }
 0x2a3   : > { %3262 = vmatmul.msk.f32.gmra.mxu3 %vm815_vm3, %v798_v19  ;;  %v1309_v19 = vlaneseq }
 0x2ab   : > { %3263 = vmatmul.msk.f32.gmra.mxu3 %vm815_vm3, %v799_v20 }
 0x2b3   : > { %3264 = vmatmul.msk.f32.gmra.mxu3 %vm815_vm3, %v800_v21 }
 0x2bb   : > { %3265 = vmatmul.msk.f32.gmra.mxu3 %vm815_vm3, %v801_v22  ;;  %v1310_v22 = vshrl.u32 %v1309_v19, 7  ;;  %v1463_v19 = vld [vmem:[#allocation2 + $0x8] sm:$0xff] }
 0x2bd   : > { %3581 = vset.pattern.permute.xlu0 %v1310_v22 }
 0x2c3   : > { %3266 = vmatmul.msk.f32.gmra.mxu3 %vm815_vm3, %v802_v23 }
 0x2cb   : > { %3267 = vmatmul.msk.f32.gmra.mxu3 %vm815_vm3, %v803_v24  ;;  %v1317_v24 = vadd.s32 8, %v1310_v22 }
 0x2cd   : > { %3580 = vset.pattern.permute.xlu2 %v1317_v24  ;;  %3582 = vset.pattern.permute.xlu1 %v1317_v24 }
 0x2d3   : > { %3268 = vmatmul.msk.f32.gmra.mxu3 %vm815_vm3, %v804_v25 }
 0x2db   : > { %3269 = vmatmul.msk.f32.gmra.mxu3 %vm815_vm3, %v805_v26 }
 0x2e3   : > { %3270 = vmatmul.msk.f32.gmra.mxu3 %vm815_vm3, %v806_v27 }
 0x2eb   : > { %3271 = vmatmul.msk.f32.gmra.mxu3 %vm815_vm3, %v807_v28 }
 0x2f3   : > { %3272 = vmatmul.msk.f32.gmra.mxu3 %vm815_vm3, %v808_v29 }
 0x2fb   : > { %3273 = vmatmul.msk.f32.gmra.mxu3 %vm815_vm3, %v809_v30 }
 0x303   : > { %3274 = vmatmul.msk.f32.gmra.mxu3 %vm815_vm3, %v810_v31 }
 0x30b   : > { %3275 = vmatmul.msk.f32.gmra.mxu3 %vm815_vm3, %v811_v32 }
 0x313   : > { %3276 = vmatmul.msk.f32.gmra.mxu3 %vm815_vm3, %v812_v33 }
 0x31b   : > { %3277 = vmatmul.msk.f32.gmra.mxu3 %vm815_vm3, %v813_v34 }
 0x31e   : > { %v887_v35 = vpop.f32.mrf.mxu3 }
 0x31f   : > { %3285 = vmatmul.msk.f32.vlgmr.msra.gmra.mxu2 %vm578_vm0, %v887_v35 }
 0x323   : > { %3278 = vmatmul.msk.f32.gmra.mxu3 %vm815_vm3, %v814_v36 }
 0x326   : > { %v890_v37 = vpop.f32.mrf.mxu3 }
 0x327   : > { %3286 = vmatmul.msk.f32.gmra.mxu2 %vm578_vm0, %v890_v37 }
 0x32e   : > { %v893_v38 = vpop.f32.mrf.mxu3 }
 0x32f   : > { %3287 = vmatmul.msk.f32.gmra.mxu2 %vm578_vm0, %v893_v38 }
 0x336   : > { %v896_v39 = vpop.f32.mrf.mxu3 }
 0x337   : > { %3288 = vmatmul.msk.f32.gmra.mxu2 %vm578_vm0, %v896_v39 }
 0x33e   : > { %v899_v40 = vpop.f32.mrf.mxu3 }
 0x33f   : > { %3289 = vmatmul.msk.f32.gmra.mxu2 %vm578_vm0, %v899_v40 }
 0x346   : > { %v902_v41 = vpop.f32.mrf.mxu3 }
 0x347   : > { %3290 = vmatmul.msk.f32.gmra.mxu2 %vm578_vm0, %v902_v41 }
 0x34e   : > { %v905_v42 = vpop.f32.mrf.mxu3 }
 0x34f   : > { %3279 = vmatmul.msk.f32.vlgmr.msra.gmra.mxu0 %vm578_vm0, %v905_v42  ;;  %3303 = vmatmul.msk.f32.vlgmr.msrb.gmra.mxu2 %vm1172_vm4, %v1166_v59  ;;  %v1277_v42 = vpop.permute.xlu1 %1276  ;;  %v1473_v59 = vld [vmem:[#allocation2 + $0x58] sm:$0xff] }
 0x356   : > { %v908_v43 = vpop.f32.mrf.mxu3 }
 0x357   : > { %3280 = vmatmul.msk.f32.gmra.mxu0 %vm578_vm0, %v908_v43  ;;  %3304 = vmatmul.msk.f32.gmra.mxu2 %vm1172_vm4, %v1167_v61  ;;  %v1472_v61 = vld [vmem:[#allocation2 + $0x50] sm:$0xff] }
 0x35e   : > { %v911_v44 = vpop.f32.mrf.mxu3 }
 0x35f   : > { %3281 = vmatmul.msk.f32.gmra.mxu0 %vm578_vm0, %v911_v44  ;;  %3305 = vmatmul.msk.f32.gmra.mxu2 %vm1172_vm4, %v1168_v62  ;;  %v5324_v62 = vmov 2  }
 0x366   : > { %v914_v45 = vpop.f32.mrf.mxu3 }
 0x367   : > { %3282 = vmatmul.msk.f32.gmra.mxu0 %vm578_vm0, %v914_v45  ;;  %3306 = vmatmul.msk.f32.gmra.mxu2 %vm1172_vm4, %v1169_v1  ;;  %v4250_v1 = vld [vmem:[%s5308_s6 + $0x40] sm:$0xff] }
 0x36e   : > { %v917_v46 = vpop.f32.mrf.mxu3 }
 0x36f   : > { %3283 = vmatmul.msk.f32.gmra.mxu0 %vm578_vm0, %v917_v46  ;;  %3307 = vmatmul.msk.f32.gmra.mxu2 %vm1172_vm4, %v1170_v3  ;;  %v1470_v3 = vld [vmem:[#allocation2 + $0x40] sm:$0xff] }
 0x376   : > { %v920_v49 = vpop.f32.mrf.mxu3 }
 0x377   : > { %3284 = vmatmul.msk.f32.gmra.mxu0 %vm578_vm0, %v920_v49  ;;  %3308 = vmatmul.msk.f32.gmra.mxu2 %vm1172_vm4, %v1171_v9  ;;  %v4275_v9 = vld [vmem:[%s5308_s6 + $0x28] sm:$0xff] }
 0x37e   : > { %v923_v51 = vpop.f32.mrf.mxu3 }
 0x37f   : > { %3291 = vmatmul.msk.f32.vlgmr.msra.gmra.mxu1 %vm578_vm0, %v923_v51  ;;  %v4207_v51 = vld [vmem:[%s5308_s6 + $0x78] sm:$0xff] }
 0x380   : > { %1296 = vmatpush.msra.mxu1 %v3576_v48  ;;  %1478 = vmatpush.msra.mxu0 %v4207_v51 }
 0x382   : > { %1297 = vmatpush.msra.mxu1 %v3577_v50  ;;  %v1232_v50 = vld [vmem:[%s5311_s9] sm:$0x3f] }
 0x386   : > { %v926_v52 = vpop.f32.mrf.mxu3 }
 0x387   : > { %3292 = vmatmul.msk.f32.gmra.mxu1 %vm578_vm0, %v926_v52  ;;  %v1477_v52 = vld [vmem:[#allocation2 + $0x78] sm:$0xff] }
 0x388   : > { %1513 = vmatpush.msra.mxu2 %v1477_v52 }
 0x38e   : > { %v929_v53 = vpop.f32.mrf.mxu3 }
 0x38f   : > { %3293 = vmatmul.msk.f32.gmra.mxu1 %vm578_vm0, %v929_v53  ;;  %v4212_v53 = vld [vmem:[%s5308_s6 + $0x70] sm:$0xff] }
 0x390   : > { %1479 = vmatpush.msra.mxu0 %v4212_v53 }
 0x392   : > { %1480 = vmatpush.msra.mxu0 %v4218_v55 }
 0x396   : > { %v932_v54 = vpop.f32.mrf.mxu3 }
 0x397   : > { %3294 = vmatmul.msk.f32.gmra.mxu1 %vm578_vm0, %v932_v54  ;;  %v1476_v54 = vld [vmem:[#allocation2 + $0x70] sm:$0xff] }
 0x398   : > { %1514 = vmatpush.msra.mxu2 %v1476_v54 }
 0x39e   : > { %v935_v47 = vpop.f32.mrf.mxu3 }
 0x39f   : > { %3295 = vmatmul.msk.f32.gmra.mxu1 %vm578_vm0, %v935_v47  ;;  %v1475_v47 = vld [vmem:[#allocation2 + $0x68] sm:$0xff] }
 0x3a0   : > { %1515 = vmatpush.msra.mxu2 %v1475_v47  ;;  %v2587_v47 = vld [vmem:[#allocation2 + $0x148] sm:$0xff] }
 0x3a2   : > { %v1029_v0 = vpop.f32.mrf.mxu2  ;;  %1516 = vmatpush.msra.mxu2 %v1474_v57  ;;  %v4352_v57 = vld [vmem:[%s5305_s3] sm:$0xff] }
 0x3a3   : > { %5375 = vst [vmem:[#allocation16_spill] sm:$0xff] %v4352_v57 }
 0x3a4   : > { %1517 = vmatpush.msra.mxu2 %v1473_v59 }
 0x3a6   : > { %v938_v48 = vpop.f32.mrf.mxu3  ;;  %1518 = vmatpush.msra.mxu2 %v1472_v61 }
 0x3a7   : > { %3296 = vmatmul.msk.f32.gmra.mxu1 %vm578_vm0, %v938_v48  ;;  %v4224_v48 = vld [vmem:[%s5308_s6 + $0x60] sm:$0xff] }
 0x3a8   : > { %1481 = vmatpush.msra.mxu0 %v4224_v48 }
 0x3aa   : > { %v1032_v4 = vpop.f32.mrf.mxu2 }
 0x3af   : > { %3309 = vmatmul.msk.f32.vlgmr.msrb.gmra.mxu1 %vm1172_vm4, %v1232_v50 }
 0x3b2   : > { %v1035_v12 = vpop.f32.mrf.mxu2 }
 0x3b7   : > { %3312 = vmatmul.msk.f32.vlgmr.msra.gmra.mxu1 %vm1172_vm4, %v3310_v58  ;;  %v4232_v58 = vld [vmem:[%s5308_s6 + $0x58] sm:$0xff] }
 0x3b8   : > { %1482 = vmatpush.msra.mxu0 %v4232_v58 }
 0x3ba   : > { %v1038_v21 = vpop.f32.mrf.mxu2  ;;  %1483 = vmatpush.msra.mxu0 %v4237_v60 }
 0x3c2   : > { %v1041_v30 = vpop.f32.mrf.mxu2 }
 0x3ca   : > { %v1044_v36 = vpop.f32.mrf.mxu2 }
 0x3cc   : > { %v976_v63 = vpop.f32.mrf.mxu0 }
 0x3cd   : > { %v1030_v5 = vadd.f32 %v1029_v0, %v976_v63  ;;  %v4244_v63 = vld [vmem:[%s5308_s6 + $0x48] sm:$0xff] }
 0x3ce   : > { %v1471_v0 = vld [vmem:[#allocation2 + $0x48] sm:$0xff]  ;;  %1484 = vmatpush.msra.mxu0 %v4244_v63 }
 0x3cf   : > { %1519 = vmatpush.msra.mxu2 %v1471_v0  ;;  %v2058_v0 = vld [vmem:[#allocation2 + $0xf8] sm:$0xff] }
 0x3d0   : > { %1485 = vmatpush.msra.mxu0 %v4250_v1 }
 0x3d1   : > { %1520 = vmatpush.msra.mxu2 %v1470_v3  ;;  %v2057_v3 = vld [vmem:[#allocation2 + $0xf0] sm:$0xff] }
 0x3d2   : > { %v1208_v24 = vpop.f32.mrf.mxu2 }
 0x3d4   : > { %v979_v2 = vpop.f32.mrf.mxu0 }
 0x3d5   : > { %v1033_v11 = vadd.f32 %v1032_v4, %v979_v2  ;;  %v4257_v4 = vld [vmem:[%s5308_s6 + $0x38] sm:$0xff] }
 0x3d6   : > { %1486 = vmatpush.msra.mxu0 %v4257_v4 }
 0x3dc   : > { %v982_v10 = vpop.f32.mrf.mxu0 }
 0x3dd   : > { %v1036_v16 = vadd.f32 %v1035_v12, %v982_v10  ;;  %v1467_v10 = vld [vmem:[#allocation2 + $0x28] sm:$0xff] }
 0x3e4   : > { %v985_v17 = vpop.f32.mrf.mxu0 }
 0x3e5   : > { %v1039_v25 = vadd.f32 %v1038_v21, %v985_v17  ;;  %v1464_v17 = vld [vmem:[#allocation2 + $0x10] sm:$0xff]  ;;  %v1462_v21 = vld [vmem:[#allocation2] sm:$0xff] }
 0x3ec   : > { %v988_v28 = vpop.f32.mrf.mxu0 }
 0x3ed   : > { %v1042_v31 = vadd.f32 %v1041_v30, %v988_v28  ;;  %v1237_v30 = vpop.permute.xlu2 %1236 }
 0x3f4   : > { %v991_v35 = vpop.f32.mrf.mxu0 }
 0x3f5   : > { %v1045_v37 = vadd.f32 %v1044_v36, %v991_v35 }
 0x3fc   : > { %v1082_v6 = vpop.f32.mrf.mxu1 }
 0x3fd   : > { %v1100_v7 = vadd.f32 %v1082_v6, %v1030_v5  ;;  %v4262_v5 = vld [vmem:[%s5316_s14 + $0x8] sm:$0xff]  ;;  %v1469_v6 = vld [vmem:[#allocation2 + $0x38] sm:$0xff] }
 0x3fe   : > { %1521 = vmatpush.msra.mxu2 %v1469_v6  ;;  %v2056_v6 = vld [vmem:[#allocation2 + $0xe8] sm:$0xff] }
 0x3ff   : > { %v1106_v8 = vadd.f32 1.0, %v1100_v7  ;;  %v4268_v7 = vld [vmem:[%s5308_s6 + $0x30] sm:$0xff] }
 0x400   : > { %1487 = vmatpush.msra.mxu0 %v4268_v7 }
 0x401   : > { %3297 = vmatmul.msk.f32.vlgmr.msrb.gmra.mxu0 %vm578_vm0, %v1106_v8  ;;  %v1468_v8 = vld [vmem:[#allocation2 + $0x30] sm:$0xff] }
 0x402   : > { %1522 = vmatpush.msra.mxu2 %v1468_v8  ;;  %1488 = vmatpush.msra.mxu0 %v4275_v9 }
 0x404   : > { %v1085_v13 = vpop.f32.mrf.mxu1  ;;  %1523 = vmatpush.msra.mxu2 %v1467_v10 }
 0x405   : > { %v1101_v14 = vadd.f32 %v1085_v13, %v1033_v11  ;;  %v4281_v11 = vld [vmem:[%s5308_s6 + $0x20] sm:$0xff] }
 0x406   : > { %v1466_v13 = vld [vmem:[#allocation2 + $0x20] sm:$0xff]  ;;  %1489 = vmatpush.msra.mxu0 %v4281_v11 }
 0x407   : > { %v1107_v15 = vadd.f32 1.0, %v1101_v14  ;;  %v4288_v14 = vld [vmem:[%s5308_s6 + $0x18] sm:$0xff]  ;;  %1524 = vmatpush.msra.mxu2 %v1466_v13  ;;  %v4366_v13 = vld [vmem:[%s5305_s3 + $0x8] sm:$0xff] }
 0x408   : > { %1490 = vmatpush.msra.mxu0 %v4288_v14  ;;  %5378 = vst [vmem:[#allocation19_spill] sm:$0xff] %v4366_v13 }
 0x409   : > { %3298 = vmatmul.msk.f32.gmra.mxu0 %vm578_vm0, %v1107_v15  ;;  %v1465_v15 = vld [vmem:[#allocation2 + $0x18] sm:$0xff] }
 0x40a   : > { %1525 = vmatpush.msra.mxu2 %v1465_v15  ;;  %v2055_v15 = vld [vmem:[#allocation2 + $0xe0] sm:$0xff] }
 0x40c   : > { %v1088_v18 = vpop.f32.mrf.mxu1  ;;  %1526 = vmatpush.msra.mxu2 %v1464_v17 }
 0x40d   : > { %v1102_v20 = vadd.f32 %v1088_v18, %v1036_v16  ;;  %v4294_v16 = vld [vmem:[%s5308_s6 + $0x10] sm:$0xff]  ;;  %v4301_v18 = vld [vmem:[%s5308_s6 + $0x8] sm:$0xff] }
 0x40e   : > { %1491 = vmatpush.msra.mxu0 %v4294_v16  ;;  %1527 = vmatpush.msra.mxu2 %v1463_v19  ;;  %v2054_v19 = vld [vmem:[#allocation2 + $0xd8] sm:$0xff] }
 0x40f   : > { %v1108_v23 = vadd.f32 1.0, %v1102_v20  ;;  %v4307_v20 = vld [vmem:[%s5308_s6] sm:$0xff] }
 0x410   : > { %1492 = vmatpush.msra.mxu0 %v4301_v18  ;;  %1528 = vmatpush.msra.mxu2 %v1462_v21  ;;  %v2053_v21 = vld [vmem:[#allocation2 + $0xd0] sm:$0xff] }
 0x411   : > { %3299 = vmatmul.msk.f32.gmra.mxu0 %vm578_vm0, %v1108_v23  ;;  %v4321_v23 = vld [vmem:[%s5316_s14] sm:$0xff] }
 0x412   : > { %1493 = vmatpush.msra.mxu0 %v4307_v20 }
 0x414   : > { %v1091_v26 = vpop.f32.mrf.mxu1 }
 0x415   : > { %v1103_v27 = vadd.f32 %v1091_v26, %v1039_v25 }
 0x417   : > { %v1109_v29 = vadd.f32 1.0, %v1103_v27  ;;  %v1211_v27 = vpop.f32.mrf.mxu2 }
 0x419   : > { %3300 = vmatmul.msk.f32.gmra.mxu0 %vm578_vm0, %v1109_v29 }
 0x41c   : > { %v1094_v32 = vpop.f32.mrf.mxu1 }
 0x41d   : > { %v1104_v33 = vadd.f32 %v1094_v32, %v1042_v31 }
 0x41f   : > { %v1110_v34 = vadd.f32 1.0, %v1104_v33 }
 0x421   : > { %3301 = vmatmul.msk.f32.gmra.mxu0 %vm578_vm0, %v1110_v34 }
 0x424   : > { %v1097_v38 = vpop.f32.mrf.mxu1 }
 0x425   : > { %v1105_v39 = vadd.f32 %v1097_v38, %v1045_v37 }
 0x427   : > { %v1111_v40 = vadd.f32 1.0, %v1105_v39 }
 0x429   : > { %3302 = vmatmul.msk.f32.gmra.mxu0 %vm578_vm0, %v1111_v40 }
 0x42c   : > { %v4197_v41 = vpop.f32.mrf.mxu1 }
 0x42d   : > { %v4334_v31 = vadd.f32 %v4197_v41, %v1237_v30  ;;  %v2051_v30 = vld [vmem:[#allocation2 + $0xc0] sm:$0xff] }
 0x42f   : > { %v1386_v32 = vperm.slane %v4334_v31, 0  ;;  %v1303_v37 = vrot.slane %v4334_v31, 1  ;;  %v1304_v38 = vrot.slane %v4334_v31, 2 }
 0x431   : > { %v1387_v39 = vperm.slane %v1303_v37, 0  ;;  %v4391_v37 = vld [vmem:[%s5305_s3 + $0x18] sm:$0xff] }
 0x432   : > { %5381 = vst [vmem:[#allocation22_spill] sm:$0xff] %v4391_v37 }
 0x434   : > { %v1299_v43 = vpop.f32.mrf.mxu1 }
 0x435   : > { %v4199_v44 = vadd.f32 %v1299_v43, %v1277_v42  ;;  %v4339_v43 = vperm.slane %v1304_v38, 0  ;;  %v2047_v38 = vld [vmem:[#allocation2 + $0xa0] sm:$0xff] }
 0x437   : > { %v1321_v45 = vperm.slane %v4199_v44, 1  ;;  %v1308_v46 = vperm.slane %v4199_v44, 0  ;;  %v1334_v49 = vperm.slane %v4199_v44, 2  ;;  %v1347_v50 = vperm.slane %v4199_v44, 3  ;;  %5372 = vst [vmem:[#allocation13_spill] sm:$0xff] %v4339_v43 }
 0x438   : > { %v1360_v2 = vperm.slane %v4199_v44, 4  ;;  %v1373_v12 = vperm.slane %v4199_v44, 5 }
 0x439   : > { %1332 = vperm.xlu1 %3582, %v1321_v45   ;;  %1313 = vperm.xlu0 %3581, %v1308_v46  }
 0x43a   : > { %1319 = vperm.xlu2 %3580, %v1308_v46  }
 0x441   : > { %1345 = vperm.xlu1 %3582, %v1334_v49   ;;  %3588 = vset.pattern.permute.xlu0 %v5324_v62 }
 0x442   : > { %3583 = vset.pattern.permute.xlu2 %v1310_v22  ;;  %2035 = vperm.xlu0 %3588, %v4262_v5   ;;  %v4313_v22 = vld [vmem:[%s5316_s14 + $0x10] sm:$0xff] }
 0x449   : > { %1358 = vperm.xlu1 %3582, %v1347_v50  }
 0x44a   : > { %1326 = vperm.xlu2 %3583, %v1321_v45   ;;  %2564 = vperm.xlu0 %3588, %v4313_v22  }
 0x451   : > { %1371 = vperm.xlu1 %3582, %v1360_v2  }
 0x452   : > { %1339 = vperm.xlu2 %3583, %v1334_v49   ;;  %3593 = vset.pattern.permute.xlu0 %v5326_v56 }
 0x453   : > { %1503 = vperm.xlu0 %3593, %v4321_v23  }
 0x459   : > { %1384 = vperm.xlu1 %3582, %v1373_v12  }
 0x45a   : > { %1352 = vperm.xlu2 %3583, %v1347_v50  }
 0x461   : > { %3584 = vset.pattern.permute.xlu1 %v5326_v56 }
 0x462   : > { %1365 = vperm.xlu2 %3583, %v1360_v2   ;;  %1508 = vperm.xlu1 %3584, %v4262_v5   ;;  %v1306_v2 = vrot.slane %v4334_v31, 4 }
 0x464   : > { %v4359_v10 = vperm.slane %v1306_v2, 0  ;;  %v4427_v2 = vld [vmem:[%s5305_s3 + $0x38] sm:$0xff] }
 0x465   : > { %5385 = vst [vmem:[#allocation26_spill] sm:$0xff] %v4427_v2 }
 0x466   : > { %5376 = vst [vmem:[#allocation17_spill] sm:$0xff] %v4359_v10 }
 0x46a   : > { %1378 = vperm.xlu2 %3583, %v1373_v12  }
 0x47e   : > { %v1148_v25 = vpop.f32.mrf.mxu0 }
 0x47f   : > { %v4325_v26 = vmul.f32 %v1208_v24, %v1148_v25  ;;  %v2052_v24 = vld [vmem:[#allocation2 + $0xc8] sm:$0xff] }
 0x481   : > { %1494 = vmatmul.f32.vlgmr.msra.gmra.mxu0 %v4325_v26  ;;  %1529 = vmatmul.f32.vlgmr.msra.gmra.mxu2 %v4325_v26 }
 0x486   : > { %v1151_v28 = vpop.f32.mrf.mxu0 }
 0x487   : > { %v4329_v29 = vmul.f32 %v1211_v27, %v1151_v28  ;;  %v4381_v28 = vld [vmem:[%s5305_s3 + $0x10] sm:$0xff] }
 0x488   : > { %5380 = vst [vmem:[#allocation21_spill] sm:$0xff] %v4381_v28 }
 0x489   : > { %1497 = vmatmul.f32.gmra.mxu0 %v4329_v29  ;;  %1532 = vmatmul.f32.gmra.mxu2 %v4329_v29 }
 0x494   : > { %v1320_v33 = vpop.permute.xlu2 %1319 }
 0x495   : > { %v1399_v34 = vsub.f32 %v1386_v32, %v1320_v33  ;;  %v1305_v33 = vrot.slane %v4334_v31, 3 }
 0x497   : > { %3605 = vtanh.f32 %v1399_v34  ;;  %v2049_v34 = vld [vmem:[#allocation2 + $0xb0] sm:$0xff] }
 0x49d   : > { %v3606_v35 = vpop.eup %3605 }
 0x49e   : > { %1598 = vmatpush.msrb.mxu1 %v3606_v35  ;;  %v2048_v35 = vld [vmem:[#allocation2 + $0xa8] sm:$0xff] }
 0x4a4   : > { %v1327_v36 = vpop.permute.xlu2 %1326 }
 0x4a5   : > { %v1400_v44 = vsub.f32 %v1387_v39, %v1327_v36  ;;  %v1389_v36 = vperm.slane %v1305_v33, 0  ;;  %v4496_v33 = vld [vmem:[%s5305_s3 + $0x68] sm:$0xff] }
 0x4ab   : > { %v1333_v40 = vpop.permute.xlu1 %1332  ;;  %v1314_v42 = vpop.permute.xlu0 %1313 }
 0x4ac   : > { %v1401_v41 = vsub.f32 %v1387_v39, %v1333_v40  ;;  %v1398_v45 = vsub.f32 %v1386_v32, %v1314_v42  ;;  %v4341_v46 = vpop.permute.xlu2 %1339  ;;  %v2050_v32 = vld [vmem:[#allocation2 + $0xb8] sm:$0xff] }
 0x4ad   : > { %5373 = vst [vmem:[#allocation14_spill] sm:$0xff] %v4341_v46  ;;  %v2046_v40 = vld [vmem:[#allocation2 + $0x98] sm:$0xff] }
 0x4ae   : > { %3607 = vtanh.f32 %v1401_v41  ;;  %v2044_v41 = vld [vmem:[#allocation2 + $0x88] sm:$0xff] }
 0x4af   : > { %3609 = vtanh.f32 %v1398_v45  ;;  %v4400_v45 = vld [vmem:[%s5305_s3 + $0x20] sm:$0xff] }
 0x4b0   : > { %3611 = vtanh.f32 %v1400_v44  ;;  %v2045_v44 = vld [vmem:[#allocation2 + $0x90] sm:$0xff]  ;;  %5382 = vst [vmem:[#allocation23_spill] sm:$0xff] %v4400_v45 }
 0x4b3   : > { %v4345_v52 = vpop.permute.xlu1 %1345 }
 0x4b4   : > { %5374 = vst [vmem:[#allocation15_spill] sm:$0xff] %v4345_v52  ;;  %v3608_v54 = vpop.eup %3607  ;;  %v1353_v50 = vpop.permute.xlu2 %1352 }
 0x4b5   : > { %v3610_v59 = vpop.eup %3609  ;;  %1827 = vmatpush.msrb.mxu2 %v3608_v54  ;;  %v1404_v42 = vsub.f32 %v1389_v36, %v1353_v50  ;;  %v2043_v54 = vld [vmem:[#allocation2 + $0x80] sm:$0xff] }
 0x4b6   : > { %v3612_v61 = vpop.eup %3611  ;;  %1599 = vmatpush.msrb.mxu1 %v3610_v59 }
 0x4b7   : > { %3313 = vmatmul.msk.f32.vlgmr.msrb.gmra.mxu1 %vm1172_vm4, %v4352_v57  ;;  %1828 = vmatpush.msrb.mxu2 %v3612_v61  ;;  %v4409_v61 = vld [vmem:[%s5305_s3 + $0x28] sm:$0xff] }
 0x4b8   : > { %3345 = vmatmul.msk.f32.vlgmr.msrb.gmra.mxu2 %vm1172_vm4, %v4352_v57  ;;  %5383 = vst [vmem:[#allocation24_spill] sm:$0xff] %v4409_v61 }
 0x4b9   : > { %2094 = vmatpush.msra.mxu2 %v2058_v0  ;;  %v4418_v0 = vld [vmem:[%s5305_s3 + $0x30] sm:$0xff] }
 0x4ba   : > { %5384 = vst [vmem:[#allocation25_spill] sm:$0xff] %v4418_v0 }
 0x4bb   : > { %2095 = vmatpush.msra.mxu2 %v2057_v3  ;;  %v1359_v8 = vpop.permute.xlu1 %1358  ;;  %v4436_v3 = vld [vmem:[%s5305_s3 + $0x40] sm:$0xff] }
 0x4bc   : > { %v4361_v12 = vpop.permute.xlu2 %1365  ;;  %v1405_v39 = vsub.f32 %v1389_v36, %v1359_v8  ;;  %v4454_v8 = vld [vmem:[%s5305_s3 + $0x50] sm:$0xff] }
 0x4bd   : > { %5377 = vst [vmem:[#allocation18_spill] sm:$0xff] %v4361_v12  ;;  %2096 = vmatpush.msra.mxu2 %v2056_v6  ;;  %v4445_v6 = vld [vmem:[%s5305_s3 + $0x48] sm:$0xff]  ;;  %v5392_v12 = vmov 0  }
 0x4be   : > { %3613 = vtanh.f32 %v1405_v39  ;;  %5386 = vst [vmem:[#allocation27_spill] sm:$0xff] %v4445_v6  ;;  %v1154_v39 = vpop.f32.mrf.mxu0 }
 0x4bf   : > { %3314 = vmatmul.msk.f32.gmra.mxu1 %vm1172_vm4, %v4366_v13  ;;  %2097 = vmatpush.msra.mxu2 %v2055_v15  ;;  %3615 = vtanh.f32 %v1404_v42  ;;  %5387 = vst [vmem:[#allocation28_spill] sm:$0xff] %v4454_v8  ;;  %v1214_v15 = vpop.f32.mrf.mxu2 }
 0x4c0   : > { %3346 = vmatmul.msk.f32.gmra.mxu2 %vm1172_vm4, %v4366_v13 }
 0x4c1   : > { %2098 = vmatpush.msra.mxu2 %v2054_v19  ;;  %v4463_v19 = vld [vmem:[%s5305_s3 + $0x58] sm:$0xff] }
 0x4c3   : > { %2099 = vmatpush.msra.mxu2 %v2053_v21  ;;  %v4374_v25 = vpop.permute.xlu1 %1371  ;;  %v4472_v21 = vld [vmem:[%s5306_s4 + $0x8] sm:$0xff] }
 0x4c4   : > { %5379 = vst [vmem:[#allocation20_spill] sm:$0xff] %v4374_v25  ;;  %v3614_v50 = vpop.eup %3613  ;;  %1711 = vmatpush.msrb.mxu0 %v4472_v21 }
 0x4c5   : > { %2100 = vmatpush.msra.mxu2 %v2052_v24  ;;  %v3616_v59 = vpop.eup %3615  ;;  %v4478_v24 = vld [vmem:[%s5305_s3 + $0x60] sm:$0xff] }
 0x4c7   : > { %3315 = vmatmul.msk.f32.gmra.mxu1 %vm1172_vm4, %v4381_v28  ;;  %2101 = vmatpush.msra.mxu2 %v2051_v30  ;;  %v4483_v30 = vld [vmem:[%s5306_s4] sm:$0xff] }
 0x4c8   : > { %3347 = vmatmul.msk.f32.gmra.mxu2 %vm1172_vm4, %v4381_v28  ;;  %1712 = vmatpush.msrb.mxu0 %v4483_v30 }
 0x4c9   : > { %2102 = vmatpush.msra.mxu2 %v2050_v32  ;;  %v1217_v32 = vpop.f32.mrf.mxu2 }
 0x4ca   : > { %2059 = vmatpush.msra.mxu0 %v4207_v51 }
 0x4cb   : > { %2103 = vmatpush.msra.mxu2 %v2049_v34 }
 0x4cc   : > { %2060 = vmatpush.msra.mxu0 %v4212_v53 }
 0x4cd   : > { %2104 = vmatpush.msra.mxu2 %v2048_v35  ;;  %v4511_v35 = vld [vmem:[%s5305_s3 + $0x70] sm:$0xff] }
 0x4ce   : > { %2061 = vmatpush.msra.mxu0 %v4218_v55 }
 0x4cf   : > { %3316 = vmatmul.msk.f32.gmra.mxu1 %vm1172_vm4, %v4391_v37  ;;  %2105 = vmatpush.msra.mxu2 %v2047_v38  ;;  %v4526_v38 = vld [vmem:[%s5305_s3 + $0x78] sm:$0xff] }
 0x4d0   : > { %3348 = vmatmul.msk.f32.gmra.mxu2 %vm1172_vm4, %v4391_v37  ;;  %2062 = vmatpush.msra.mxu0 %v4224_v48 }
 0x4d1   : > { %2106 = vmatpush.msra.mxu2 %v2046_v40  ;;  %v4502_v34 = vpop.f32.mrf.mxu2 }
 0x4d2   : > { %2063 = vmatpush.msra.mxu0 %v4232_v58 }
 0x4d3   : > { %2107 = vmatpush.msra.mxu2 %v2045_v44  ;;  %v4541_v44 = vmul.f32 %v1214_v15, %v1154_v39  ;;  %v2589_v15 = vld [vmem:[#allocation2 + $0x158] sm:$0xff]  ;;  %v2588_v39 = vld [vmem:[#allocation2 + $0x150] sm:$0xff] }
 0x4d4   : > { %2064 = vmatpush.msra.mxu0 %v4237_v60 }
 0x4d5   : > { %2108 = vmatpush.msra.mxu2 %v2044_v41  ;;  %5389 = vst [vmem:[#allocation30_spill] sm:$0xff] %v4541_v44  ;;  %v2593_v41 = vld [vmem:[#allocation2 + $0x178] sm:$0xff] }
 0x4d6   : > { %2065 = vmatpush.msra.mxu0 %v4244_v63 }
 0x4d7   : > { %3317 = vmatmul.msk.f32.gmra.mxu1 %vm1172_vm4, %v4400_v45  ;;  %2109 = vmatpush.msra.mxu2 %v2043_v54  ;;  %v2592_v54 = vld [vmem:[#allocation2 + $0x170] sm:$0xff] }
 0x4d8   : > { %3349 = vmatmul.msk.f32.gmra.mxu2 %vm1172_vm4, %v4400_v45  ;;  %2066 = vmatpush.msra.mxu0 %v4250_v1 }
 0x4d9   : > { %2360 = vmatpush.msrb.mxu2 %v3614_v50  ;;  %v4520_v36 = vpop.f32.mrf.mxu2  ;;  %v1157_v50 = vpop.f32.mrf.mxu0 }
 0x4da   : > { %2067 = vmatpush.msra.mxu0 %v4257_v4  ;;  %v4548_v49 = vmul.f32 %v1217_v32, %v1157_v50  ;;  %v2584_v32 = vld [vmem:[#allocation2 + $0x130] sm:$0xff]  ;;  %v1385_v50 = vpop.permute.xlu1 %1384 }
 0x4db   : > { %2361 = vmatpush.msrb.mxu2 %v3616_v59  ;;  %v2591_v59 = vld [vmem:[#allocation2 + $0x168] sm:$0xff] }
 0x4dc   : > { %2068 = vmatpush.msra.mxu0 %v4268_v7  ;;  %5391 = vst [vmem:[#allocation32_spill] sm:$0xff] %v4548_v49 }
 0x4de   : > { %2069 = vmatpush.msra.mxu0 %v4275_v9 }
 0x4df   : > { %3318 = vmatmul.msk.f32.gmra.mxu1 %vm1172_vm4, %v4409_v61 }
 0x4e0   : > { %3350 = vmatmul.msk.f32.gmra.mxu2 %vm1172_vm4, %v4409_v61  ;;  %2070 = vmatpush.msra.mxu0 %v4281_v11 }
 0x4e2   : > { %2071 = vmatpush.msra.mxu0 %v4288_v14 }
 0x4e4   : > { %2072 = vmatpush.msra.mxu0 %v4294_v16 }
 0x4e6   : > { %2073 = vmatpush.msra.mxu0 %v4301_v18 }
 0x4e7   : > { %3319 = vmatmul.msk.f32.gmra.mxu1 %vm1172_vm4, %v4418_v0 }
 0x4e8   : > { %3351 = vmatmul.msk.f32.gmra.mxu2 %vm1172_vm4, %v4418_v0  ;;  %2074 = vmatpush.msra.mxu0 %v4307_v20 }
 0x4ef   : > { %3320 = vmatmul.msk.f32.gmra.mxu1 %vm1172_vm4, %v4427_v2 }
 0x4f0   : > { %3352 = vmatmul.msk.f32.gmra.mxu2 %vm1172_vm4, %v4427_v2 }
 0x4f7   : > { %3321 = vmatmul.msk.f32.gmra.mxu1 %vm1172_vm4, %v4436_v3 }
 0x4f8   : > { %3353 = vmatmul.msk.f32.gmra.mxu2 %vm1172_vm4, %v4436_v3 }
 0x4ff   : > { %3322 = vmatmul.msk.f32.gmra.mxu1 %vm1172_vm4, %v4445_v6 }
 0x500   : > { %3354 = vmatmul.msk.f32.gmra.mxu2 %vm1172_vm4, %v4445_v6 }
 0x504   : > { %v4535_v40 = vpop.f32.mrf.mxu2 }
 0x505   : > { %5388 = vst [vmem:[#allocation29_spill] sm:$0xff] %v4535_v40 }
 0x507   : > { %3323 = vmatmul.msk.f32.gmra.mxu1 %vm1172_vm4, %v4454_v8 }
 0x508   : > { %3355 = vmatmul.msk.f32.gmra.mxu2 %vm1172_vm4, %v4454_v8 }
 0x50c   : > { %v4545_v17 = vpop.f32.mrf.mxu2 }
 0x50d   : > { %5390 = vst [vmem:[#allocation31_spill] sm:$0xff] %v4545_v17 }
 0x50f   : > { %3324 = vmatmul.msk.f32.gmra.mxu1 %vm1172_vm4, %v4463_v19 }
 0x510   : > { %3356 = vmatmul.msk.f32.gmra.mxu2 %vm1172_vm4, %v4463_v19 }
 0x517   : > { %3325 = vmatmul.msk.f32.gmra.mxu1 %vm1172_vm4, %v4478_v24 }
 0x518   : > { %3357 = vmatmul.msk.f32.gmra.mxu2 %vm1172_vm4, %v4478_v24 }
 0x51f   : > { %3326 = vmatmul.msk.f32.gmra.mxu1 %vm1172_vm4, %v4496_v33 }
 0x520   : > { %3358 = vmatmul.msk.f32.gmra.mxu2 %vm1172_vm4, %v4496_v33 }
 0x527   : > { %3327 = vmatmul.msk.f32.gmra.mxu1 %vm1172_vm4, %v4511_v35 }
 0x528   : > { %3359 = vmatmul.msk.f32.gmra.mxu2 %vm1172_vm4, %v4511_v35 }
 0x52f   : > { %3328 = vmatmul.msk.f32.gmra.mxu1 %vm1172_vm4, %v4526_v38 }
 0x530   : > { %3360 = vmatmul.msk.f32.gmra.mxu2 %vm1172_vm4, %v4526_v38 }
 0x534   : > { %v1601_v42 = vpop.f32.mrf.mxu1 }
 0x535   : > { %3329 = vmatmul.msk.f32.vlgmr.msrb.gmra.mxu0 %vm1172_vm4, %v1601_v42  ;;  %v2590_v42 = vld [vmem:[#allocation2 + $0x160] sm:$0xff] }
 0x536   : > { %2244 = vmatpush.msrb.mxu0 %v4472_v21 }
 0x538   : > { %2245 = vmatpush.msrb.mxu0 %v4483_v30  ;;  %2110 = vmatmul.f32.vlgmr.msra.gmra.mxu2 %v4541_v44 }
 0x539   : > { %2629 = vmatpush.msra.mxu2 %v2593_v41 }
 0x53b   : > { %2630 = vmatpush.msra.mxu2 %v2592_v54  ;;  %v4551_v41 = vpop.f32.mrf.mxu2  ;;  %v2586_v54 = vld [vmem:[#allocation2 + $0x140] sm:$0xff] }
 0x53c   : > { %v1604_v27 = vpop.f32.mrf.mxu1 }
 0x53d   : > { %3330 = vmatmul.msk.f32.gmra.mxu0 %vm1172_vm4, %v1604_v27  ;;  %2631 = vmatpush.msra.mxu2 %v2591_v59  ;;  %v2585_v27 = vld [vmem:[#allocation2 + $0x138] sm:$0xff]  ;;  %v1307_v59 = vrot.slane %v4334_v31, 5 }
 0x53e   : > { %v2581_v31 = vld [vmem:[#allocation2 + $0x118] sm:$0xff] }
 0x53f   : > { %2632 = vmatpush.msra.mxu2 %v2590_v42  ;;  %v2583_v42 = vld [vmem:[#allocation2 + $0x128] sm:$0xff] }
 0x540   : > { %2113 = vmatmul.f32.gmra.mxu2 %v4548_v49 }
 0x541   : > { %2633 = vmatpush.msra.mxu2 %v2589_v15  ;;  %v1391_v15 = vperm.slane %v1307_v59, 0  ;;  %v2579_v59 = vld [vmem:[#allocation2 + $0x108] sm:$0xff] }
 0x543   : > { %2634 = vmatpush.msra.mxu2 %v2588_v39  ;;  %v1379_v39 = vpop.permute.xlu2 %1378  ;;  %v1409_v17 = vsub.f32 %v1391_v15, %v1385_v50 }
 0x544   : > { %v1607_v62 = vpop.f32.mrf.mxu1 }
 0x545   : > { %3331 = vmatmul.msk.f32.gmra.mxu0 %vm1172_vm4, %v1607_v62  ;;  %2635 = vmatpush.msra.mxu2 %v2587_v47  ;;  %v2582_v62 = vld [vmem:[#allocation2 + $0x120] sm:$0xff]  ;;  %v4558_v47 = vpop.f32.mrf.mxu2  ;;  %3617 = vtanh.f32 %v1409_v17 }
 0x547   : > { %2636 = vmatpush.msra.mxu2 %v2586_v54  ;;  %v1408_v54 = vsub.f32 %v1391_v15, %v1379_v39 }
 0x548   : > { %3409 = vmatmul.msk.f32.vlgmr.msrb.gmra.mxu2 %vm1172_vm4, %v4352_v57 }
 0x549   : > { %2637 = vmatpush.msra.mxu2 %v2585_v27  ;;  %v2580_v27 = vld [vmem:[#allocation2 + $0x110] sm:$0xff]  ;;  %3619 = vtanh.f32 %v1408_v54 }
 0x54b   : > { %2638 = vmatpush.msra.mxu2 %v2584_v32  ;;  %v3618_v50 = vpop.eup %3617 }
 0x54c   : > { %v1610_v56 = vpop.f32.mrf.mxu1 }
 0x54d   : > { %3332 = vmatmul.msk.f32.gmra.mxu0 %vm1172_vm4, %v1610_v56  ;;  %2639 = vmatpush.msra.mxu2 %v2583_v42  ;;  %v2578_v56 = vld [vmem:[#allocation2 + $0x100] sm:$0xff]  ;;  %v4563_v40 = vpop.f32.mrf.mxu2 }
 0x54f   : > { %2640 = vmatpush.msra.mxu2 %v2582_v62  ;;  %v3620_v42 = vpop.eup %3619 }
 0x550   : > { %3410 = vmatmul.msk.f32.gmra.mxu2 %vm1172_vm4, %v4366_v13 }
 0x551   : > { %2641 = vmatpush.msra.mxu2 %v2581_v31 }
 0x553   : > { %2642 = vmatpush.msra.mxu2 %v2580_v27 }
 0x554   : > { %v1613_v32 = vpop.f32.mrf.mxu1 }
 0x555   : > { %3333 = vmatmul.msk.f32.gmra.mxu0 %vm1172_vm4, %v1613_v32  ;;  %2643 = vmatpush.msra.mxu2 %v2579_v59  ;;  %v4568_v15 = vpop.f32.mrf.mxu2 }
 0x557   : > { %2644 = vmatpush.msra.mxu2 %v2578_v56 }
 0x558   : > { %3411 = vmatmul.msk.f32.gmra.mxu2 %vm1172_vm4, %v4381_v28 }
 0x559   : > { %2895 = vmatpush.msrb.mxu2 %v3618_v50 }
 0x55b   : > { %2896 = vmatpush.msrb.mxu2 %v3620_v42 }
 0x55c   : > { %v1616_v17 = vpop.f32.mrf.mxu1 }
 0x55d   : > { %3334 = vmatmul.msk.f32.gmra.mxu0 %vm1172_vm4, %v1616_v17  ;;  %v4575_v62 = vpop.f32.mrf.mxu2  ;;  %v1160_v17 = vpop.f32.mrf.mxu0 }
 0x560   : > { %3412 = vmatmul.msk.f32.gmra.mxu2 %vm1172_vm4, %v4391_v37 }
 0x564   : > { %v1619_v39 = vpop.f32.mrf.mxu1 }
 0x565   : > { %3335 = vmatmul.msk.f32.gmra.mxu0 %vm1172_vm4, %v1619_v39  ;;  %v4581_v27 = vpop.f32.mrf.mxu2 }
 0x568   : > { %3413 = vmatmul.msk.f32.gmra.mxu2 %vm1172_vm4, %v4400_v45 }
 0x56c   : > { %v1622_v31 = vpop.f32.mrf.mxu1 }
 0x56d   : > { %3336 = vmatmul.msk.f32.gmra.mxu0 %vm1172_vm4, %v1622_v31  ;;  %v4586_v32 = vpop.f32.mrf.mxu2 }
 0x570   : > { %3414 = vmatmul.msk.f32.gmra.mxu2 %vm1172_vm4, %v4409_v61 }
 0x574   : > { %v1625_v54 = vpop.f32.mrf.mxu1 }
 0x575   : > { %3337 = vmatmul.msk.f32.gmra.mxu0 %vm1172_vm4, %v1625_v54  ;;  %v4591_v50 = vpop.f32.mrf.mxu2  ;;  %v5330_v54 = vmov 1  }
 0x576   : > { %3586 = vset.pattern.permute.xlu1 %v5330_v54  ;;  %3585 = vset.pattern.permute.xlu2 %v5330_v54 }
 0x577   : > { %1806 = vperm.xlu1 %3586, %v4262_v5   ;;  %1802 = vperm.xlu2 %3585, %v4321_v23  }
 0x578   : > { %3415 = vmatmul.msk.f32.gmra.mxu2 %vm1172_vm4, %v4418_v0 }
 0x57c   : > { %v1628_v59 = vpop.f32.mrf.mxu1 }
 0x57d   : > { %3338 = vmatmul.msk.f32.gmra.mxu0 %vm1172_vm4, %v1628_v59  ;;  %v4598_v39 = vpop.f32.mrf.mxu2  ;;  %v1163_v59 = vpop.f32.mrf.mxu0 }
 0x57f   : > { %3589 = vset.pattern.permute.xlu1 %v5392_v12 }
 0x580   : > { %3416 = vmatmul.msk.f32.gmra.mxu2 %vm1172_vm4, %v4427_v2  ;;  %2084 = vperm.xlu1 %3589, %v4313_v22  }
 0x584   : > { %v1631_v56 = vpop.f32.mrf.mxu1 }
 0x585   : > { %3339 = vmatmul.msk.f32.gmra.mxu0 %vm1172_vm4, %v1631_v56  ;;  %v4612_v25 = vpop.f32.mrf.mxu0 }
 0x586   : > { %5394 = vst [vmem:[#allocation33_spill] sm:$0xff] %v4612_v25 }
 0x588   : > { %3417 = vmatmul.msk.f32.gmra.mxu2 %vm1172_vm4, %v4436_v3 }
 0x58c   : > { %v1634_v42 = vpop.f32.mrf.mxu1 }
 0x58d   : > { %3340 = vmatmul.msk.f32.gmra.mxu0 %vm1172_vm4, %v1634_v42  ;;  %v4608_v42 = vpop.f32.mrf.mxu2  ;;  %v4624_v10 = vpop.f32.mrf.mxu0 }
 0x58e   : > { %5396 = vst [vmem:[#allocation34_spill] sm:$0xff] %v4624_v10  ;;  %v1459_v10 = vld [vmem:[%s5316_s14 + $0x18] sm:$0xff] }
 0x590   : > { %3418 = vmatmul.msk.f32.gmra.mxu2 %vm1172_vm4, %v4445_v6 }
 0x594   : > { %v1637_v31 = vpop.f32.mrf.mxu1 }
 0x595   : > { %3341 = vmatmul.msk.f32.gmra.mxu0 %vm1172_vm4, %v1637_v31  ;;  %v5393_v31 = vmov 2   ;;  %v4619_v54 = vpop.f32.mrf.mxu2 }
 0x596   : > { %3587 = vset.pattern.permute.xlu2 %v5393_v31 }
 0x597   : > { %2031 = vperm.xlu2 %3587, %v4321_v23  }
 0x598   : > { %3419 = vmatmul.msk.f32.gmra.mxu2 %vm1172_vm4, %v4454_v8 }
 0x59c   : > { %v1640_v56 = vpop.f32.mrf.mxu1 }
 0x59d   : > { %3342 = vmatmul.msk.f32.gmra.mxu0 %vm1172_vm4, %v1640_v56  ;;  %v5395_v56 = vmov 1   ;;  %v4630_v25 = vpop.f32.mrf.mxu2 }
 0x59e   : > { %3591 = vset.pattern.permute.xlu1 %v5395_v56 }
 0x59f   : > { %3590 = vset.pattern.permute.xlu2 %v5392_v12  ;;  %2335 = vperm.xlu1 %3591, %v4313_v22  }
 0x5a0   : > { %3420 = vmatmul.msk.f32.gmra.mxu2 %vm1172_vm4, %v4463_v19  ;;  %2089 = vperm.xlu2 %3590, %v1459_v10  }
 0x5a4   : > { %v1643_v5 = vpop.f32.mrf.mxu1 }
 0x5a5   : > { %3343 = vmatmul.msk.f32.gmra.mxu0 %vm1172_vm4, %v1643_v5 }
 0x5a7   : > { %3594 = vset.pattern.permute.xlu1 %v5393_v31  ;;  %v4665_v31 = vmul.f32 %v4502_v34, %v1160_v17 }
 0x5a8   : > { %3421 = vmatmul.msk.f32.gmra.mxu2 %vm1172_vm4, %v4478_v24  ;;  %2568 = vperm.xlu1 %3594, %v1459_v10  }
 0x5a9   : > { %3592 = vset.pattern.permute.xlu2 %v5395_v56  ;;  %5397 = vst [vmem:[#allocation35_spill] sm:$0xff] %v4665_v31 }
 0x5aa   : > { %2339 = vperm.xlu2 %3592, %v1459_v10   ;;  %v4676_v10 = vmul.f32 %v4520_v36, %v1163_v59 }
 0x5ac   : > { %v1646_v23 = vpop.f32.mrf.mxu1  ;;  %5398 = vst [vmem:[#allocation36_spill] sm:$0xff] %v4676_v10 }
 0x5ad   : > { %3344 = vmatmul.msk.f32.gmra.mxu0 %vm1172_vm4, %v1646_v23  ;;  %v4644_v23 = vpop.f32.mrf.mxu2 }
 0x5b0   : > { %3422 = vmatmul.msk.f32.gmra.mxu2 %vm1172_vm4, %v4496_v33  ;;  %3596 = vset.pattern.permute.xlu1 %v5395_v56 }
 0x5b2   : > { %v4634_v5 = vpop.f32.mrf.mxu0  ;;  %3595 = vset.pattern.permute.xlu2 %v5392_v12 }
 0x5b5   : > { %2075 = vmatmul.f32.vlgmr.msra.gmra.mxu0 %v4541_v44 }
 0x5b6   : > { %2594 = vmatpush.msra.mxu0 %v4207_v51 }
 0x5b8   : > { %2595 = vmatpush.msra.mxu0 %v4212_v53  ;;  %3423 = vmatmul.msk.f32.gmra.mxu2 %vm1172_vm4, %v4511_v35 }
 0x5ba   : > { %v4641_v22 = vpop.f32.mrf.mxu0  ;;  %2596 = vmatpush.msra.mxu0 %v4218_v55 }
 0x5bc   : > { %2597 = vmatpush.msra.mxu0 %v4224_v48 }
 0x5bd   : > { %2078 = vmatmul.f32.gmra.mxu0 %v4548_v49  ;;  %v4659_v49 = vpop.f32.mrf.mxu2 }
 0x5be   : > { %2598 = vmatpush.msra.mxu0 %v4232_v58 }
 0x5c0   : > { %2599 = vmatpush.msra.mxu0 %v4237_v60  ;;  %3424 = vmatmul.msk.f32.gmra.mxu2 %vm1172_vm4, %v4526_v38 }
 0x5c2   : > { %v4655_v44 = vpop.f32.mrf.mxu0  ;;  %2600 = vmatpush.msra.mxu0 %v4244_v63 }
 0x5c4   : > { %2601 = vmatpush.msra.mxu0 %v4250_v1 }
 0x5c5   : > { %v4678_v56 = vpop.f32.mrf.mxu2 }
 0x5c6   : > { %2602 = vmatpush.msra.mxu0 %v4257_v4 }
 0x5c8   : > { %2603 = vmatpush.msra.mxu0 %v4268_v7  ;;  %2645 = vmatmul.f32.vlgmr.msra.gmra.mxu2 %v4665_v31 }
 0x5ca   : > { %v4669_v46 = vpop.f32.mrf.mxu0  ;;  %2604 = vmatpush.msra.mxu0 %v4275_v9 }
 0x5cc   : > { %2605 = vmatpush.msra.mxu0 %v4281_v11 }
 0x5cd   : > { %v4684_v17 = vpop.f32.mrf.mxu2 }
 0x5ce   : > { %2606 = vmatpush.msra.mxu0 %v4288_v14  ;;  %5399 = vst [vmem:[#allocation37_spill] sm:$0xff] %v4684_v17 }
 0x5d0   : > { %2607 = vmatpush.msra.mxu0 %v4294_v16  ;;  %2648 = vmatmul.f32.gmra.mxu2 %v4676_v10 }
 0x5d2   : > { %v1726_v34 = vpop.f32.mrf.mxu0  ;;  %2608 = vmatpush.msra.mxu0 %v4301_v18 }
 0x5d4   : > { %2609 = vmatpush.msra.mxu0 %v4307_v20 }
 0x5d5   : > { %v4690_v36 = vpop.f32.mrf.mxu2 }
 0x5d6   : > { %5400 = vst [vmem:[#allocation38_spill] sm:$0xff] %v4690_v36 }
 0x5d8   : > { %3473 = vmatmul.msk.f32.vlgmr.msrb.gmra.mxu2 %vm1172_vm4, %v4352_v57 }
 0x5da   : > { %v1729_v31 = vpop.f32.mrf.mxu0 }
 0x5dd   : > { %v4694_v10 = vpop.f32.mrf.mxu2 }
 0x5de   : > { %5401 = vst [vmem:[#allocation39_spill] sm:$0xff] %v4694_v10 }
 0x5e0   : > { %3474 = vmatmul.msk.f32.gmra.mxu2 %vm1172_vm4, %v4366_v13 }
 0x5e2   : > { %v1732_v12 = vpop.f32.mrf.mxu0 }
 0x5e5   : > { %v4698_v43 = vpop.f32.mrf.mxu2 }
 0x5e6   : > { %5402 = vst [vmem:[#allocation40_spill] sm:$0xff] %v4698_v43 }
 0x5e8   : > { %3475 = vmatmul.msk.f32.gmra.mxu2 %vm1172_vm4, %v4381_v28 }
 0x5ea   : > { %v1735_v59 = vpop.f32.mrf.mxu0 }
 0x5ed   : > { %v4702_v57 = vpop.f32.mrf.mxu2 }
 0x5ee   : > { %5403 = vst [vmem:[#allocation41_spill] sm:$0xff] %v4702_v57 }
 0x5f0   : > { %3476 = vmatmul.msk.f32.gmra.mxu2 %vm1172_vm4, %v4391_v37 }
 0x5f2   : > { %v1738_v52 = vpop.f32.mrf.mxu0 }
 0x5f5   : > { %v4708_v10 = vpop.f32.mrf.mxu2 }
 0x5f6   : > { %5404 = vst [vmem:[#allocation42_spill] sm:$0xff] %v4708_v10 }
 0x5f8   : > { %3477 = vmatmul.msk.f32.gmra.mxu2 %vm1172_vm4, %v4400_v45 }
 0x5fa   : > { %v1741_v17 = vpop.f32.mrf.mxu0 }
 0x5fd   : > { %v4712_v43 = vpop.f32.mrf.mxu2 }
 0x5fe   : > { %5405 = vst [vmem:[#allocation43_spill] sm:$0xff] %v4712_v43 }
 0x600   : > { %3478 = vmatmul.msk.f32.gmra.mxu2 %vm1172_vm4, %v4409_v61 }
 0x602   : > { %v1744_v13 = vpop.f32.mrf.mxu0 }
 0x605   : > { %v4716_v57 = vpop.f32.mrf.mxu2 }
 0x606   : > { %5406 = vst [vmem:[#allocation44_spill] sm:$0xff] %v4716_v57 }
 0x608   : > { %3479 = vmatmul.msk.f32.gmra.mxu2 %vm1172_vm4, %v4418_v0 }
 0x60a   : > { %v1747_v36 = vpop.f32.mrf.mxu0 }
 0x60d   : > { %v4720_v61 = vpop.f32.mrf.mxu2 }
 0x60e   : > { %5407 = vst [vmem:[#allocation45_spill] sm:$0xff] %v4720_v61  ;;  %v1773_v61 = vmul.f32 %v1747_v36, %v4232_v58 }
 0x610   : > { %3480 = vmatmul.msk.f32.gmra.mxu2 %vm1172_vm4, %v4427_v2 }
 0x612   : > { %v1750_v28 = vpop.f32.mrf.mxu0 }
 0x613   : > { %v1774_v57 = vmul.f32 %v1750_v28, %v4224_v48  ;;  %v1768_v48 = vmul.f32 %v1732_v12, %v4268_v7  ;;  %v1763_v12 = vmul.f32 %v4641_v22, %v4301_v18  ;;  %v1762_v28 = vmul.f32 %v4634_v5, %v4307_v20  ;;  %v4817_v22 = vld [vmem:[%s5308_s6 + $0x68] sm:$0xff] }
 0x618   : > { %3481 = vmatmul.msk.f32.gmra.mxu2 %vm1172_vm4, %v4436_v3 }
 0x61a   : > { %v1753_v37 = vpop.f32.mrf.mxu0 }
 0x61b   : > { %v1775_v2 = vmul.f32 %v1753_v37, %v4218_v55  ;;  %v1769_v55 = vmul.f32 %v1735_v59, %v4257_v4  ;;  %v4835_v59 = vld [vmem:[%s5308_s6 + $0x50] sm:$0xff] }
 0x620   : > { %3482 = vmatmul.msk.f32.gmra.mxu2 %vm1172_vm4, %v4445_v6  ;;  %v4731_v6 = vpop.f32.mrf.mxu2 }
 0x622   : > { %v1756_v45 = vpop.f32.mrf.mxu0 }
 0x623   : > { %v1776_v43 = vmul.f32 %v1756_v45, %v4212_v53  ;;  %v1770_v53 = vmul.f32 %v1738_v52, %v4250_v1  ;;  %v1765_v52 = vmul.f32 %v4669_v46, %v4288_v14  ;;  %v5408_v45 = vld [vmem:[#allocation37_spill] sm:$0xff] }
 0x628   : > { %3483 = vmatmul.msk.f32.gmra.mxu2 %vm1172_vm4, %v4454_v8  ;;  %v1772_v8 = vmul.f32 %v1744_v13, %v4237_v60  ;;  %v4740_v58 = vpop.f32.mrf.mxu2  ;;  %v1767_v60 = vmul.f32 %v1729_v31, %v4275_v9 }
 0x62a   : > { %v1759_v0 = vpop.f32.mrf.mxu0 }
 0x62b   : > { %v1777_v10 = vmul.f32 %v1759_v0, %v4207_v51  ;;  %v1771_v51 = vmul.f32 %v1741_v17, %v4244_v63  ;;  %v4829_v17 = vld [vmem:[%s5308_s6 + $0x58] sm:$0xff] }
 0x62d   : > { %1778 = vmatpush.msra.mxu3 %v1777_v10  ;;  %v4823_v10 = vld [vmem:[%s5308_s6 + $0x60] sm:$0xff] }
 0x62f   : > { %1779 = vmatpush.msra.mxu3 %v1776_v43  ;;  %v1766_v43 = vmul.f32 %v1726_v34, %v4281_v11 }
 0x630   : > { %3484 = vmatmul.msk.f32.gmra.mxu2 %vm1172_vm4, %v4463_v19  ;;  %v4752_v13 = vpop.f32.mrf.mxu2 }
 0x631   : > { %1780 = vmatpush.msra.mxu3 %v1775_v2 }
 0x633   : > { %1781 = vmatpush.msra.mxu3 %v1774_v57  ;;  %v1764_v57 = vmul.f32 %v4655_v44, %v4294_v16 }
 0x635   : > { %1782 = vmatpush.msra.mxu3 %v1773_v61 }
 0x637   : > { %1783 = vmatpush.msra.mxu3 %v1772_v8 }
 0x638   : > { %3485 = vmatmul.msk.f32.gmra.mxu2 %vm1172_vm4, %v4478_v24  ;;  %v4761_v46 = vpop.f32.mrf.mxu2 }
 0x639   : > { %1784 = vmatpush.msra.mxu3 %v1771_v51 }
 0x63b   : > { %1785 = vmatpush.msra.mxu3 %v1770_v53 }
 0x63d   : > { %1786 = vmatpush.msra.mxu3 %v1769_v55 }
 0x63f   : > { %1787 = vmatpush.msra.mxu3 %v1768_v48 }
 0x640   : > { %3486 = vmatmul.msk.f32.gmra.mxu2 %vm1172_vm4, %v4496_v33 }
 0x641   : > { %1788 = vmatpush.msra.mxu3 %v1767_v60 }
 0x643   : > { %1789 = vmatpush.msra.mxu3 %v1766_v43 }
 0x645   : > { %1790 = vmatpush.msra.mxu3 %v1765_v52 }
 0x647   : > { %1791 = vmatpush.msra.mxu3 %v1764_v57 }
 0x648   : > { %3487 = vmatmul.msk.f32.gmra.mxu2 %vm1172_vm4, %v4511_v35 }
 0x649   : > { %1792 = vmatpush.msra.mxu3 %v1763_v12  ;;  %v5410_v12 = vld [vmem:[#allocation15_spill] sm:$0xff] }
 0x64b   : > { %1793 = vmatpush.msra.mxu3 %v1762_v28 }
 0x64c   : > { %1794 = vmatmul.f32.vlgmr.msra.gmra.mxu3 %v4325_v26 }
 0x64d   : > { %1940 = vmatpush.msrb.mxu3 %v4472_v21 }
 0x64f   : > { %1941 = vmatpush.msrb.mxu3 %v4483_v30 }
 0x650   : > { %3488 = vmatmul.msk.f32.gmra.mxu2 %vm1172_vm4, %v4526_v38 }
 0x654   : > { %1797 = vmatmul.f32.gmra.mxu3 %v4329_v29 }
 0x65c   : > { %3361 = vmatmul.msk.f32.vlgmr.msrb.gmra.mxu3 %vm1172_vm4, %v4551_v41 }
 0x664   : > { %3362 = vmatmul.msk.f32.gmra.mxu3 %vm1172_vm4, %v4558_v47 }
 0x66c   : > { %3363 = vmatmul.msk.f32.gmra.mxu3 %vm1172_vm4, %v4563_v40 }
 0x674   : > { %3364 = vmatmul.msk.f32.gmra.mxu3 %vm1172_vm4, %v4568_v15 }
 0x67c   : > { %3365 = vmatmul.msk.f32.gmra.mxu3 %vm1172_vm4, %v4575_v62 }
 0x684   : > { %3366 = vmatmul.msk.f32.gmra.mxu3 %vm1172_vm4, %v4581_v27 }
 0x68c   : > { %3367 = vmatmul.msk.f32.gmra.mxu3 %vm1172_vm4, %v4586_v32 }
 0x694   : > { %3368 = vmatmul.msk.f32.gmra.mxu3 %vm1172_vm4, %v4591_v50 }
 0x69c   : > { %3369 = vmatmul.msk.f32.gmra.mxu3 %vm1172_vm4, %v4598_v39 }
 0x6a4   : > { %3370 = vmatmul.msk.f32.gmra.mxu3 %vm1172_vm4, %v4608_v42  ;;  %v4805_v42 = vld [vmem:[%s5308_s6 + $0x78] sm:$0xff] }
 0x6ac   : > { %3371 = vmatmul.msk.f32.gmra.mxu3 %vm1172_vm4, %v4619_v54 }
 0x6b4   : > { %3372 = vmatmul.msk.f32.gmra.mxu3 %vm1172_vm4, %v4630_v25 }
 0x6bc   : > { %3373 = vmatmul.msk.f32.gmra.mxu3 %vm1172_vm4, %v4644_v23 }
 0x6c4   : > { %3374 = vmatmul.msk.f32.gmra.mxu3 %vm1172_vm4, %v4659_v49 }
 0x6cc   : > { %3375 = vmatmul.msk.f32.gmra.mxu3 %vm1172_vm4, %v4678_v56  ;;  %v4811_v56 = vld [vmem:[%s5308_s6 + $0x70] sm:$0xff] }
 0x6cf   : > { %v4796_v37 = vpop.f32.mrf.mxu3 }
 0x6d4   : > { %3376 = vmatmul.msk.f32.gmra.mxu3 %vm1172_vm4, %v5408_v45  ;;  %v5414_v45 = vld [vmem:[#allocation16_spill] sm:$0xff] }
 0x6d7   : > { %v4800_v61 = vpop.f32.mrf.mxu3 }
 0x6df   : > { %v1943_v0 = vpop.f32.mrf.mxu3 }
 0x6e7   : > { %v1946_v2 = vpop.f32.mrf.mxu3 }
 0x6ef   : > { %v1949_v8 = vpop.f32.mrf.mxu3 }
 0x6f7   : > { %v1952_v25 = vpop.f32.mrf.mxu3 }
 0x6f8   : > { %v1994_v57 = vmul.f32 %v1952_v25, %v4288_v14  ;;  %v5422_v25 = vld [vmem:[#allocation27_spill] sm:$0xff] }
 0x6ff   : > { %v1955_v40 = vpop.f32.mrf.mxu3 }
 0x700   : > { %v1995_v52 = vmul.f32 %v1955_v40, %v4281_v11  ;;  %v1991_v11 = vmul.f32 %v1943_v0, %v4307_v20  ;;  %v5417_v20 = vld [vmem:[#allocation22_spill] sm:$0xff]  ;;  %v5418_v0 = vld [vmem:[#allocation23_spill] sm:$0xff]  ;;  %v5423_v40 = vld [vmem:[#allocation28_spill] sm:$0xff] }
 0x707   : > { %v1958_v44 = vpop.f32.mrf.mxu3 }
 0x708   : > { %v1996_v43 = vmul.f32 %v1958_v44, %v4275_v9 }
 0x70f   : > { %v1961_v41 = vpop.f32.mrf.mxu3 }
 0x710   : > { %v1997_v60 = vmul.f32 %v1961_v41, %v4268_v7  ;;  %v5412_v7 = vld [vmem:[#allocation14_spill] sm:$0xff] }
 0x717   : > { %v1964_v47 = vpop.f32.mrf.mxu3 }
 0x718   : > { %v1998_v48 = vmul.f32 %v1964_v47, %v4257_v4  ;;  %v1992_v4 = vmul.f32 %v1946_v2, %v4301_v18  ;;  %v5415_v18 = vld [vmem:[#allocation19_spill] sm:$0xff]  ;;  %v5416_v2 = vld [vmem:[#allocation21_spill] sm:$0xff] }
 0x71f   : > { %v1967_v15 = vpop.f32.mrf.mxu3 }
 0x720   : > { %v1999_v55 = vmul.f32 %v1967_v15, %v4250_v1  ;;  %v5409_v1 = vld [vmem:[#allocation13_spill] sm:$0xff] }
 0x721   : > { %v5411_v28 = vsub.f32 %v5409_v1, %v5410_v12  ;;  %v5413_v9 = vsub.f32 %v5409_v1, %v5412_v7 }
 0x723   : > { %3621 = vtanh.f32 %v5411_v28 }
 0x724   : > { %3623 = vtanh.f32 %v5413_v9 }
 0x727   : > { %v1970_v49 = vpop.f32.mrf.mxu3 }
 0x728   : > { %v2000_v53 = vmul.f32 %v1970_v49, %v4244_v63  ;;  %v1993_v63 = vmul.f32 %v1949_v8, %v4294_v16  ;;  %v5420_v8 = vld [vmem:[#allocation25_spill] sm:$0xff] }
 0x729   : > { %v3622_v14 = vpop.eup %3621 }
 0x72a   : > { %v3624_v16 = vpop.eup %3623 }
 0x72f   : > { %v1973_v62 = vpop.f32.mrf.mxu3 }
 0x730   : > { %v2001_v51 = vmul.f32 %v4835_v59, %v1973_v62 }
 0x737   : > { %v1976_v27 = vpop.f32.mrf.mxu3 }
 0x738   : > { %v2002_v36 = vmul.f32 %v4829_v17, %v1976_v27 }
 0x73f   : > { %v1979_v32 = vpop.f32.mrf.mxu3 }
 0x740   : > { %v2003_v34 = vmul.f32 %v4823_v10, %v1979_v32 }
 0x747   : > { %v1982_v50 = vpop.f32.mrf.mxu3 }
 0x748   : > { %v2004_v23 = vmul.f32 %v4817_v22, %v1982_v50 }
 0x74f   : > { %v1985_v39 = vpop.f32.mrf.mxu3 }
 0x750   : > { %v2005_v5 = vmul.f32 %v4811_v56, %v1985_v39 }
 0x757   : > { %v1988_v54 = vpop.f32.mrf.mxu3 }
 0x758   : > { %v2006_v31 = vmul.f32 %v4805_v42, %v1988_v54  ;;  %v4908_v54 = vpop.f32.mrf.mxu0 }
 0x75a   : > { %2007 = vmatpush.msra.mxu1 %v2006_v31  ;;  %v1461_v31 = vld [vmem:[%s5316_s14 + $0x28] sm:$0xff] }
 0x75b   : > { %2624 = vperm.xlu0 %3593, %v1461_v31  }
 0x75c   : > { %2008 = vmatpush.msra.mxu1 %v2005_v5 }
 0x75e   : > { %2009 = vmatpush.msra.mxu1 %v2004_v23 }
 0x760   : > { %2010 = vmatpush.msra.mxu1 %v2003_v34  ;;  %v4914_v23 = vpop.f32.mrf.mxu0 }
 0x762   : > { %2011 = vmatpush.msra.mxu1 %v2002_v36 }
 0x764   : > { %2012 = vmatpush.msra.mxu1 %v2001_v51  ;;  %v1460_v51 = vld [vmem:[%s5316_s14 + $0x20] sm:$0xff] }
 0x765   : > { %2619 = vperm.xlu2 %3595, %v1460_v51   ;;  %2870 = vperm.xlu1 %3596, %v1460_v51  }
 0x766   : > { %2013 = vmatpush.msra.mxu1 %v2000_v53  ;;  %v5424_v53 = vld [vmem:[#allocation35_spill] sm:$0xff] }
 0x768   : > { %2014 = vmatpush.msra.mxu1 %v1999_v55 }
 0x76a   : > { %2015 = vmatpush.msra.mxu1 %v1998_v48  ;;  %v5425_v48 = vmov 1  }
 0x76c   : > { %2016 = vmatpush.msra.mxu1 %v1997_v60  ;;  %v5426_v60 = vmov 2  }
 0x76d   : > { %3597 = vset.pattern.permute.xlu2 %v5425_v48  ;;  %3598 = vset.pattern.permute.xlu1 %v5426_v60 }
 0x76e   : > { %2017 = vmatpush.msra.mxu1 %v1996_v43  ;;  %v5427_v43 = vld [vmem:[#allocation36_spill] sm:$0xff]  ;;  %2874 = vperm.xlu2 %3597, %v1461_v31  }
 0x76f   : > { %3099 = vperm.xlu1 %3598, %v1460_v51   ;;  %v4992_v51 = vld [vmem:[%s5308_s6] sm:$0xff] }
 0x770   : > { %2018 = vmatpush.msra.mxu1 %v1995_v52 }
 0x772   : > { %2019 = vmatpush.msra.mxu1 %v1994_v57  ;;  %v5428_v57 = vmov 0  }
 0x774   : > { %2020 = vmatpush.msra.mxu1 %v1993_v63 }
 0x776   : > { %2021 = vmatpush.msra.mxu1 %v1992_v4  ;;  %3599 = vset.pattern.permute.xlu2 %v5426_v60 }
 0x777   : > { %3600 = vset.pattern.permute.xlu1 %v5428_v57  ;;  %3103 = vperm.xlu2 %3599, %v1461_v31   ;;  %v5430_v57 = vld [vmem:[#allocation32_spill] sm:$0xff] }
 0x778   : > { %2022 = vmatpush.msra.mxu1 %v1991_v11 }
 0x779   : > { %2023 = vmatmul.f32.vlgmr.msra.gmra.mxu1 %v4325_v26  ;;  %v5419_v26 = vld [vmem:[#allocation24_spill] sm:$0xff] }
 0x77a   : > { %2131 = vmatpush.msrb.mxu1 %v3622_v14 }
 0x77c   : > { %2132 = vmatpush.msrb.mxu1 %v3624_v16 }
 0x77f   : > { %3601 = vset.pattern.permute.xlu2 %v5425_v48 }
 0x781   : > { %2026 = vmatmul.f32.gmra.mxu1 %v4329_v29  ;;  %v5421_v29 = vld [vmem:[#allocation26_spill] sm:$0xff] }
 0x789   : > { %3377 = vmatmul.msk.f32.vlgmr.msrb.gmra.mxu1 %vm1172_vm4, %v5414_v45 }
 0x791   : > { %3378 = vmatmul.msk.f32.gmra.mxu1 %vm1172_vm4, %v5415_v18 }
 0x799   : > { %3379 = vmatmul.msk.f32.gmra.mxu1 %vm1172_vm4, %v5416_v2 }
 0x7a1   : > { %3380 = vmatmul.msk.f32.gmra.mxu1 %vm1172_vm4, %v5417_v20 }
 0x7a9   : > { %3381 = vmatmul.msk.f32.gmra.mxu1 %vm1172_vm4, %v5418_v0 }
 0x7b1   : > { %3382 = vmatmul.msk.f32.gmra.mxu1 %vm1172_vm4, %v5419_v26 }
 0x7b9   : > { %3383 = vmatmul.msk.f32.gmra.mxu1 %vm1172_vm4, %v5420_v8 }
 0x7c1   : > { %3384 = vmatmul.msk.f32.gmra.mxu1 %vm1172_vm4, %v5421_v29 }
 0x7c9   : > { %3385 = vmatmul.msk.f32.gmra.mxu1 %vm1172_vm4, %v4436_v3 }
 0x7d1   : > { %3386 = vmatmul.msk.f32.gmra.mxu1 %vm1172_vm4, %v5422_v25 }
 0x7d9   : > { %3387 = vmatmul.msk.f32.gmra.mxu1 %vm1172_vm4, %v5423_v40  ;;  %v4938_v40 = vld [vmem:[%s5308_s6 + $0x48] sm:$0xff] }
 0x7e1   : > { %3388 = vmatmul.msk.f32.gmra.mxu1 %vm1172_vm4, %v4463_v19 }
 0x7e9   : > { %3389 = vmatmul.msk.f32.gmra.mxu1 %vm1172_vm4, %v4478_v24 }
 0x7f1   : > { %3390 = vmatmul.msk.f32.gmra.mxu1 %vm1172_vm4, %v4496_v33 }
 0x7f6   : > { %v4884_v44 = vpop.f32.mrf.mxu1 }
 0x7f9   : > { %3391 = vmatmul.msk.f32.gmra.mxu1 %vm1172_vm4, %v4511_v35 }
 0x7fe   : > { %v4888_v3 = vpop.f32.mrf.mxu1 }
 0x801   : > { %3392 = vmatmul.msk.f32.gmra.mxu1 %vm1172_vm4, %v4526_v38 }
 0x806   : > { %v2134_v41 = vpop.f32.mrf.mxu1 }
 0x807   : > { %3393 = vmatmul.msk.f32.vlgmr.msrb.gmra.mxu0 %vm1172_vm4, %v2134_v41 }
 0x808   : > { %2779 = vmatpush.msrb.mxu0 %v4472_v21 }
 0x80a   : > { %2780 = vmatpush.msrb.mxu0 %v4483_v30 }
 0x80e   : > { %v2137_v19 = vpop.f32.mrf.mxu1 }
 0x80f   : > { %3394 = vmatmul.msk.f32.gmra.mxu0 %vm1172_vm4, %v2137_v19  ;;  %v4944_v19 = vld [vmem:[%s5308_s6 + $0x40] sm:$0xff] }
 0x816   : > { %v2140_v24 = vpop.f32.mrf.mxu1 }
 0x817   : > { %3395 = vmatmul.msk.f32.gmra.mxu0 %vm1172_vm4, %v2140_v24 }
 0x81e   : > { %v2143_v33 = vpop.f32.mrf.mxu1 }
 0x81f   : > { %3396 = vmatmul.msk.f32.gmra.mxu0 %vm1172_vm4, %v2143_v33  ;;  %v4950_v33 = vld [vmem:[%s5308_s6 + $0x38] sm:$0xff] }
 0x826   : > { %v2146_v35 = vpop.f32.mrf.mxu1 }
 0x827   : > { %3397 = vmatmul.msk.f32.gmra.mxu0 %vm1172_vm4, %v2146_v35 }
 0x82e   : > { %v2149_v38 = vpop.f32.mrf.mxu1 }
 0x82f   : > { %3398 = vmatmul.msk.f32.gmra.mxu0 %vm1172_vm4, %v2149_v38  ;;  %v4956_v38 = vld [vmem:[%s5308_s6 + $0x30] sm:$0xff] }
 0x836   : > { %v2152_v47 = vpop.f32.mrf.mxu1 }
 0x837   : > { %3399 = vmatmul.msk.f32.gmra.mxu0 %vm1172_vm4, %v2152_v47 }
 0x83e   : > { %v2155_v15 = vpop.f32.mrf.mxu1 }
 0x83f   : > { %3400 = vmatmul.msk.f32.gmra.mxu0 %vm1172_vm4, %v2155_v15  ;;  %v4962_v15 = vld [vmem:[%s5308_s6 + $0x28] sm:$0xff] }
 0x846   : > { %v2158_v49 = vpop.f32.mrf.mxu1 }
 0x847   : > { %3401 = vmatmul.msk.f32.gmra.mxu0 %vm1172_vm4, %v2158_v49 }
 0x84e   : > { %v2161_v62 = vpop.f32.mrf.mxu1 }
 0x84f   : > { %3402 = vmatmul.msk.f32.gmra.mxu0 %vm1172_vm4, %v2161_v62  ;;  %v4968_v62 = vld [vmem:[%s5308_s6 + $0x20] sm:$0xff] }
 0x856   : > { %v2164_v27 = vpop.f32.mrf.mxu1 }
 0x857   : > { %3403 = vmatmul.msk.f32.gmra.mxu0 %vm1172_vm4, %v2164_v27 }
 0x85e   : > { %v2167_v32 = vpop.f32.mrf.mxu1 }
 0x85f   : > { %3404 = vmatmul.msk.f32.gmra.mxu0 %vm1172_vm4, %v2167_v32  ;;  %v4974_v32 = vld [vmem:[%s5308_s6 + $0x18] sm:$0xff] }
 0x866   : > { %v2170_v50 = vpop.f32.mrf.mxu1 }
 0x867   : > { %3405 = vmatmul.msk.f32.gmra.mxu0 %vm1172_vm4, %v2170_v50 }
 0x86e   : > { %v2173_v39 = vpop.f32.mrf.mxu1 }
 0x86f   : > { %3406 = vmatmul.msk.f32.gmra.mxu0 %vm1172_vm4, %v2173_v39  ;;  %v4980_v39 = vld [vmem:[%s5308_s6 + $0x10] sm:$0xff] }
 0x876   : > { %v2176_v5 = vpop.f32.mrf.mxu1 }
 0x877   : > { %3407 = vmatmul.msk.f32.gmra.mxu0 %vm1172_vm4, %v2176_v5  ;;  %v4986_v5 = vld [vmem:[%s5308_s6 + $0x8] sm:$0xff] }
 0x87e   : > { %v2179_v34 = vpop.f32.mrf.mxu1 }
 0x87f   : > { %3408 = vmatmul.msk.f32.gmra.mxu0 %vm1172_vm4, %v2179_v34 }
 0x884   : > { %v4917_v36 = vpop.f32.mrf.mxu0 }
 0x885   : > { %v2295_v60 = vmul.f32 %v4992_v51, %v4917_v36  ;;  %v5434_v36 = vld [vmem:[#allocation43_spill] sm:$0xff] }
 0x887   : > { %2610 = vmatmul.f32.vlgmr.msra.gmra.mxu0 %v5424_v53 }
 0x88c   : > { %v2250_v55 = vpop.f32.mrf.mxu0 }
 0x88d   : > { %v2296_v34 = vmul.f32 %v4986_v5, %v2250_v55  ;;  %v5431_v55 = vld [vmem:[#allocation40_spill] sm:$0xff] }
 0x88f   : > { %2613 = vmatmul.f32.gmra.mxu0 %v5427_v43 }
 0x894   : > { %v2253_v52 = vpop.f32.mrf.mxu0 }
 0x895   : > { %v2297_v31 = vmul.f32 %v4980_v39, %v2253_v52  ;;  %v5429_v52 = vld [vmem:[#allocation30_spill] sm:$0xff] }
 0x89c   : > { %v2256_v63 = vpop.f32.mrf.mxu0 }
 0x89d   : > { %v2298_v50 = vmul.f32 %v4974_v32, %v2256_v63  ;;  %v5432_v63 = vld [vmem:[#allocation41_spill] sm:$0xff] }
 0x8a4   : > { %v2259_v1 = vpop.f32.mrf.mxu0 }
 0x8a5   : > { %v2299_v27 = vmul.f32 %v4968_v62, %v2259_v1  ;;  %v5433_v1 = vld [vmem:[#allocation42_spill] sm:$0xff] }
 0x8ac   : > { %v2262_v12 = vpop.f32.mrf.mxu0 }
 0x8ad   : > { %v2300_v49 = vmul.f32 %v4962_v15, %v2262_v12  ;;  %v5435_v12 = vld [vmem:[#allocation44_spill] sm:$0xff] }
 0x8b4   : > { %v2265_v28 = vpop.f32.mrf.mxu0 }
 0x8b5   : > { %v2301_v47 = vmul.f32 %v4956_v38, %v2265_v28 }
 0x8bc   : > { %v2268_v4 = vpop.f32.mrf.mxu0 }
 0x8bd   : > { %v2302_v35 = vmul.f32 %v4950_v33, %v2268_v4 }
 0x8c4   : > { %v2271_v7 = vpop.f32.mrf.mxu0 }
 0x8c5   : > { %v2303_v24 = vmul.f32 %v4944_v19, %v2271_v7 }
 0x8cc   : > { %v2274_v9 = vpop.f32.mrf.mxu0 }
 0x8cd   : > { %v2304_v41 = vmul.f32 %v4938_v40, %v2274_v9 }
 0x8d4   : > { %v2277_v11 = vpop.f32.mrf.mxu0 }
 0x8d5   : > { %v2305_v25 = vmul.f32 %v4835_v59, %v2277_v11 }
 0x8dc   : > { %v2280_v14 = vpop.f32.mrf.mxu0 }
 0x8dd   : > { %v2306_v29 = vmul.f32 %v4829_v17, %v2280_v14 }
 0x8e4   : > { %v2283_v16 = vpop.f32.mrf.mxu0 }
 0x8e5   : > { %v2307_v8 = vmul.f32 %v4823_v10, %v2283_v16 }
 0x8ec   : > { %v2286_v45 = vpop.f32.mrf.mxu0 }
 0x8ed   : > { %v2308_v26 = vmul.f32 %v4817_v22, %v2286_v45 }
 0x8f4   : > { %v2289_v18 = vpop.f32.mrf.mxu0 }
 0x8f5   : > { %v2309_v0 = vmul.f32 %v4811_v56, %v2289_v18 }
 0x8fc   : > { %v2292_v2 = vpop.f32.mrf.mxu0 }
 0x8fd   : > { %v2310_v20 = vmul.f32 %v4805_v42, %v2292_v2 }
 0x8ff   : > { %2311 = vmatpush.msra.mxu3 %v2310_v20 }
 0x901   : > { %2312 = vmatpush.msra.mxu3 %v2309_v0 }
 0x903   : > { %2313 = vmatpush.msra.mxu3 %v2308_v26 }
 0x905   : > { %2314 = vmatpush.msra.mxu3 %v2307_v8 }
 0x907   : > { %2315 = vmatpush.msra.mxu3 %v2306_v29 }
 0x909   : > { %2316 = vmatpush.msra.mxu3 %v2305_v25 }
 0x90b   : > { %2317 = vmatpush.msra.mxu3 %v2304_v41 }
 0x90d   : > { %2318 = vmatpush.msra.mxu3 %v2303_v24 }
 0x90f   : > { %2319 = vmatpush.msra.mxu3 %v2302_v35 }
 0x911   : > { %2320 = vmatpush.msra.mxu3 %v2301_v47 }
 0x913   : > { %2321 = vmatpush.msra.mxu3 %v2300_v49 }
 0x915   : > { %2322 = vmatpush.msra.mxu3 %v2299_v27 }
 0x917   : > { %2323 = vmatpush.msra.mxu3 %v2298_v50 }
 0x919   : > { %2324 = vmatpush.msra.mxu3 %v2297_v31 }
 0x91b   : > { %2325 = vmatpush.msra.mxu3 %v2296_v34 }
 0x91d   : > { %2326 = vmatpush.msra.mxu3 %v2295_v60 }
 0x91e   : > { %2327 = vmatmul.f32.vlgmr.msra.gmra.mxu3 %v5429_v52 }
 0x91f   : > { %2473 = vmatpush.msrb.mxu3 %v4472_v21  ;;  %v5436_v21 = vld [vmem:[#allocation45_spill] sm:$0xff] }
 0x921   : > { %2474 = vmatpush.msrb.mxu3 %v4483_v30  ;;  %v2393_v30 = vpop.f32.mrf.mxu2 }
 0x926   : > { %2330 = vmatmul.f32.gmra.mxu3 %v5430_v57 }
 0x929   : > { %v2396_v28 = vpop.f32.mrf.mxu2 }
 0x92e   : > { %3425 = vmatmul.msk.f32.vlgmr.msrb.gmra.mxu3 %vm1172_vm4, %v5431_v55 }
 0x931   : > { %v2399_v4 = vpop.f32.mrf.mxu2 }
 0x936   : > { %3426 = vmatmul.msk.f32.gmra.mxu3 %vm1172_vm4, %v5432_v63 }
 0x939   : > { %v2402_v7 = vpop.f32.mrf.mxu2 }
 0x93e   : > { %3427 = vmatmul.msk.f32.gmra.mxu3 %vm1172_vm4, %v5433_v1 }
 0x946   : > { %3428 = vmatmul.msk.f32.gmra.mxu3 %vm1172_vm4, %v5434_v36 }
 0x94e   : > { %3429 = vmatmul.msk.f32.gmra.mxu3 %vm1172_vm4, %v5435_v12 }
 0x956   : > { %3430 = vmatmul.msk.f32.gmra.mxu3 %vm1172_vm4, %v5436_v21 }
 0x95e   : > { %3431 = vmatmul.msk.f32.gmra.mxu3 %vm1172_vm4, %v4731_v6  ;;  %v2405_v6 = vpop.f32.mrf.mxu2 }
 0x966   : > { %3432 = vmatmul.msk.f32.gmra.mxu3 %vm1172_vm4, %v4740_v58 }
 0x96e   : > { %3433 = vmatmul.msk.f32.gmra.mxu3 %vm1172_vm4, %v4752_v13  ;;  %v2408_v13 = vpop.f32.mrf.mxu2 }
 0x976   : > { %3434 = vmatmul.msk.f32.gmra.mxu3 %vm1172_vm4, %v4761_v46 }
 0x97e   : > { %3435 = vmatmul.msk.f32.gmra.mxu3 %vm1172_vm4, %v2393_v30 }
 0x986   : > { %3436 = vmatmul.msk.f32.gmra.mxu3 %vm1172_vm4, %v2396_v28  ;;  %v5437_v28 = vld [vmem:[#allocation17_spill] sm:$0xff] }
 0x98e   : > { %3437 = vmatmul.msk.f32.gmra.mxu3 %vm1172_vm4, %v2399_v4  ;;  %v5438_v4 = vld [vmem:[#allocation20_spill] sm:$0xff] }
 0x996   : > { %3438 = vmatmul.msk.f32.gmra.mxu3 %vm1172_vm4, %v2402_v7  ;;  %v5439_v7 = vsub.f32 %v5437_v28, %v5438_v4 }
 0x998   : > { %3625 = vtanh.f32 %v5439_v7 }
 0x99e   : > { %3439 = vmatmul.msk.f32.gmra.mxu3 %vm1172_vm4, %v2405_v6 }
 0x9a1   : > { %v5025_v58 = vpop.f32.mrf.mxu3 }
 0x9a6   : > { %3440 = vmatmul.msk.f32.gmra.mxu3 %vm1172_vm4, %v2408_v13  ;;  %v5440_v13 = vld [vmem:[#allocation18_spill] sm:$0xff] }
 0x9a9   : > { %v5028_v46 = vpop.f32.mrf.mxu3 }
 0x9b1   : > { %v2476_v9 = vpop.f32.mrf.mxu3 }
 0x9b9   : > { %v2479_v11 = vpop.f32.mrf.mxu3 }
 0x9ba   : > { %v2525_v6 = vmul.f32 %v4986_v5, %v2479_v11  ;;  %v3645_v11 = vld [vmem:[%s5305_s3] sm:$0xff] }
 0x9c1   : > { %v2482_v14 = vpop.f32.mrf.mxu3 }
 0x9c2   : > { %v2526_v30 = vmul.f32 %v4980_v39, %v2482_v14 }
 0x9c9   : > { %v2485_v16 = vpop.f32.mrf.mxu3 }
 0x9ca   : > { %v2527_v21 = vmul.f32 %v4974_v32, %v2485_v16  ;;  %v3626_v16 = vpop.eup %3625 }
 0x9d1   : > { %v2488_v45 = vpop.f32.mrf.mxu3 }
 0x9d2   : > { %v2528_v12 = vmul.f32 %v4968_v62, %v2488_v45  ;;  %v2524_v45 = vmul.f32 %v4992_v51, %v2476_v9  ;;  %v3646_v9 = vld [vmem:[%s5305_s3 + $0x8] sm:$0xff] }
 0x9d9   : > { %v2491_v18 = vpop.f32.mrf.mxu3 }
 0x9da   : > { %v2529_v36 = vmul.f32 %v4962_v15, %v2491_v18  ;;  %v5441_v18 = vsub.f32 %v5437_v28, %v5440_v13  ;;  %v5136_v13 = vpop.f32.mrf.mxu0 }
 0x9dc   : > { %3627 = vtanh.f32 %v5441_v18 }
 0x9e1   : > { %v2494_v2 = vpop.f32.mrf.mxu3 }
 0x9e2   : > { %v2530_v1 = vmul.f32 %v4956_v38, %v2494_v2  ;;  %v3628_v14 = vpop.eup %3627  ;;  %v3649_v2 = vld [vmem:[%s5305_s3 + $0x20] sm:$0xff] }
 0x9e9   : > { %v2497_v20 = vpop.f32.mrf.mxu3 }
 0x9ea   : > { %v2531_v63 = vmul.f32 %v4950_v33, %v2497_v20  ;;  %v3650_v20 = vld [vmem:[%s5305_s3 + $0x28] sm:$0xff] }
 0x9f1   : > { %v2500_v0 = vpop.f32.mrf.mxu3 }
 0x9f2   : > { %v2532_v55 = vmul.f32 %v4944_v19, %v2500_v0  ;;  %v3651_v0 = vld [vmem:[%s5305_s3 + $0x30] sm:$0xff] }
 0x9f9   : > { %v2503_v26 = vpop.f32.mrf.mxu3 }
 0x9fa   : > { %v2533_v60 = vmul.f32 %v4938_v40, %v2503_v26  ;;  %v3652_v26 = vld [vmem:[%s5305_s3 + $0x38] sm:$0xff] }
 0xa01   : > { %v2506_v8 = vpop.f32.mrf.mxu3 }
 0xa02   : > { %v2534_v34 = vmul.f32 %v4835_v59, %v2506_v8  ;;  %v3653_v8 = vld [vmem:[%s5305_s3 + $0x40] sm:$0xff] }
 0xa09   : > { %v2509_v29 = vpop.f32.mrf.mxu3 }
 0xa0a   : > { %v2535_v31 = vmul.f32 %v4829_v17, %v2509_v29  ;;  %v3654_v29 = vld [vmem:[%s5305_s3 + $0x48] sm:$0xff] }
 0xa11   : > { %v2512_v25 = vpop.f32.mrf.mxu3 }
 0xa12   : > { %v2536_v50 = vmul.f32 %v4823_v10, %v2512_v25  ;;  %v3655_v25 = vld [vmem:[%s5305_s3 + $0x50] sm:$0xff] }
 0xa19   : > { %v2515_v41 = vpop.f32.mrf.mxu3 }
 0xa1a   : > { %v2537_v27 = vmul.f32 %v4817_v22, %v2515_v41  ;;  %v3656_v41 = vld [vmem:[%s5305_s3 + $0x58] sm:$0xff] }
 0xa21   : > { %v2518_v24 = vpop.f32.mrf.mxu3 }
 0xa22   : > { %v2538_v49 = vmul.f32 %v4811_v56, %v2518_v24  ;;  %v3657_v24 = vld [vmem:[%s5305_s3 + $0x60] sm:$0xff] }
 0xa29   : > { %v2521_v35 = vpop.f32.mrf.mxu3 }
 0xa2a   : > { %v2539_v47 = vmul.f32 %v4805_v42, %v2521_v35  ;;  %v3658_v35 = vld [vmem:[%s5305_s3 + $0x68] sm:$0xff] }
 0xa2c   : > { %2540 = vmatpush.msra.mxu1 %v2539_v47 }
 0xa2e   : > { %2541 = vmatpush.msra.mxu1 %v2538_v49  ;;  %v3659_v49 = vld [vmem:[%s5305_s3 + $0x70] sm:$0xff] }
 0xa30   : > { %2542 = vmatpush.msra.mxu1 %v2537_v27 }
 0xa32   : > { %2543 = vmatpush.msra.mxu1 %v2536_v50  ;;  %v3660_v50 = vld [vmem:[%s5305_s3 + $0x78] sm:$0xff] }
 0xa34   : > { %2544 = vmatpush.msra.mxu1 %v2535_v31 }
 0xa36   : > { %2545 = vmatpush.msra.mxu1 %v2534_v34 }
 0xa38   : > { %2546 = vmatpush.msra.mxu1 %v2533_v60 }
 0xa3a   : > { %2547 = vmatpush.msra.mxu1 %v2532_v55 }
 0xa3c   : > { %2548 = vmatpush.msra.mxu1 %v2531_v63 }
 0xa3e   : > { %2549 = vmatpush.msra.mxu1 %v2530_v1 }
 0xa40   : > { %2550 = vmatpush.msra.mxu1 %v2529_v36 }
 0xa42   : > { %2551 = vmatpush.msra.mxu1 %v2528_v12 }
 0xa44   : > { %2552 = vmatpush.msra.mxu1 %v2527_v21 }
 0xa46   : > { %2553 = vmatpush.msra.mxu1 %v2526_v30 }
 0xa48   : > { %2554 = vmatpush.msra.mxu1 %v2525_v6 }
 0xa4a   : > { %2555 = vmatpush.msra.mxu1 %v2524_v45  ;;  %v5139_v45 = vpop.f32.mrf.mxu0 }
 0xa4b   : > { %2556 = vmatmul.f32.vlgmr.msra.gmra.mxu1 %v5429_v52  ;;  %v3647_v52 = vld [vmem:[%s5305_s3 + $0x10] sm:$0xff] }
 0xa4c   : > { %2666 = vmatpush.msrb.mxu1 %v3626_v16 }
 0xa4e   : > { %2667 = vmatpush.msrb.mxu1 %v3628_v14 }
 0xa53   : > { %2559 = vmatmul.f32.gmra.mxu1 %v5430_v57  ;;  %v3648_v57 = vld [vmem:[%s5305_s3 + $0x18] sm:$0xff] }
 0xa5b   : > { %3441 = vmatmul.msk.f32.vlgmr.msrb.gmra.mxu1 %vm1172_vm4, %v3645_v11 }
 0xa63   : > { %3442 = vmatmul.msk.f32.gmra.mxu1 %vm1172_vm4, %v3646_v9 }
 0xa6b   : > { %3443 = vmatmul.msk.f32.gmra.mxu1 %vm1172_vm4, %v3647_v52 }
 0xa73   : > { %3444 = vmatmul.msk.f32.gmra.mxu1 %vm1172_vm4, %v3648_v57 }
 0xa7b   : > { %3445 = vmatmul.msk.f32.gmra.mxu1 %vm1172_vm4, %v3649_v2 }
 0xa83   : > { %3446 = vmatmul.msk.f32.gmra.mxu1 %vm1172_vm4, %v3650_v20 }
 0xa8b   : > { %3447 = vmatmul.msk.f32.gmra.mxu1 %vm1172_vm4, %v3651_v0 }
 0xa93   : > { %3448 = vmatmul.msk.f32.gmra.mxu1 %vm1172_vm4, %v3652_v26 }
 0xa9b   : > { %3449 = vmatmul.msk.f32.gmra.mxu1 %vm1172_vm4, %v3653_v8 }
 0xaa3   : > { %3450 = vmatmul.msk.f32.gmra.mxu1 %vm1172_vm4, %v3654_v29 }
 0xaab   : > { %3451 = vmatmul.msk.f32.gmra.mxu1 %vm1172_vm4, %v3655_v25 }
 0xab3   : > { %3452 = vmatmul.msk.f32.gmra.mxu1 %vm1172_vm4, %v3656_v41 }
 0xabb   : > { %3453 = vmatmul.msk.f32.gmra.mxu1 %vm1172_vm4, %v3657_v24 }
 0xac3   : > { %3454 = vmatmul.msk.f32.gmra.mxu1 %vm1172_vm4, %v3658_v35 }
 0xac8   : > { %v5110_v47 = vpop.f32.mrf.mxu1 }
 0xacb   : > { %3455 = vmatmul.msk.f32.gmra.mxu1 %vm1172_vm4, %v3659_v49  ;;  %v5142_v49 = vpop.f32.mrf.mxu2 }
 0xad0   : > { %v5116_v27 = vpop.f32.mrf.mxu1 }
 0xad3   : > { %3456 = vmatmul.msk.f32.gmra.mxu1 %vm1172_vm4, %v3660_v50 }
 0xad8   : > { %v2669_v31 = vpop.f32.mrf.mxu1 }
 0xad9   : > { %3457 = vmatmul.msk.f32.vlgmr.msrb.gmra.mxu0 %vm1172_vm4, %v2669_v31 }
 0xae0   : > { %v2672_v34 = vpop.f32.mrf.mxu1 }
 0xae1   : > { %3458 = vmatmul.msk.f32.gmra.mxu0 %vm1172_vm4, %v2672_v34 }
 0xae8   : > { %v2675_v60 = vpop.f32.mrf.mxu1 }
 0xae9   : > { %3459 = vmatmul.msk.f32.gmra.mxu0 %vm1172_vm4, %v2675_v60 }
 0xaf0   : > { %v2678_v55 = vpop.f32.mrf.mxu1 }
 0xaf1   : > { %3460 = vmatmul.msk.f32.gmra.mxu0 %vm1172_vm4, %v2678_v55 }
 0xaf8   : > { %v2681_v63 = vpop.f32.mrf.mxu1 }
 0xaf9   : > { %3461 = vmatmul.msk.f32.gmra.mxu0 %vm1172_vm4, %v2681_v63  ;;  %v5148_v63 = vpop.f32.mrf.mxu2 }
 0xb00   : > { %v2684_v1 = vpop.f32.mrf.mxu1 }
 0xb01   : > { %3462 = vmatmul.msk.f32.gmra.mxu0 %vm1172_vm4, %v2684_v1 }
 0xb08   : > { %v2687_v36 = vpop.f32.mrf.mxu1 }
 0xb09   : > { %3463 = vmatmul.msk.f32.gmra.mxu0 %vm1172_vm4, %v2687_v36 }
 0xb10   : > { %v2690_v12 = vpop.f32.mrf.mxu1 }
 0xb11   : > { %3464 = vmatmul.msk.f32.gmra.mxu0 %vm1172_vm4, %v2690_v12 }
 0xb18   : > { %v2693_v21 = vpop.f32.mrf.mxu1 }
 0xb19   : > { %3465 = vmatmul.msk.f32.gmra.mxu0 %vm1172_vm4, %v2693_v21 }
 0xb20   : > { %v2696_v30 = vpop.f32.mrf.mxu1 }
 0xb21   : > { %3466 = vmatmul.msk.f32.gmra.mxu0 %vm1172_vm4, %v2696_v30 }
 0xb28   : > { %v2699_v28 = vpop.f32.mrf.mxu1 }
 0xb29   : > { %3467 = vmatmul.msk.f32.gmra.mxu0 %vm1172_vm4, %v2699_v28  ;;  %v2898_v28 = vpop.f32.mrf.mxu2 }
 0xb30   : > { %v2702_v4 = vpop.f32.mrf.mxu1 }
 0xb31   : > { %3468 = vmatmul.msk.f32.gmra.mxu0 %vm1172_vm4, %v2702_v4 }
 0xb38   : > { %v2705_v7 = vpop.f32.mrf.mxu1 }
 0xb39   : > { %3469 = vmatmul.msk.f32.gmra.mxu0 %vm1172_vm4, %v2705_v7 }
 0xb40   : > { %v2708_v6 = vpop.f32.mrf.mxu1 }
 0xb41   : > { %3470 = vmatmul.msk.f32.gmra.mxu0 %vm1172_vm4, %v2708_v6 }
 0xb48   : > { %v2711_v18 = vpop.f32.mrf.mxu1 }
 0xb49   : > { %3471 = vmatmul.msk.f32.gmra.mxu0 %vm1172_vm4, %v2711_v18 }
 0xb50   : > { %v2714_v16 = vpop.f32.mrf.mxu1 }
 0xb51   : > { %3472 = vmatmul.msk.f32.gmra.mxu0 %vm1172_vm4, %v2714_v16 }
 0xb56   : > { %v2782_v14 = vpop.f32.mrf.mxu0 }
 0xb5e   : > { %v2785_v11 = vpop.f32.mrf.mxu0 }
 0xb66   : > { %v2788_v9 = vpop.f32.mrf.mxu0 }
 0xb67   : > { %v2832_v16 = vmul.f32 %v4980_v39, %v2788_v9  ;;  %v3662_v9 = vld [vmem:[%s5306_s4] sm:$0xff] }
 0xb6e   : > { %v2791_v52 = vpop.f32.mrf.mxu0 }
 0xb6f   : > { %v2833_v18 = vmul.f32 %v4974_v32, %v2791_v52 }
 0xb76   : > { %v2794_v57 = vpop.f32.mrf.mxu0 }
 0xb77   : > { %v2834_v6 = vmul.f32 %v4968_v62, %v2794_v57  ;;  %v3661_v57 = vld [vmem:[%s5306_s4 + $0x8] sm:$0xff] }
 0xb7e   : > { %v2797_v2 = vpop.f32.mrf.mxu0 }
 0xb7f   : > { %v2835_v7 = vmul.f32 %v4962_v15, %v2797_v2 }
 0xb86   : > { %v2800_v20 = vpop.f32.mrf.mxu0 }
 0xb87   : > { %v2836_v4 = vmul.f32 %v4956_v38, %v2800_v20 }
 0xb8e   : > { %v2803_v0 = vpop.f32.mrf.mxu0 }
 0xb8f   : > { %v2837_v30 = vmul.f32 %v4950_v33, %v2803_v0  ;;  %v2831_v0 = vmul.f32 %v4986_v5, %v2785_v11 }
 0xb96   : > { %v2806_v26 = vpop.f32.mrf.mxu0 }
 0xb97   : > { %v2838_v21 = vmul.f32 %v4944_v19, %v2806_v26  ;;  %v2901_v26 = vpop.f32.mrf.mxu2 }
 0xb9e   : > { %v2809_v8 = vpop.f32.mrf.mxu0 }
 0xb9f   : > { %v2839_v12 = vmul.f32 %v4938_v40, %v2809_v8  ;;  %v2830_v8 = vmul.f32 %v4992_v51, %v2782_v14  ;;  %v2904_v52 = vpop.f32.mrf.mxu2 }
 0xba6   : > { %v2812_v29 = vpop.f32.mrf.mxu0 }
 0xba7   : > { %v2840_v36 = vmul.f32 %v4835_v59, %v2812_v29  ;;  %v2907_v11 = vpop.f32.mrf.mxu2 }
 0xbae   : > { %v2815_v25 = vpop.f32.mrf.mxu0 }
 0xbaf   : > { %v2841_v1 = vmul.f32 %v4829_v17, %v2815_v25  ;;  %v2910_v14 = vpop.f32.mrf.mxu2 }
 0xbb6   : > { %v2818_v41 = vpop.f32.mrf.mxu0 }
 0xbb7   : > { %v2842_v55 = vmul.f32 %v4823_v10, %v2818_v41  ;;  %v2913_v2 = vpop.f32.mrf.mxu2 }
 0xbbe   : > { %v2821_v24 = vpop.f32.mrf.mxu0 }
 0xbbf   : > { %v2843_v60 = vmul.f32 %v4817_v22, %v2821_v24  ;;  %v2916_v20 = vpop.f32.mrf.mxu2 }
 0xbc6   : > { %v2824_v35 = vpop.f32.mrf.mxu0 }
 0xbc7   : > { %v2844_v34 = vmul.f32 %v4811_v56, %v2824_v35  ;;  %v2919_v29 = vpop.f32.mrf.mxu2  ;;  %v5179_v35 = vpop.permute.xlu1 %1508 }
 0xbce   : > { %v2827_v50 = vpop.f32.mrf.mxu0 }
 0xbcf   : > { %v2845_v31 = vmul.f32 %v4805_v42, %v2827_v50  ;;  %v2922_v25 = vpop.f32.mrf.mxu2  ;;  %v5181_v50 = vpop.permute.xlu2 %1802 }
 0xbd1   : > { %2846 = vmatpush.msra.mxu3 %v2845_v31 }
 0xbd3   : > { %2847 = vmatpush.msra.mxu3 %v2844_v34  ;;  %v5184_v34 = vpop.permute.xlu1 %1806 }
 0xbd5   : > { %2848 = vmatpush.msra.mxu3 %v2843_v60 }
 0xbd7   : > { %2849 = vmatpush.msra.mxu3 %v2842_v55  ;;  %v2925_v41 = vpop.f32.mrf.mxu2  ;;  %v5187_v60 = vpop.permute.xlu2 %2031 }
 0xbd9   : > { %2850 = vmatpush.msra.mxu3 %v2841_v1 }
 0xbdb   : > { %2851 = vmatpush.msra.mxu3 %v2840_v36  ;;  %v5190_v1 = vpop.permute.xlu1 %2084 }
 0xbdd   : > { %2852 = vmatpush.msra.mxu3 %v2839_v12 }
 0xbdf   : > { %2853 = vmatpush.msra.mxu3 %v2838_v21  ;;  %v2928_v24 = vpop.f32.mrf.mxu2  ;;  %v5192_v36 = vpop.permute.xlu2 %2089 }
 0xbe1   : > { %2854 = vmatpush.msra.mxu3 %v2837_v30 }
 0xbe3   : > { %2855 = vmatpush.msra.mxu3 %v2836_v4  ;;  %v5195_v12 = vpop.permute.xlu1 %2335 }
 0xbe5   : > { %2856 = vmatpush.msra.mxu3 %v2835_v7 }
 0xbe7   : > { %2857 = vmatpush.msra.mxu3 %v2834_v6  ;;  %v2931_v31 = vpop.f32.mrf.mxu2  ;;  %v5197_v30 = vpop.permute.xlu2 %2339 }
 0xbe9   : > { %2858 = vmatpush.msra.mxu3 %v2833_v18 }
 0xbeb   : > { %2859 = vmatpush.msra.mxu3 %v2832_v16 }
 0xbed   : > { %2860 = vmatpush.msra.mxu3 %v2831_v0 }
 0xbef   : > { %2861 = vmatpush.msra.mxu3 %v2830_v8  ;;  %v2934_v55 = vpop.f32.mrf.mxu2  ;;  %v2620_v7 = vpop.permute.xlu2 %2619 }
 0xbf0   : > { %2862 = vmatmul.f32.vlgmr.msra.gmra.mxu3 %v5424_v53  ;;  %v2627_v6 = vmul.f32 %v2620_v7, %v5136_v13 }
 0xbf1   : > { %3008 = vmatpush.msrb.mxu3 %v3661_v57 }
 0xbf3   : > { %3009 = vmatpush.msrb.mxu3 %v3662_v9 }
 0xbf7   : > { %v2937_v21 = vpop.f32.mrf.mxu2 }
 0xbf8   : > { %2865 = vmatmul.f32.gmra.mxu3 %v5427_v43 }
 0xbff   : > { %v2940_v4 = vpop.f32.mrf.mxu2 }
 0xc00   : > { %3489 = vmatmul.msk.f32.vlgmr.msrb.gmra.mxu3 %vm1172_vm4, %v2898_v28  ;;  %v5200_v28 = vpop.permute.xlu1 %2568 }
 0xc07   : > { %v2943_v8 = vpop.f32.mrf.mxu2 }
 0xc08   : > { %3490 = vmatmul.msk.f32.gmra.mxu3 %vm1172_vm4, %v2901_v26  ;;  %v2871_v18 = vpop.permute.xlu1 %2870  ;;  %v2647_v26 = vadd.f32 %v5142_v49, %v2627_v6 }
 0xc10   : > { %3491 = vmatmul.msk.f32.gmra.mxu3 %vm1172_vm4, %v2904_v52 }
 0xc18   : > { %3492 = vmatmul.msk.f32.gmra.mxu3 %vm1172_vm4, %v2907_v11 }
 0xc20   : > { %3493 = vmatmul.msk.f32.gmra.mxu3 %vm1172_vm4, %v2910_v14 }
 0xc28   : > { %3494 = vmatmul.msk.f32.gmra.mxu3 %vm1172_vm4, %v2913_v2 }
 0xc30   : > { %3495 = vmatmul.msk.f32.gmra.mxu3 %vm1172_vm4, %v2916_v20 }
 0xc38   : > { %3496 = vmatmul.msk.f32.gmra.mxu3 %vm1172_vm4, %v2919_v29 }
 0xc40   : > { %3497 = vmatmul.msk.f32.gmra.mxu3 %vm1172_vm4, %v2922_v25 }
 0xc48   : > { %3498 = vmatmul.msk.f32.gmra.mxu3 %vm1172_vm4, %v2925_v41 }
 0xc50   : > { %3499 = vmatmul.msk.f32.gmra.mxu3 %vm1172_vm4, %v2928_v24 }
 0xc58   : > { %3500 = vmatmul.msk.f32.gmra.mxu3 %vm1172_vm4, %v2931_v31 }
 0xc60   : > { %3501 = vmatmul.msk.f32.gmra.mxu3 %vm1172_vm4, %v2934_v55 }
 0xc68   : > { %3502 = vmatmul.msk.f32.gmra.mxu3 %vm1172_vm4, %v2937_v21 }
 0xc70   : > { %3503 = vmatmul.msk.f32.gmra.mxu3 %vm1172_vm4, %v2940_v4 }
 0xc73   : > { %v2863_v16 = vpop.f32.mrf.mxu3 }
 0xc74   : > { %v2877_v0 = vmul.f32 %v2871_v18, %v2863_v16  ;;  %v3112_v16 = vld [vmem:[%s5317_s15] sm:$0xff] }
 0xc75   : > { %3116 = vperm.xlu0 %3593, %v3112_v16   ;;  %3127 = vperm.xlu2 %3601, %v3112_v16  }
 0xc76   : > { %v5205_v57 = vadd.f32 %v2877_v0, %v2647_v26 }
 0xc78   : > { %3504 = vmatmul.msk.f32.gmra.mxu3 %vm1172_vm4, %v2943_v8 }
 0xc7b   : > { %v5208_v9 = vpop.f32.mrf.mxu3 }
 0xc7d   : > { %3602 = vset.pattern.permute.xlu0 %v5425_v48 }
 0xc83   : > { %v3011_v52 = vpop.f32.mrf.mxu3 }
 0xc8b   : > { %v3014_v11 = vpop.f32.mrf.mxu3 }
 0xc93   : > { %v3017_v14 = vpop.f32.mrf.mxu3 }
 0xc94   : > { %v3061_v48 = vmul.f32 %v4980_v39, %v3017_v14  ;;  %v2342_v39 = vmul.f32 %v5195_v12, %v5025_v58  ;;  %v5443_v14 = vld [vmem:[#allocation38_spill] sm:$0xff] }
 0xc9b   : > { %v3020_v2 = vpop.f32.mrf.mxu3 }
 0xca3   : > { %v3023_v20 = vpop.f32.mrf.mxu3 }
 0xcab   : > { %v3026_v13 = vpop.f32.mrf.mxu3 }
 0xcb3   : > { %v3029_v29 = vpop.f32.mrf.mxu3 }
 0xcbb   : > { %v3032_v25 = vpop.f32.mrf.mxu3 }
 0xcc3   : > { %v3035_v41 = vpop.f32.mrf.mxu3 }
 0xccb   : > { %v3038_v24 = vpop.f32.mrf.mxu3 }
 0xcd3   : > { %v3041_v31 = vpop.f32.mrf.mxu3 }
 0xcdb   : > { %v3044_v49 = vpop.f32.mrf.mxu3 }
 0xcdc   : > { %v3070_v8 = vmul.f32 %v4829_v17, %v3044_v49  ;;  %v3065_v17 = vmul.f32 %v4956_v38, %v3029_v29  ;;  %v3064_v49 = vmul.f32 %v4962_v15, %v3026_v13  ;;  %v2036_v38 = vpop.permute.xlu0 %2035  ;;  %v2038_v29 = vmul.f32 %v5187_v60, %v4884_v44 }
 0xcdd   : > { %v1810_v60 = vmul.f32 %v5184_v34, %v4800_v61 }
 0xce3   : > { %v3047_v55 = vpop.f32.mrf.mxu3 }
 0xce4   : > { %v3071_v0 = vmul.f32 %v4823_v10, %v3047_v55  ;;  %v3066_v10 = vmul.f32 %v4950_v33, %v3032_v25  ;;  %v3059_v33 = vmul.f32 %v4992_v51, %v3011_v52  ;;  %v2565_v15 = vpop.permute.xlu0 %2564  ;;  %v1809_v52 = vmul.f32 %v5181_v50, %v4796_v37  ;;  %v5445_v50 = vld [vmem:[#allocation34_spill] sm:$0xff] }
 0xce5   : > { %v2343_v37 = vmul.f32 %v5197_v30, %v5028_v46  ;;  %v1512_v55 = vmul.f32 %v5179_v35, %v5445_v50  ;;  %v2039_v30 = vmul.f32 %v2036_v38, %v4888_v3 }
 0xceb   : > { %v3050_v21 = vpop.f32.mrf.mxu3 }
 0xcec   : > { %v3072_v26 = vmul.f32 %v4817_v22, %v3050_v21  ;;  %v3067_v22 = vmul.f32 %v4944_v19, %v3035_v41  ;;  %v3060_v19 = vmul.f32 %v4986_v5, %v3014_v11  ;;  %v5442_v5 = vld [vmem:[#allocation33_spill] sm:$0xff]  ;;  %v5446_v21 = vld [vmem:[#allocation39_spill] sm:$0xff] }
 0xcf3   : > { %v3053_v4 = vpop.f32.mrf.mxu3 }
 0xcf4   : > { %v3073_v18 = vmul.f32 %v4811_v56, %v3053_v4  ;;  %v3069_v56 = vmul.f32 %v4835_v59, %v3041_v31  ;;  %v3068_v4 = vmul.f32 %v4938_v40, %v3038_v24  ;;  %v3063_v59 = vmul.f32 %v4968_v62, %v3023_v20  ;;  %v2875_v62 = vpop.permute.xlu2 %2874  ;;  %v1504_v20 = vpop.permute.xlu0 %1503 }
 0xcf5   : > { %v3062_v40 = vmul.f32 %v4974_v32, %v3020_v2  ;;  %v2092_v32 = vmul.f32 %v5190_v1, %v4908_v54  ;;  %v1511_v11 = vmul.f32 %v1504_v20, %v5442_v5  ;;  %v5444_v2 = vld [vmem:[#allocation29_spill] sm:$0xff]  ;;  %v2093_v54 = vmul.f32 %v5192_v36, %v4914_v23  ;;  %v3100_v1 = vpop.permute.xlu1 %3099 }
 0xcf6   : > { %v2572_v36 = vmul.f32 %v5200_v28, %v5116_v27  ;;  %v2878_v35 = vmul.f32 %v2875_v62, %v5208_v9 }
 0xcf7   : > { %v2112_v51 = vadd.f32 %v5443_v14, %v2092_v32  ;;  %v1531_v13 = vadd.f32 %v5444_v2, %v1511_v11  ;;  %v2115_v44 = vadd.f32 %v5446_v21, %v2093_v54 }
 0xcf9   : > { %v2344_v25 = vadd.f32 %v2342_v39, %v2112_v51  ;;  %v1811_v12 = vadd.f32 %v1809_v52, %v1531_v13  ;;  %v2345_v16 = vadd.f32 %v2343_v37, %v2115_v44 }
 0xcfb   : > { %v3056_v7 = vpop.f32.mrf.mxu3  ;;  %v2040_v31 = vadd.f32 %v2038_v29, %v1811_v12  ;;  %v2574_v34 = vadd.f32 %v2572_v36, %v2345_v16 }
 0xcfc   : > { %v3074_v6 = vmul.f32 %v4805_v42, %v3056_v7  ;;  %v3113_v42 = vld [vmem:[%s5317_s15 + $0x8] sm:$0xff]  ;;  %v2625_v58 = vpop.permute.xlu0 %2624 }
 0xcfd   : > { %3121 = vperm.xlu1 %3600, %v3113_v42   ;;  %3131 = vperm.xlu0 %3602, %v3113_v42   ;;  %v2628_v23 = vmul.f32 %v2625_v58, %v5139_v45 }
 0xcfe   : > { %3075 = vmatpush.msra.mxu1 %v3074_v6 }
 0xcff   : > { %v2650_v27 = vadd.f32 %v5148_v63, %v2628_v23 }
 0xd00   : > { %3076 = vmatpush.msra.mxu1 %v3073_v18  ;;  %v5447_v18 = vld [vmem:[#allocation31_spill] sm:$0xff] }
 0xd01   : > { %v1534_v46 = vadd.f32 %v5447_v18, %v1512_v55  ;;  %v2880_v42 = vadd.f32 %v2878_v35, %v2650_v27 }
 0xd02   : > { %3077 = vmatpush.msra.mxu1 %v3072_v26 }
 0xd03   : > { %v1812_v45 = vadd.f32 %v1810_v60, %v1534_v46 }
 0xd04   : > { %3078 = vmatpush.msra.mxu1 %v3071_v0  ;;  %v3117_v0 = vpop.permute.xlu0 %3116 }
 0xd06   : > { %3079 = vmatpush.msra.mxu1 %v3070_v8  ;;  %v2041_v8 = vadd.f32 %v2039_v30, %v1812_v45 }
 0xd08   : > { %3080 = vmatpush.msra.mxu1 %v3069_v56 }
 0xd0a   : > { %3081 = vmatpush.msra.mxu1 %v3068_v4  ;;  %v3663_v4 = vld [vmem:[%s3966_s19] sm:$0xff] }
 0xd0c   : > { %3082 = vmatpush.msra.mxu1 %v3067_v22 }
 0xd0e   : > { %3083 = vmatpush.msra.mxu1 %v3066_v10  ;;  %v2576_v10 = vadd.f32 %v2574_v34, %v2041_v8 }
 0xd10   : > { %3084 = vmatpush.msra.mxu1 %v3065_v17 }
 0xd12   : > { %3085 = vmatpush.msra.mxu1 %v3064_v49 }
 0xd14   : > { %3086 = vmatpush.msra.mxu1 %v3063_v59 }
 0xd16   : > { %3087 = vmatpush.msra.mxu1 %v3062_v40 }
 0xd18   : > { %3088 = vmatpush.msra.mxu1 %v3061_v48 }
 0xd1a   : > { %3089 = vmatpush.msra.mxu1 %v3060_v19  ;;  %v3664_v19 = vld [vmem:[%s3966_s19 + $0x8] sm:$0xff] }
 0xd1c   : > { %3090 = vmatpush.msra.mxu1 %v3059_v33 }
 0xd1d   : > { %3091 = vmatmul.f32.vlgmr.msra.gmra.mxu1 %v5424_v53  ;;  %v2571_v53 = vmul.f32 %v2565_v15, %v5110_v47 }
 0xd1f   : > { %v2573_v41 = vadd.f32 %v2571_v53, %v2344_v25 }
 0xd21   : > { %v2575_v6 = vadd.f32 %v2573_v41, %v2040_v31 }
 0xd25   : > { %3094 = vmatmul.f32.gmra.mxu1 %v5427_v43  ;;  %v3104_v43 = vpop.permute.xlu2 %3103 }
 0xd2d   : > { %v3128_v61 = vpop.permute.xlu2 %3127 }
 0xd6f   : > { %v3122_v17 = vpop.permute.xlu1 %3121  ;;  %v3132_v63 = vpop.permute.xlu0 %3131 }
 0xd9a   : > { %v3092_v24 = vpop.f32.mrf.mxu1 }
 0xd9b   : > { %v3106_v47 = vmul.f32 %v3100_v1, %v3092_v24 }
 0xd9d   : > { %v3108_v7 = vadd.f32 %v3106_v47, %v5205_v57 }
 0xd9f   : > { %v3110_v26 = vadd.f32 %v3108_v7, %v2575_v6 }
 0xda1   : > { %v3124_v28 = vmul.f32 %v3117_v0, %v3110_v26 }
 0xda2   : > { %v3095_v57 = vpop.f32.mrf.mxu1 }
 0xda3   : > { %v3134_v3 = vadd.f32 %v3128_v61, %v3124_v28  ;;  %v3107_v56 = vmul.f32 %v3104_v43, %v3095_v57 }
 0xda5   : > { %v3136_v9 = vadd.f32 %v3663_v4, %v3134_v3  ;;  %v3109_v22 = vadd.f32 %v3107_v56, %v2880_v42 }
 0xda7   : > { %v3138_v49 = vmax.f32 %v3136_v9, 0.0  ;;  %v3111_v59 = vadd.f32 %v3109_v22, %v2576_v10 }
 0xda9   : > { %3140 = vst [vmem:[%s531_s18] sm:$0xff] %v3138_v49  ;;  %v3125_v40 = vmul.f32 %v3122_v17, %v3111_v59 }
 0xdab   : > { %v3135_v48 = vadd.f32 %v3132_v63, %v3125_v40 }
 0xdad   : > { %v3137_v33 = vadd.f32 %v3664_v19, %v3135_v48 }
 0xdaf   : > { %v3139_v38 = vmax.f32 %v3137_v33, 0.0 }
 0xdb1   : > { %3141 = vst [vmem:[%s531_s18 + $0x8] sm:$0xff] %v3139_v38 }
 0xdb2   : > { %3722 = shalt.err (!%p3719_p8)
}
 0xdb3   : > { %s3771_s30 = smov 128   ;;  %s3772_s18 = smov 8  }
 0xdb4   : > { %3518 = dma.vmem_to_hbm [thread:$0]  (%p3896_p5), %s3156_s7, 256, %s3158_s23, %s3143_s25, %s3771_s30, %s3771_s30, %s3772_s18  }
 0xdb5 PF: > { %s5448_s29 = sld [smem:[#allocation8_spill]]  ;;  %p3530_p9 = scmp.ge.s32.totalorder %s3761_s24, 2 }
 0xdb7   : > { %p3525_p10 = pnand %p3530_p9, %p3900_p6 }
 0xdb9   : > { %p3526_p11 = pneg %p3525_p10 }
 0xdbb   : > { %s3172_s21 = sand.u32 1, %s5448_s29  }
 0xdbc   : > { %s3173_s17 = scalar_lea.sflag [#allocation4], %s3172_s21 }
 0xdbd   : > { %3744 = dma.done.wait (%p3526_p11), %s3173_s17, 256  }
 0xdbe   : > { %3746 = vsyncadd (%p3526_p11), %s3173_s17, 4294967040  ;;  %s5450_s24 = sld [smem:[#allocation10_spill]]  ;;  %s5453_s21 = smov %s3753_s22 }
 0xdbf   : > { %s5451_s27 = sld [smem:[#allocation9_spill]] }
 0xdc0   : > { %s5452_s23 = sld [smem:[#allocation11_spill]] }
 0xdc4   : > { %p27_p12 = scmp.ge.s32.totalorder %s5450_s24, 6  }
 0xdc5   : > { %s5454_s22 = smov %s5451_s27 }
 0xdc6   :  { %29 = sbr.rel (!%p27_p12) target bundleno = 8 (0x8), region = 130 }
 0xdcb   :  { %3179 = vsyncpa [#allocation3], 1 }
 0xdcc   :  { %3181 = vsyncpa [#allocation3 + $0x1], 1 }
 0xdcd   :  { %3182 = vsyncpa [#allocation4], 1 }
 0xdce   :  { %3184 = vsyncpa [#allocation4 + $0x1], 1 }

</bundles_post_ra>
